<compile_context>
chip_gen: v5e
topology: v5e:2x2
jax: 0.10.0
libtpu: 0.0.40
codegen_flags: <defaults>
</compile_context>

<pallas_src>
import jax
import jax.numpy as jnp
import numpy as np
from jax.experimental import pallas as pl
from jax.experimental.pallas import tpu as pltpu


def _round_up(x, m):
    return ((x + m - 1) // m) * m


# ---------------------------------------------------------------------------
# Fused kernel: TB samples per grid step, everything as plain 2-D matmuls.
# ---------------------------------------------------------------------------
def _freq_encoder_kernel(
    xa_ref, xp_ref,
    wa_ref, wp_ref, wma_ref, wmp_ref, w1a_ref, w1b_ref,
    w2a_ref, w2b_ref,
    bn_ref, wfc_ref, bfc_ref,
    out_ref,
):
    f32 = jnp.float32

    def dot(a, b_ref):
        # Cast the activation operand to the (bf16) weight dtype at the MXU
        # boundary only; accumulate in f32.  Elementwise math stays f32.
        b = b_ref[...]
        return jnp.dot(a.astype(b.dtype), b, preferred_element_type=f32)

    relu = lambda v: jnp.maximum(v, 0.0)

    bn = bn_ref[...]                      # (8, L*D) packed BN shift rows (f32)
    ld = bn.shape[1]                      # L * d_model
    ld2, ld4 = ld // 2, ld // 4

    xa = xa_ref[...]                      # (TB, L*Cin) f32
    xp = xp_ref[...]

    # conv_a / conv_p: Conv1d(k=5, pad=2) + BN + ReLU (BN scale folded into W).
    ca = relu(dot(xa, wa_ref) + bn[0:1, :])                        # (TB, L*D)
    cp = relu(dot(xp, wp_ref) + bn[1:2, :])

    # merge_conv on channel-concat([ca, cp]) == ca @ W_ma + cp @ W_mp (+ shift).
    me = dot(ca, wma_ref) + dot(cp, wmp_ref) + bn[2:3, :]

    # conv1: Conv(k=5)+BN+ReLU -> Conv(k=3)+BN
    h = relu(dot(me, w1a_ref) + bn[3:4, :])
    emb = dot(h, w1b_ref) + bn[4:5, :]

    # conv2: ReLU -> Conv(k=3)+BN+ReLU -> MaxPool(2,2)
    #             -> Conv(k=3)+BN+ReLU -> MaxPool(2,2) -> Flatten -> Linear.
    # MaxPool is folded into even|odd column halves of one fused conv matrix:
    # pooled = max(relu(y[:, :half]), relu(y[:, half:])); splits are 128-aligned.
    z = relu(me + emb)

    y1 = dot(z, w2a_ref) + bn[5:6, :]                              # (TB, L*D)
    p1 = jnp.maximum(relu(y1[:, :ld2]), relu(y1[:, ld2:]))         # (TB, L/2*D)

    y2 = dot(p1, w2b_ref) + bn[6:7, :ld2]                          # (TB, L/2*D)
    p2 = jnp.maximum(relu(y2[:, :ld4]), relu(y2[:, ld4:ld2]))      # (TB, L/4*D)

    # Flatten(1) + Linear (Dropout = identity in eval mode): one lane-dense
    # matmul into a 128-wide (zero-padded) output block.
    out_ref[...] = (dot(p2, wfc_ref) + bfc_ref[...]).astype(out_ref.dtype)


# ---------------------------------------------------------------------------
# Host-side parameter preparation (done once, outside the kernel).
# ---------------------------------------------------------------------------
def _conv_as_matrix(w, length):
    """Conv1d(kernel=K, padding=(K-1)//2, bias=False) over `length`, NWC layout,
    as a dense (length*Cin, length*Cout) matrix on (l, c) row-major data."""
    w = np.asarray(w, np.float32)
    K, Ci, Co = w.shape
    pad = (K - 1) // 2
    Wf = np.zeros((length, Ci, length, Co), np.float32)
    for l in range(length):                  # output position
        for k in range(K):
            lp = l + k - pad                 # input position
            if 0 <= lp < length:
                Wf[lp, :, l, :] = w[k]
    return Wf.reshape(length * Ci, length * Co)


def _tile_channels(v, length):
    """(1, C) per-channel vector -> (length*C,) vector in (l, c) row-major order."""
    return np.tile(np.asarray(v, np.float32).reshape(-1), length)


def prepare_kernel_params(params, L, weight_dtype=jnp.bfloat16):
    """Fold BN scales into dense conv matrices, fold each MaxPool into the
    even|odd column halves of one fused conv matrix, pack BN shifts into one
    f32 array, pad the FC weight to a 128-lane output, store weights in bf16."""
    D = int(params["w_a"].shape[-1])
    De = int(params["b_fc"].shape[-1])
    L2, L4 = L // 2, L // 4
    De_pad = max(128, _round_up(De, 128))    # lane-dense output width

    def scaled(wname, sname, length):
        return (_conv_as_matrix(params[wname], length)
                * _tile_channels(params[sname], length)[None, :])

    wa = scaled("w_a", "s_a", L)
    wp = scaled("w_p", "s_p", L)
    wma = scaled("w_ma", "s_m", L)
    wmp = scaled("w_mp", "s_m", L)
    w1a = scaled("w1a", "s1a", L)
    w1b = scaled("w1b", "s1b", L)

    def pool_cols(length):
        p = np.arange(length // 2)
        c = np.arange(D)
        even = (2 * p[:, None] * D + c[None, :]).reshape(-1)
        return even, even + D

    # MaxPool(2,2) folded into [even | odd] column halves of one fused matrix.
    ev1, od1 = pool_cols(L)
    w2a = scaled("w2a", "s2a", L)
    t2a = _tile_channels(params["b2a"], L)
    w2a_pool = np.concatenate([w2a[:, ev1], w2a[:, od1]], axis=1)    # (L*D, L*D)
    t2a_pool = np.concatenate([t2a[ev1], t2a[od1]])

    ev2, od2 = pool_cols(L2)
    w2b = scaled("w2b", "s2b", L2)
    t2b = _tile_channels(params["b2b"], L2)
    w2b_pool = np.concatenate([w2b[:, ev2], w2b[:, od2]], axis=1)    # (L/2*D, L/2*D)
    t2b_pool = np.concatenate([t2b[ev2], t2b[od2]])

    # Packed BN shift rows (shorter rows left-aligned, zero padded), kept in f32.
    bn = np.zeros((8, L * D), np.float32)
    bn[0] = _tile_channels(params["b_a"], L)
    bn[1] = _tile_channels(params["b_p"], L)
    bn[2] = _tile_channels(params["b_m"], L)
    bn[3] = _tile_channels(params["b1a"], L)
    bn[4] = _tile_channels(params["b1b"], L)
    bn[5] = t2a_pool
    bn[6, :L2 * D] = t2b_pool

    # NOTE: an imported torch w_fc must be permuted (PyTorch Flatten on NCL is
    # channel-major); here w_fc is defined as (L4, D, De) matching (l, c)-major.
    wfc = np.asarray(params["w_fc"], np.float32).reshape(L4 * D, De)
    wfc_pad = np.zeros((L4 * D, De_pad), np.float32)
    wfc_pad[:, :De] = wfc
    bfc_pad = np.zeros((1, De_pad), np.float32)
    bfc_pad[0, :De] = np.asarray(params["b_fc"], np.float32).reshape(-1)

    mats = (wa, wp, wma, wmp, w1a, w1b, w2a_pool, w2b_pool)
    weights = [jnp.asarray(m, weight_dtype) for m in mats]       # bf16 on the MXU
    weights += [jnp.asarray(bn, jnp.float32),                    # f32 elementwise
                jnp.asarray(wfc_pad, weight_dtype),
                jnp.asarray(bfc_pad, jnp.float32)]
    return {"weights": weights, "emb_dim": De, "out_pad": De_pad}


# ---------------------------------------------------------------------------
# Wrapper
# ---------------------------------------------------------------------------
def freq_encoder_forward(x_a, x_p, kernel_params, *, block_b=None):
    """x_a, x_p: (B, L, Cin) inputs (NWC). Returns (B, emb_dim)."""
    B, L, Cin = x_a.shape
    weights = kernel_params["weights"]
    De = kernel_params["emb_dim"]
    De_pad = kernel_params["out_pad"]

    if block_b is None:
        if B >= 512:
            block_b = 256                         # fill MXU M depth on v6e/v7x
        elif B > 16:
            block_b = _round_up((B + 1) // 2, 8)  # >=2 grid steps (feeds both v7x TCs)
        else:
            block_b = _round_up(B, 8)             # tiny batch: no padding to 128
    Bp = _round_up(B, block_b)

    xa = x_a.reshape(B, L * Cin).astype(jnp.float32)
    xp = x_p.reshape(B, L * Cin).astype(jnp.float32)
    if Bp != B:
        pad = jnp.zeros((Bp - B, L * Cin), xa.dtype)
        xa = jnp.concatenate([xa, pad], axis=0)
        xp = jnp.concatenate([xp, pad], axis=0)

    x_spec = pl.BlockSpec((block_b, L * Cin), lambda b: (b, 0))
    # Grid-invariant weights: constant index_map, so single-buffer them
    # (double-buffering buys nothing and doubles their VMEM footprint).
    w_specs = [pl.BlockSpec(w.shape, lambda b: (0, 0), pipeline_mode=pl.Buffered(1))
               for w in weights]

    # Size the scoped VMEM limit to the chip; conservative fallback otherwise.
    try:
        cap = int(pltpu.get_tpu_info().vmem_capacity_bytes)
        vmem_limit = max(min(cap // 2, 96 * 1024 * 1024), 32 * 1024 * 1024)
    except Exception:
        vmem_limit = 48 * 1024 * 1024

    out = pl.pallas_call(
        _freq_encoder_kernel,
        out_shape=jax.ShapeDtypeStruct((Bp, De_pad), jnp.float32),
        grid_spec=pltpu.PrefetchScalarGridSpec(
            num_scalar_prefetch=0,
            grid=(Bp // block_b,),
            in_specs=[x_spec, x_spec] + w_specs,
            out_specs=pl.BlockSpec((block_b, De_pad), lambda b: (b, 0)),
        ),
        compiler_params=pltpu.CompilerParams(
            dimension_semantics=("parallel",),
            vmem_limit_bytes=vmem_limit,
        ),
    )(xa, xp, *weights)
    return out[:B, :De]


# ---------------------------------------------------------------------------
# Plain-JAX reference (sanity check) and deterministic parameter init
# ---------------------------------------------------------------------------
def _ref_forward(x_a, x_p, p):
    def conv(x, w):
        pad = (w.shape[0] - 1) // 2
        return jax.lax.conv_general_dilated(
            x, w, window_strides=(1,), padding=[(pad, pad)],
            dimension_numbers=("NWC", "WIO", "NWC"))

    def bn(x, s, b):
        return x * s + b

    relu = jax.nn.relu
    ca = relu(bn(conv(x_a, p["w_a"]), p["s_a"], p["b_a"]))
    cp = relu(bn(conv(x_p, p["w_p"]), p["s_p"], p["b_p"]))
    merged = jnp.concatenate([ca, cp], axis=-1)
    w_m = jnp.concatenate([p["w_ma"], p["w_mp"]], axis=1)
    me = bn(conv(merged, w_m), p["s_m"], p["b_m"])
    h = relu(bn(conv(me, p["w1a"]), p["s1a"], p["b1a"]))
    emb = bn(conv(h, p["w1b"]), p["s1b"], p["b1b"])
    z = relu(me + emb)
    z = relu(bn(conv(z, p["w2a"]), p["s2a"], p["b2a"]))
    B, L, D = z.shape
    z = z.reshape(B, L // 2, 2, D).max(axis=2)
    z = relu(bn(conv(z, p["w2b"]), p["s2b"], p["b2b"]))
    z = z.reshape(B, L // 4, 2, D).max(axis=2)
    return jnp.einsum("lde,bld->be", p["w_fc"], z) + p["b_fc"]


def _bn_fold(key, c, eps=1e-5):
    k1, k2, k3, k4 = jax.random.split(key, 4)
    gamma = 1.0 + 0.1 * jax.random.normal(k1, (1, c), jnp.float32)
    beta = 0.1 * jax.random.normal(k2, (1, c), jnp.float32)
    mean = 0.1 * jax.random.normal(k3, (1, c), jnp.float32)
    var = 1.0 + 0.1 * jax.random.uniform(k4, (1, c), jnp.float32)
    scale = gamma / jnp.sqrt(var + eps)
    shift = beta - mean * scale
    return scale, shift


def init_params(key, cin, d, de, l):
    assert de == d, "merge_emb + emb requires emb_dim == d_model"
    ks = iter(jax.random.split(key, 24))

    def conv_w(k, K, ci, co):
        return jax.random.normal(k, (K, ci, co), jnp.float32) / jnp.sqrt(K * ci)

    p = {}
    p["w_a"] = conv_w(next(ks), 5, cin, d)
    p["s_a"], p["b_a"] = _bn_fold(next(ks), d)
    p["w_p"] = conv_w(next(ks), 5, cin, d)
    p["s_p"], p["b_p"] = _bn_fold(next(ks), d)
    p["w_ma"] = conv_w(next(ks), 5, d, d)
    p["w_mp"] = conv_w(next(ks), 5, d, d)
    p["s_m"], p["b_m"] = _bn_fold(next(ks), d)
    p["w1a"] = conv_w(next(ks), 5, d, d)
    p["s1a"], p["b1a"] = _bn_fold(next(ks), d)
    p["w1b"] = conv_w(next(ks), 3, d, de)
    p["s1b"], p["b1b"] = _bn_fold(next(ks), de)
    p["w2a"] = conv_w(next(ks), 3, d, d)
    p["s2a"], p["b2a"] = _bn_fold(next(ks), d)
    p["w2b"] = conv_w(next(ks), 3, d, d)
    p["s2b"], p["b2b"] = _bn_fold(next(ks), d)
    l4 = l // 4
    p["w_fc"] = jax.random.normal(next(ks), (l4, d, de), jnp.float32) / jnp.sqrt(l4 * d)
    p["b_fc"] = 0.1 * jax.random.normal(next(ks), (1, de), jnp.float32)
    return p


if __name__ == "__main__":
    # config: in_dim=4, n_freq=16, d_model=32, emb_dim=32 (== d_model), batch=2
    B, Cin, L, D, De = 2, 4, 16, 32, 32

    key = jax.random.PRNGKey(0)
    k_par, k_a, k_p = jax.random.split(key, 3)
    params = init_params(k_par, Cin, D, De, L)
    kparams = prepare_kernel_params(params, L)

    # kernel layout is (B, L, C); PyTorch would feed (B, C, L) = transpose of this.
    x_a = jax.random.normal(k_a, (B, L, Cin), jnp.float32)
    x_p = jax.random.normal(k_p, (B, L, Cin), jnp.float32)

    out = jax.block_until_ready(freq_encoder_forward(x_a, x_p, kparams))
    assert out.shape == (B, De), out.shape

    # bf16-weight kernel vs f32 reference: tolerance covers bf16 rounding with
    # f32 accumulation through the ~8-matmul-deep chain.
    ref = _ref_forward(x_a, x_p, params)
    if not jnp.allclose(out, ref, rtol=5e-2, atol=5e-2):
        raise AssertionError(
            f"mismatch vs reference: max abs diff {jnp.max(jnp.abs(out - ref))}")

    print("KERNEL_OK")
</pallas_src>

<mosaic_0001>
module attributes {stable_mosaic.version = 11 : i64} {
  func.func @_freq_encoder_kernel(%arg0: i32, %arg1: memref<8x64xf32, #tpu.memory_space<vmem>>, %arg2: memref<8x64xf32, #tpu.memory_space<vmem>>, %arg3: memref<64x512xbf16, #tpu.memory_space<vmem>>, %arg4: memref<64x512xbf16, #tpu.memory_space<vmem>>, %arg5: memref<512x512xbf16, #tpu.memory_space<vmem>>, %arg6: memref<512x512xbf16, #tpu.memory_space<vmem>>, %arg7: memref<512x512xbf16, #tpu.memory_space<vmem>>, %arg8: memref<512x512xbf16, #tpu.memory_space<vmem>>, %arg9: memref<512x512xbf16, #tpu.memory_space<vmem>>, %arg10: memref<256x256xbf16, #tpu.memory_space<vmem>>, %arg11: memref<8x512xf32, #tpu.memory_space<vmem>>, %arg12: memref<128x128xbf16, #tpu.memory_space<vmem>>, %arg13: memref<1x128xf32, #tpu.memory_space<vmem>>, %arg14: memref<8x128xf32, #tpu.memory_space<vmem>>) attributes {dimension_semantics = [#tpu.dimension_semantics<parallel>], iteration_bounds = array<i64: 1>, scalar_prefetch = 0 : i64, scratch_operands = 0 : i64, tpu.core_type = #tpu.core_type<tc>, window_params = [{transform_indices = @transform_0, window_bounds = array<i64: 8, 64>}, {transform_indices = @transform_1, window_bounds = array<i64: 8, 64>}, {pipeline_mode = #tpu.pipeline_mode<synchronous>, transform_indices = @transform_2, window_bounds = array<i64: 64, 512>}, {pipeline_mode = #tpu.pipeline_mode<synchronous>, transform_indices = @transform_3, window_bounds = array<i64: 64, 512>}, {pipeline_mode = #tpu.pipeline_mode<synchronous>, transform_indices = @transform_4, window_bounds = array<i64: 512, 512>}, {pipeline_mode = #tpu.pipeline_mode<synchronous>, transform_indices = @transform_5, window_bounds = array<i64: 512, 512>}, {pipeline_mode = #tpu.pipeline_mode<synchronous>, transform_indices = @transform_6, window_bounds = array<i64: 512, 512>}, {pipeline_mode = #tpu.pipeline_mode<synchronous>, transform_indices = @transform_7, window_bounds = array<i64: 512, 512>}, {pipeline_mode = #tpu.pipeline_mode<synchronous>, transform_indices = @transform_8, window_bounds = array<i64: 512, 512>}, {pipeline_mode = #tpu.pipeline_mode<synchronous>, transform_indices = @transform_9, window_bounds = array<i64: 256, 256>}, {pipeline_mode = #tpu.pipeline_mode<synchronous>, transform_indices = @transform_10, window_bounds = array<i64: 8, 512>}, {pipeline_mode = #tpu.pipeline_mode<synchronous>, transform_indices = @transform_11, window_bounds = array<i64: 128, 128>}, {pipeline_mode = #tpu.pipeline_mode<synchronous>, transform_indices = @transform_12, window_bounds = array<i64: 1, 128>}, {transform_indices = @transform_13, window_bounds = array<i64: 8, 128>}]} {
    %c0 = arith.constant 0 : index
    %c0_0 = arith.constant 0 : index
    %0 = vector.load %arg11[%c0, %c0_0] : memref<8x512xf32, #tpu.memory_space<vmem>>, vector<8x512xf32>
    %c0_1 = arith.constant 0 : index
    %c0_2 = arith.constant 0 : index
    %1 = vector.load %arg1[%c0_1, %c0_2] : memref<8x64xf32, #tpu.memory_space<vmem>>, vector<8x64xf32>
    %c0_3 = arith.constant 0 : index
    %c0_4 = arith.constant 0 : index
    %2 = vector.load %arg2[%c0_3, %c0_4] : memref<8x64xf32, #tpu.memory_space<vmem>>, vector<8x64xf32>
    %c0_5 = arith.constant 0 : index
    %c0_6 = arith.constant 0 : index
    %3 = vector.load %arg3[%c0_5, %c0_6] : memref<64x512xbf16, #tpu.memory_space<vmem>>, vector<64x512xbf16>
    %4 = arith.truncf %1 : vector<8x64xf32> to vector<8x64xbf16>
    %cst = arith.constant dense<0.000000e+00> : vector<8x512xf32>
    %5 = tpu.matmul %4, %3, %cst {dimension_numbers = #tpu.dot_dimension_numbers<[1], [0], [0], [1], [0, 0, 1, 1], [], []>} : vector<8x64xbf16>, vector<64x512xbf16>, vector<8x512xf32> -> vector<8x512xf32>
    %6 = vector.extract_strided_slice %0 {offsets = [0, 0], sizes = [1, 512], strides = [1, 1]} : vector<8x512xf32> to vector<1x512xf32>
    %7 = vector.broadcast %6 : vector<1x512xf32> to vector<8x512xf32>
    %8 = arith.addf %5, %7 : vector<8x512xf32>
    %cst_7 = arith.constant 0.000000e+00 : f32
    %9 = vector.broadcast %cst_7 : f32 to vector<8x512xf32>
    %10 = arith.maximumf %8, %9 : vector<8x512xf32>
    %c0_8 = arith.constant 0 : index
    %c0_9 = arith.constant 0 : index
    %11 = vector.load %arg4[%c0_8, %c0_9] : memref<64x512xbf16, #tpu.memory_space<vmem>>, vector<64x512xbf16>
    %12 = arith.truncf %2 : vector<8x64xf32> to vector<8x64xbf16>
    %cst_10 = arith.constant dense<0.000000e+00> : vector<8x512xf32>
    %13 = tpu.matmul %12, %11, %cst_10 {dimension_numbers = #tpu.dot_dimension_numbers<[1], [0], [0], [1], [0, 0, 1, 1], [], []>} : vector<8x64xbf16>, vector<64x512xbf16>, vector<8x512xf32> -> vector<8x512xf32>
    %14 = vector.extract_strided_slice %0 {offsets = [1, 0], sizes = [1, 512], strides = [1, 1]} : vector<8x512xf32> to vector<1x512xf32>
    %15 = vector.broadcast %14 : vector<1x512xf32> to vector<8x512xf32>
    %16 = arith.addf %13, %15 : vector<8x512xf32>
    %cst_11 = arith.constant 0.000000e+00 : f32
    %17 = vector.broadcast %cst_11 : f32 to vector<8x512xf32>
    %18 = arith.maximumf %16, %17 : vector<8x512xf32>
    %c0_12 = arith.constant 0 : index
    %c0_13 = arith.constant 0 : index
    %19 = vector.load %arg5[%c0_12, %c0_13] : memref<512x512xbf16, #tpu.memory_space<vmem>>, vector<512x512xbf16>
    %20 = arith.truncf %10 : vector<8x512xf32> to vector<8x512xbf16>
    %cst_14 = arith.constant dense<0.000000e+00> : vector<8x512xf32>
    %21 = tpu.matmul %20, %19, %cst_14 {dimension_numbers = #tpu.dot_dimension_numbers<[1], [0], [0], [1], [0, 0, 1, 1], [], []>} : vector<8x512xbf16>, vector<512x512xbf16>, vector<8x512xf32> -> vector<8x512xf32>
    %c0_15 = arith.constant 0 : index
    %c0_16 = arith.constant 0 : index
    %22 = vector.load %arg6[%c0_15, %c0_16] : memref<512x512xbf16, #tpu.memory_space<vmem>>, vector<512x512xbf16>
    %23 = arith.truncf %18 : vector<8x512xf32> to vector<8x512xbf16>
    %cst_17 = arith.constant dense<0.000000e+00> : vector<8x512xf32>
    %24 = tpu.matmul %23, %22, %cst_17 {dimension_numbers = #tpu.dot_dimension_numbers<[1], [0], [0], [1], [0, 0, 1, 1], [], []>} : vector<8x512xbf16>, vector<512x512xbf16>, vector<8x512xf32> -> vector<8x512xf32>
    %25 = arith.addf %21, %24 : vector<8x512xf32>
    %26 = vector.extract_strided_slice %0 {offsets = [2, 0], sizes = [1, 512], strides = [1, 1]} : vector<8x512xf32> to vector<1x512xf32>
    %27 = vector.broadcast %26 : vector<1x512xf32> to vector<8x512xf32>
    %28 = arith.addf %25, %27 : vector<8x512xf32>
    %c0_18 = arith.constant 0 : index
    %c0_19 = arith.constant 0 : index
    %29 = vector.load %arg7[%c0_18, %c0_19] : memref<512x512xbf16, #tpu.memory_space<vmem>>, vector<512x512xbf16>
    %30 = arith.truncf %28 : vector<8x512xf32> to vector<8x512xbf16>
    %cst_20 = arith.constant dense<0.000000e+00> : vector<8x512xf32>
    %31 = tpu.matmul %30, %29, %cst_20 {dimension_numbers = #tpu.dot_dimension_numbers<[1], [0], [0], [1], [0, 0, 1, 1], [], []>} : vector<8x512xbf16>, vector<512x512xbf16>, vector<8x512xf32> -> vector<8x512xf32>
    %32 = vector.extract_strided_slice %0 {offsets = [3, 0], sizes = [1, 512], strides = [1, 1]} : vector<8x512xf32> to vector<1x512xf32>
    %33 = vector.broadcast %32 : vector<1x512xf32> to vector<8x512xf32>
    %34 = arith.addf %31, %33 : vector<8x512xf32>
    %cst_21 = arith.constant 0.000000e+00 : f32
    %35 = vector.broadcast %cst_21 : f32 to vector<8x512xf32>
    %36 = arith.maximumf %34, %35 : vector<8x512xf32>
    %c0_22 = arith.constant 0 : index
    %c0_23 = arith.constant 0 : index
    %37 = vector.load %arg8[%c0_22, %c0_23] : memref<512x512xbf16, #tpu.memory_space<vmem>>, vector<512x512xbf16>
    %38 = arith.truncf %36 : vector<8x512xf32> to vector<8x512xbf16>
    %cst_24 = arith.constant dense<0.000000e+00> : vector<8x512xf32>
    %39 = tpu.matmul %38, %37, %cst_24 {dimension_numbers = #tpu.dot_dimension_numbers<[1], [0], [0], [1], [0, 0, 1, 1], [], []>} : vector<8x512xbf16>, vector<512x512xbf16>, vector<8x512xf32> -> vector<8x512xf32>
    %40 = vector.extract_strided_slice %0 {offsets = [4, 0], sizes = [1, 512], strides = [1, 1]} : vector<8x512xf32> to vector<1x512xf32>
    %41 = vector.broadcast %40 : vector<1x512xf32> to vector<8x512xf32>
    %42 = arith.addf %39, %41 : vector<8x512xf32>
    %43 = arith.addf %28, %42 : vector<8x512xf32>
    %cst_25 = arith.constant 0.000000e+00 : f32
    %44 = vector.broadcast %cst_25 : f32 to vector<8x512xf32>
    %45 = arith.maximumf %43, %44 : vector<8x512xf32>
    %c0_26 = arith.constant 0 : index
    %c0_27 = arith.constant 0 : index
    %46 = vector.load %arg9[%c0_26, %c0_27] : memref<512x512xbf16, #tpu.memory_space<vmem>>, vector<512x512xbf16>
    %47 = arith.truncf %45 : vector<8x512xf32> to vector<8x512xbf16>
    %cst_28 = arith.constant dense<0.000000e+00> : vector<8x512xf32>
    %48 = tpu.matmul %47, %46, %cst_28 {dimension_numbers = #tpu.dot_dimension_numbers<[1], [0], [0], [1], [0, 0, 1, 1], [], []>} : vector<8x512xbf16>, vector<512x512xbf16>, vector<8x512xf32> -> vector<8x512xf32>
    %49 = vector.extract_strided_slice %0 {offsets = [5, 0], sizes = [1, 512], strides = [1, 1]} : vector<8x512xf32> to vector<1x512xf32>
    %50 = vector.broadcast %49 : vector<1x512xf32> to vector<8x512xf32>
    %51 = arith.addf %48, %50 : vector<8x512xf32>
    %52 = vector.extract_strided_slice %51 {offsets = [0, 0], sizes = [8, 256], strides = [1, 1]} : vector<8x512xf32> to vector<8x256xf32>
    %cst_29 = arith.constant 0.000000e+00 : f32
    %53 = vector.broadcast %cst_29 : f32 to vector<8x256xf32>
    %54 = arith.maximumf %52, %53 : vector<8x256xf32>
    %55 = vector.extract_strided_slice %51 {offsets = [0, 256], sizes = [8, 256], strides = [1, 1]} : vector<8x512xf32> to vector<8x256xf32>
    %cst_30 = arith.constant 0.000000e+00 : f32
    %56 = vector.broadcast %cst_30 : f32 to vector<8x256xf32>
    %57 = arith.maximumf %55, %56 : vector<8x256xf32>
    %58 = arith.maximumf %54, %57 : vector<8x256xf32>
    %c0_31 = arith.constant 0 : index
    %c0_32 = arith.constant 0 : index
    %59 = vector.load %arg10[%c0_31, %c0_32] : memref<256x256xbf16, #tpu.memory_space<vmem>>, vector<256x256xbf16>
    %60 = arith.truncf %58 : vector<8x256xf32> to vector<8x256xbf16>
    %cst_33 = arith.constant dense<0.000000e+00> : vector<8x256xf32>
    %61 = tpu.matmul %60, %59, %cst_33 {dimension_numbers = #tpu.dot_dimension_numbers<[1], [0], [0], [1], [0, 0, 1, 1], [], []>} : vector<8x256xbf16>, vector<256x256xbf16>, vector<8x256xf32> -> vector<8x256xf32>
    %62 = vector.extract_strided_slice %0 {offsets = [6, 0], sizes = [1, 256], strides = [1, 1]} : vector<8x512xf32> to vector<1x256xf32>
    %63 = vector.broadcast %62 : vector<1x256xf32> to vector<8x256xf32>
    %64 = arith.addf %61, %63 : vector<8x256xf32>
    %65 = vector.extract_strided_slice %64 {offsets = [0, 0], sizes = [8, 128], strides = [1, 1]} : vector<8x256xf32> to vector<8x128xf32>
    %cst_34 = arith.constant 0.000000e+00 : f32
    %66 = vector.broadcast %cst_34 : f32 to vector<8x128xf32>
    %67 = arith.maximumf %65, %66 : vector<8x128xf32>
    %68 = vector.extract_strided_slice %64 {offsets = [0, 128], sizes = [8, 128], strides = [1, 1]} : vector<8x256xf32> to vector<8x128xf32>
    %cst_35 = arith.constant 0.000000e+00 : f32
    %69 = vector.broadcast %cst_35 : f32 to vector<8x128xf32>
    %70 = arith.maximumf %68, %69 : vector<8x128xf32>
    %71 = arith.maximumf %67, %70 : vector<8x128xf32>
    %c0_36 = arith.constant 0 : index
    %c0_37 = arith.constant 0 : index
    %72 = vector.load %arg12[%c0_36, %c0_37] : memref<128x128xbf16, #tpu.memory_space<vmem>>, vector<128x128xbf16>
    %73 = arith.truncf %71 : vector<8x128xf32> to vector<8x128xbf16>
    %cst_38 = arith.constant dense<0.000000e+00> : vector<8x128xf32>
    %74 = tpu.matmul %73, %72, %cst_38 {dimension_numbers = #tpu.dot_dimension_numbers<[1], [0], [0], [1], [0, 0, 1, 1], [], []>} : vector<8x128xbf16>, vector<128x128xbf16>, vector<8x128xf32> -> vector<8x128xf32>
    %c0_39 = arith.constant 0 : index
    %c0_40 = arith.constant 0 : index
    %75 = vector.load %arg13[%c0_39, %c0_40] : memref<1x128xf32, #tpu.memory_space<vmem>>, vector<1x128xf32>
    %76 = vector.broadcast %75 : vector<1x128xf32> to vector<8x128xf32>
    %77 = arith.addf %74, %76 : vector<8x128xf32>
    %c0_41 = arith.constant 0 : index
    %c0_42 = arith.constant 0 : index
    %78 = vector.load %arg14[%c0_41, %c0_42] : memref<8x128xf32, #tpu.memory_space<vmem>>, vector<8x128xf32>
    tpu.vector_store %arg14[%c0_41, %c0_42], %77 {strides = array<i32>} : memref<8x128xf32, #tpu.memory_space<vmem>>, vector<8x128xf32>,
    return
  }
  func.func @transform_0(%arg0: i32) -> (i32, i32) {
    %c0_i32 = arith.constant 0 : i32
    %c0_i32_0 = arith.constant 0 : i32
    return %arg0, %c0_i32 : i32, i32
  }
  func.func @transform_1(%arg0: i32) -> (i32, i32) {
    %c0_i32 = arith.constant 0 : i32
    %c0_i32_0 = arith.constant 0 : i32
    return %arg0, %c0_i32 : i32, i32
  }
  func.func @transform_2(%arg0: i32) -> (i32, i32) {
    %c0_i32 = arith.constant 0 : i32
    %c0_i32_0 = arith.constant 0 : i32
    %c0_i32_1 = arith.constant 0 : i32
    return %c0_i32, %c0_i32_0 : i32, i32
  }
  func.func @transform_3(%arg0: i32) -> (i32, i32) {
    %c0_i32 = arith.constant 0 : i32
    %c0_i32_0 = arith.constant 0 : i32
    %c0_i32_1 = arith.constant 0 : i32
    return %c0_i32, %c0_i32_0 : i32, i32
  }
  func.func @transform_4(%arg0: i32) -> (i32, i32) {
    %c0_i32 = arith.constant 0 : i32
    %c0_i32_0 = arith.constant 0 : i32
    %c0_i32_1 = arith.constant 0 : i32
    return %c0_i32, %c0_i32_0 : i32, i32
  }
  func.func @transform_5(%arg0: i32) -> (i32, i32) {
    %c0_i32 = arith.constant 0 : i32
    %c0_i32_0 = arith.constant 0 : i32
    %c0_i32_1 = arith.constant 0 : i32
    return %c0_i32, %c0_i32_0 : i32, i32
  }
  func.func @transform_6(%arg0: i32) -> (i32, i32) {
    %c0_i32 = arith.constant 0 : i32
    %c0_i32_0 = arith.constant 0 : i32
    %c0_i32_1 = arith.constant 0 : i32
    return %c0_i32, %c0_i32_0 : i32, i32
  }
  func.func @transform_7(%arg0: i32) -> (i32, i32) {
    %c0_i32 = arith.constant 0 : i32
    %c0_i32_0 = arith.constant 0 : i32
    %c0_i32_1 = arith.constant 0 : i32
    return %c0_i32, %c0_i32_0 : i32, i32
  }
  func.func @transform_8(%arg0: i32) -> (i32, i32) {
    %c0_i32 = arith.constant 0 : i32
    %c0_i32_0 = arith.constant 0 : i32
    %c0_i32_1 = arith.constant 0 : i32
    return %c0_i32, %c0_i32_0 : i32, i32
  }
  func.func @transform_9(%arg0: i32) -> (i32, i32) {
    %c0_i32 = arith.constant 0 : i32
    %c0_i32_0 = arith.constant 0 : i32
    %c0_i32_1 = arith.constant 0 : i32
    return %c0_i32, %c0_i32_0 : i32, i32
  }
  func.func @transform_10(%arg0: i32) -> (i32, i32) {
    %c0_i32 = arith.constant 0 : i32
    %c0_i32_0 = arith.constant 0 : i32
    %c0_i32_1 = arith.constant 0 : i32
    return %c0_i32, %c0_i32_0 : i32, i32
  }
  func.func @transform_11(%arg0: i32) -> (i32, i32) {
    %c0_i32 = arith.constant 0 : i32
    %c0_i32_0 = arith.constant 0 : i32
    %c0_i32_1 = arith.constant 0 : i32
    return %c0_i32, %c0_i32_0 : i32, i32
  }
  func.func @transform_12(%arg0: i32) -> (i32, i32) {
    %c0_i32 = arith.constant 0 : i32
    %c0_i32_0 = arith.constant 0 : i32
    %c0_i32_1 = arith.constant 0 : i32
    return %c0_i32, %c0_i32_0 : i32, i32
  }
  func.func @transform_13(%arg0: i32) -> (i32, i32) {
    %c0_i32 = arith.constant 0 : i32
    %c0_i32_0 = arith.constant 0 : i32
    return %arg0, %c0_i32 : i32, i32
  }
}

</mosaic_0001>

<bundles_post_ra>
// kernel: tpu_custom_call.1
= control target key start
LH: loop header
LB: loop body
LE: loop exit
PB: predicated region body
PF: predicated region fallthrough
CT: control target
= control target key end

     0   :  { %18 = vsyncpa [#allocation3], 0  ;;  %s10270_s0 = inlined_call_operand.hbm [shape: f32[8,64], index: 0, kind: input, shape index: {}]   ;;  %s10271_s1 = inlined_call_operand.hbm [shape: f32[8,64], index: 1, kind: input, shape index: {}]   ;;  %s10272_s2 = inlined_call_operand.hbm [shape: bf16[64,512], index: 2, kind: input, shape index: {}]   ;;  %s10273_s3 = inlined_call_operand.hbm [shape: bf16[64,512], index: 3, kind: input, shape index: {}]   ;;  %s10274_s4 = inlined_call_operand.hbm [shape: bf16[512,512], index: 4, kind: input, shape index: {}]   ;;  %s10275_s5 = inlined_call_operand.hbm [shape: bf16[512,512], index: 5, kind: input, shape index: {}]   ;;  %s10276_s6 = inlined_call_operand.hbm [shape: bf16[512,512], index: 6, kind: input, shape index: {}]   ;;  %s10277_s7 = inlined_call_operand.hbm [shape: bf16[512,512], index: 7, kind: input, shape index: {}]   ;;  %s10278_s8 = inlined_call_operand.hbm [shape: bf16[512,512], index: 8, kind: input, shape index: {}]   ;;  %s10279_s9 = inlined_call_operand.hbm [shape: bf16[256,256], index: 9, kind: input, shape index: {}]   ;;  %s10280_s10 = inlined_call_operand.hbm [shape: f32[8,512], index: 10, kind: input, shape index: {}]   ;;  %s10281_s11 = inlined_call_operand.hbm [shape: bf16[128,128], index: 11, kind: input, shape index: {}]   ;;  %s10282_s12 = inlined_call_operand.vmem [shape: f32[1,128], index: 12, kind: input, shape index: {}]   ;;  %s10283_s13 = inlined_call_operand.hbm [shape: f32[8,128], index: 13, kind: output, shape index: {}]  }
   0x1   :  { %19 = vsyncpa [#allocation6], 0 }
   0x2   :  { %20 = vsyncpa [#allocation9], 0 }
   0x3   :  { %21 = vsyncpa [#allocation12], 0 }
   0x4   :  { %22 = vsyncpa [#allocation15], 0 }
   0x5   :  { %23 = vsyncpa [#allocation18], 0 }
   0x6   :  { %24 = vsyncpa [#allocation21], 0  ;;  %s42_s27 = sshll.u32 %s10271_s1, 4  ;;  %s43_s27 = int_to_ptr.hbm [resolvable:$true] %s42_s27 }
   0x7   :  { %25 = vsyncpa [#allocation4], 0  ;;  %s9779_s28 = smov [#allocation5]   ;;  %s65_s15 = sshll.u32 %s10273_s3, 4  ;;  %s66_s15 = int_to_ptr.hbm [resolvable:$true] %s65_s15 }
   0x8   :  { %s44_s29 = sshll.u32 %s9779_s28, 4  ;;  %s9780_s16 = smov [#allocation8]   ;;  %s45_s29 = int_to_ptr.vmem [resolvable:$true] %s44_s29 }
   0x9   :  { %47 = dma.hbm_to_vmem [thread:$0]  %s43_s27, 128, %s45_s29, [#allocation6]  }
   0xa   :  { %s67_s17 = sshll.u32 %s9780_s16, 4  ;;  %s91_s20 = sshll.u32 %s10275_s5, 4  ;;  %s68_s17 = int_to_ptr.vmem [resolvable:$true] %s67_s17  ;;  %s92_s20 = int_to_ptr.hbm [resolvable:$true] %s91_s20 }
   0xb   :  { %s9781_s1 = smov 256   ;;  %s9782_s21 = smov 16  }
   0xc   :  { %73 = dma.hbm_to_vmem [thread:$0]  %s66_s15, 2048, %s68_s17, [#allocation9], %s9781_s1, %s9781_s1, %s9782_s21  }
   0xd   :  { %s117_s24 = sshll.u32 %s10277_s7, 4  ;;  %s9783_s3 = smov [#allocation11]   ;;  %s118_s24 = int_to_ptr.hbm [resolvable:$true] %s117_s24 }
   0xe   :  { %s93_s25 = sshll.u32 %s9783_s3, 4  ;;  %s9784_s5 = smov [#allocation14]   ;;  %s94_s25 = int_to_ptr.vmem [resolvable:$true] %s93_s25 }
   0xf   :  { %99 = dma.hbm_to_vmem [thread:$0]  %s92_s20, 16384, %s94_s25, [#allocation12], %s9781_s1, %s9781_s1, %s9782_s21  }
  0x10   :  { %s119_s26 = sshll.u32 %s9784_s5, 4  ;;  %s143_s29 = sshll.u32 %s10279_s9, 4  ;;  %s120_s26 = int_to_ptr.vmem [resolvable:$true] %s119_s26  ;;  %s144_s29 = int_to_ptr.hbm [resolvable:$true] %s143_s29 }
  0x11   :  { %125 = dma.hbm_to_vmem [thread:$0]  %s118_s24, 16384, %s120_s26, [#allocation15], %s9781_s1, %s9781_s1, %s9782_s21  }
  0x12   :  { %s9785_s7 = smov [#allocation17]   ;;  %s31_s16 = sshll.u32 %s10270_s0, 4  ;;  %s32_s16 = int_to_ptr.hbm [resolvable:$true] %s31_s16 }
  0x13   :  { %s145_s30 = sshll.u32 %s9785_s7, 4  ;;  %s9786_s17 = smov 128   ;;  %s146_s30 = int_to_ptr.vmem [resolvable:$true] %s145_s30 }
  0x14   :  { %s9787_s18 = smov 8   ;;  %s9788_s19 = smov [#allocation2]  }
  0x15   :  { %151 = dma.hbm_to_vmem [thread:$0]  %s144_s29, 4096, %s146_s30, [#allocation18], %s9786_s17, %s9786_s17, %s9787_s18  }
  0x16   :  { %s33_s20 = sshll.u32 %s9788_s19, 4  ;;  %s52_s23 = sshll.u32 %s10272_s2, 4  ;;  %s34_s20 = int_to_ptr.vmem [resolvable:$true] %s33_s20  ;;  %s53_s23 = int_to_ptr.hbm [resolvable:$true] %s52_s23 }
  0x17   :  { %36 = dma.hbm_to_vmem [thread:$0]  %s32_s16, 128, %s34_s20, [#allocation3]  }
  0x18   :  { %s78_s25 = sshll.u32 %s10274_s4, 4  ;;  %s9789_s5 = smov [#allocation7]   ;;  %s79_s25 = int_to_ptr.hbm [resolvable:$true] %s78_s25 }
  0x19   :  { %s54_s26 = sshll.u32 %s9789_s5, 4  ;;  %s9790_s0 = smov [#allocation10]   ;;  %s55_s26 = int_to_ptr.vmem [resolvable:$true] %s54_s26 }
  0x1a   :  { %60 = dma.hbm_to_vmem [thread:$0]  %s53_s23, 2048, %s55_s26, [#allocation6], %s9781_s1, %s9781_s1, %s9782_s21  }
  0x1b   :  { %s80_s27 = sshll.u32 %s9790_s0, 4  ;;  %s104_s2 = sshll.u32 %s10276_s6, 4  ;;  %s81_s27 = int_to_ptr.vmem [resolvable:$true] %s80_s27  ;;  %s105_s2 = int_to_ptr.hbm [resolvable:$true] %s104_s2 }
  0x1c   :  { %86 = dma.hbm_to_vmem [thread:$0]  %s79_s25, 16384, %s81_s27, [#allocation9], %s9781_s1, %s9781_s1, %s9782_s21  }
  0x1d   :  { %s130_s30 = sshll.u32 %s10278_s8, 4  ;;  %s9791_s14 = smov [#allocation13]   ;;  %s131_s30 = int_to_ptr.hbm [resolvable:$true] %s130_s30 }
  0x1e   :  { %s106_s15 = sshll.u32 %s9791_s14, 4  ;;  %s9792_s16 = smov [#allocation16]   ;;  %s107_s15 = int_to_ptr.vmem [resolvable:$true] %s106_s15 }
  0x1f   :  { %112 = dma.hbm_to_vmem [thread:$0]  %s105_s2, 16384, %s107_s15, [#allocation12], %s9781_s1, %s9781_s1, %s9782_s21  }
  0x20   :  { %s132_s6 = sshll.u32 %s9792_s16, 4  ;;  %s157_s19 = sshll.u32 %s10280_s10, 4  ;;  %s133_s6 = int_to_ptr.vmem [resolvable:$true] %s132_s6  ;;  %s158_s19 = int_to_ptr.hbm [resolvable:$true] %s157_s19 }
  0x21   :  { %138 = dma.hbm_to_vmem [thread:$0]  %s131_s30, 16384, %s133_s6, [#allocation15], %s9781_s1, %s9781_s1, %s9782_s21  }
  0x22   :  { %s167_s9 = sshll.u32 %s10281_s11, 4  ;;  %s9793_s22 = smov [#allocation19]   ;;  %s168_s9 = int_to_ptr.hbm [resolvable:$true] %s167_s9 }
  0x23   :  { %s159_s23 = sshll.u32 %s9793_s22, 4  ;;  %s9794_s24 = smov [#allocation20]   ;;  %s160_s23 = int_to_ptr.vmem [resolvable:$true] %s159_s23 }
  0x24   :  { %162 = dma.hbm_to_vmem [thread:$0]  %s158_s19, 512, %s160_s23, [#allocation18]  }
  0x25   :  { %s169_s3 = sshll.u32 %s9794_s24, 4  ;;  %s9795_s25 = smov 64   ;;  %s170_s3 = int_to_ptr.vmem [resolvable:$true] %s169_s3 }
  0x26   :  { %s9796_s10 = smov 4  }
  0x27   :  { %175 = dma.hbm_to_vmem [thread:$0]  %s168_s9, 1024, %s170_s3, [#allocation21], %s9795_s25, %s9795_s25, %s9796_s10  }
  0x28   :  { %9763 = dma.done.wait [#allocation3], 128  }
  0x29   :  { %9764 = vsyncadd [#allocation3], 4294967168 }
  0x2a   :  { %9765 = dma.done.wait [#allocation6], 2176  }
  0x2b   :  { %9766 = vsyncadd [#allocation6], 4294965120 }
  0x2c   :  { %9767 = dma.done.wait [#allocation9], 18432  }
  0x2d   :  { %9768 = vsyncadd [#allocation9], 4294948864 }
  0x2e   :  { %9769 = dma.done.wait [#allocation12], 32768  }
  0x2f   :  { %9770 = vsyncadd [#allocation12], 4294934528 }
  0x30   :  { %9771 = dma.done.wait [#allocation15], 32768  }
  0x31   :  { %9772 = vsyncadd [#allocation15], 4294934528 }
  0x32   :  { %9773 = dma.done.wait [#allocation18], 4608  }
  0x33   :  { %9774 = vsyncadd [#allocation18], 4294962688 }
  0x34   :  { %9775 = dma.done.wait [#allocation21], 1024  }
  0x35   :  { %9776 = vsyncadd [#allocation21], 4294966272  ;;  %v5899_v0 = vld [vmem:[#allocation7 + $0x60] sm:$0xf]  ;;  %v8719_v1 = vld [vmem:[#allocation7 + $0x6c] sm:$0xf0] }
  0x36   :  { %v5907_v2 = vld [vmem:[#allocation7 + $0x68] sm:$0xf]  ;;  %v5900_v3 = vor.u32 %v8719_v1, %v5899_v0  ;;  %v8720_v4 = vld [vmem:[#allocation7 + $0x74] sm:$0xf0]  ;;  %v8718_v5 = vld [vmem:[#allocation7 + $0x6c] sm:$0xf] }
  0x37   :  { %v5909_v6 = vld [vmem:[#allocation7 + $0x78] sm:$0xf0]  ;;  %v5908_v7 = vor.u32 %v8720_v4, %v5907_v2  ;;  %v5967_v9 = vld [vmem:[#allocation8 + $0x60] sm:$0xf]  ;;  %v8735_v10 = vld [vmem:[#allocation8 + $0x6c] sm:$0xf0] }
  0x38   :  { %v5912_v8 = vor.u32 %v8718_v5, %v5909_v6  ;;  %v5883_v11 = vld [vmem:[#allocation7 + $0x40] sm:$0xf]  ;;  %342 = vmatpush.bf16.msra.mxu1 %v5900_v3  ;;  %v5968_v12 = vor.u32 %v8735_v10, %v5967_v9  ;;  %v8715_v13 = vld [vmem:[#allocation7 + $0x4c] sm:$0xf0]  ;;  %v5891_v14 = vld [vmem:[#allocation7 + $0x48] sm:$0xf] }
  0x39   :  { %v8716_v15 = vld [vmem:[#allocation7 + $0x54] sm:$0xf0]  ;;  %368 = vmatpush.bf16.msra.mxu2 %v5908_v7  ;;  %v5884_v16 = vor.u32 %v8715_v13, %v5883_v11  ;;  %v8714_v18 = vld [vmem:[#allocation7 + $0x4c] sm:$0xf]  ;;  %v5893_v19 = vld [vmem:[#allocation7 + $0x58] sm:$0xf0] }
  0x3a   :  { %381 = vmatpush.bf16.msra.mxu3 %v5912_v8  ;;  %v5892_v17 = vor.u32 %v8716_v15, %v5891_v14  ;;  %v5951_v20 = vld [vmem:[#allocation8 + $0x40] sm:$0xf]  ;;  %502 = vmatpush.bf16.msra.mxu0 %v5968_v12  ;;  %v5896_v21 = vor.u32 %v8714_v18, %v5893_v19  ;;  %v8731_v22 = vld [vmem:[#allocation8 + $0x4c] sm:$0xf0]  ;;  %v5875_v26 = vld [vmem:[#allocation7 + $0x28] sm:$0xf] }
  0x3b   :  { %v5867_v23 = vld [vmem:[#allocation7 + $0x20] sm:$0xf]  ;;  %v8711_v24 = vld [vmem:[#allocation7 + $0x2c] sm:$0xf0]  ;;  %v5952_v25 = vor.u32 %v8731_v22, %v5951_v20  ;;  %v8712_v27 = vld [vmem:[#allocation7 + $0x34] sm:$0xf0] }
  0x3c   :  { %v8710_v28 = vld [vmem:[#allocation7 + $0x2c] sm:$0xf]  ;;  %343 = vmatpush.bf16.msra.mxu1 %v5884_v16  ;;  %v5868_v29 = vor.u32 %v8711_v24, %v5867_v23  ;;  %v5877_v30 = vld [vmem:[#allocation7 + $0x38] sm:$0xf0]  ;;  %v5935_v31 = vld [vmem:[#allocation8 + $0x20] sm:$0xf]  ;;  %v5876_v33 = vor.u32 %v8712_v27, %v5875_v26 }
  0x3d   :  { %v8727_v32 = vld [vmem:[#allocation8 + $0x2c] sm:$0xf0]  ;;  %369 = vmatpush.bf16.msra.mxu2 %v5892_v17  ;;  %v5880_v34 = vor.u32 %v8710_v28, %v5877_v30  ;;  %v5851_v35 = vld [vmem:[#allocation7] sm:$0xf]  ;;  %v5859_v37 = vld [vmem:[#allocation7 + $0x8] sm:$0xf] }
  0x3e   :  { %382 = vmatpush.bf16.msra.mxu3 %v5896_v21  ;;  %v8707_v36 = vld [vmem:[#allocation7 + $0xc] sm:$0xf0]  ;;  %503 = vmatpush.bf16.msra.mxu0 %v5952_v25  ;;  %v5936_v38 = vor.u32 %v8727_v32, %v5935_v31  ;;  %v8708_v39 = vld [vmem:[#allocation7 + $0x14] sm:$0xf0]  ;;  %v8706_v40 = vld [vmem:[#allocation7 + $0xc] sm:$0xf] }
  0x3f   :  { %v5861_v41 = vld [vmem:[#allocation7 + $0x18] sm:$0xf0]  ;;  %v5919_v42 = vld [vmem:[#allocation8] sm:$0xf]  ;;  %v8723_v43 = vld [vmem:[#allocation8 + $0xc] sm:$0xf0]  ;;  %v5852_v44 = vor.u32 %v8707_v36, %v5851_v35  ;;  %v5860_v48 = vor.u32 %v8708_v39, %v5859_v37 }
  0x40   :  { %344 = vmatpush.bf16.msra.mxu1 %v5868_v29  ;;  %v231_v45 = vld [vmem:[#allocation2] sm:$0xff]  ;;  %v8717_v46 = vld [vmem:[#allocation7 + $0x64] sm:$0xf]  ;;  %v5864_v49 = vor.u32 %v8706_v40, %v5861_v41  ;;  %v5975_v50 = vld [vmem:[#allocation8 + $0x68] sm:$0xf]  ;;  %v5920_v52 = vor.u32 %v8723_v43, %v5919_v42  ;;  %vm334_vm0 = vcmask 523264  }
  0x41   :  { %v5901_v47 = vld [vmem:[#allocation7 + $0x70] sm:$0xf0]  ;;  %370 = vmatpush.bf16.msra.mxu2 %v5876_v33  ;;  %v8736_v51 = vld [vmem:[#allocation8 + $0x74] sm:$0xf0]  ;;  %v8734_v55 = vld [vmem:[#allocation8 + $0x6c] sm:$0xf]  ;;  %v9925_v57 = vpack.c.bf16 %v231_v45, %v231_v45 }
  0x42   :  { %383 = vmatpush.bf16.msra.mxu3 %v5880_v34  ;;  %504 = vmatpush.bf16.msra.mxu0 %v5936_v38  ;;  %v232_v53 = vld [vmem:[#allocation5] sm:$0xff]  ;;  %v5904_v54 = vor.u32 %v8717_v46, %v5901_v47  ;;  %v5976_v58 = vor.u32 %v8736_v51, %v5975_v50  ;;  %v8713_v59 = vld [vmem:[#allocation7 + $0x44] sm:$0xf]  ;;  %v5885_v60 = vld [vmem:[#allocation7 + $0x50] sm:$0xf0]  ;;  %s9797_s21 = smov [#allocation22]  }
  0x43   :  { %v5977_v56 = vld [vmem:[#allocation8 + $0x78] sm:$0xf0]  ;;  %v5959_v61 = vld [vmem:[#allocation8 + $0x48] sm:$0xf]  ;;  %v8732_v62 = vld [vmem:[#allocation8 + $0x54] sm:$0xf0]  ;;  %v9927_v63 = vpack.c.bf16 %v232_v53, %v232_v53  ;;  %v5888_v1 = vor.u32 %v8713_v59, %v5885_v60 }
  0x44   :  { %345 = vmatpush.bf16.msra.mxu1 %v5852_v44  ;;  %v5980_v0 = vor.u32 %v8734_v55, %v5977_v56  ;;  %v8730_v2 = vld [vmem:[#allocation8 + $0x4c] sm:$0xf]  ;;  %v5961_v3 = vld [vmem:[#allocation8 + $0x58] sm:$0xf0]  ;;  %v5960_v4 = vor.u32 %v8732_v62, %v5959_v61  ;;  %v8709_v5 = vld [vmem:[#allocation7 + $0x24] sm:$0xf] }
  0x45   :  { %371 = vmatpush.bf16.msra.mxu2 %v5860_v48  ;;  %v5869_v6 = vld [vmem:[#allocation7 + $0x30] sm:$0xf0]  ;;  %v5943_v7 = vld [vmem:[#allocation8 + $0x28] sm:$0xf]  ;;  %v8728_v8 = vld [vmem:[#allocation8 + $0x34] sm:$0xf0]  ;;  %v5964_v9 = vor.u32 %v8730_v2, %v5961_v3 }
  0x46   :  { %384 = vmatpush.bf16.msra.mxu3 %v5864_v49  ;;  %505 = vmatpush.bf16.msra.mxu0 %v5920_v52  ;;  %v8726_v10 = vld [vmem:[#allocation8 + $0x2c] sm:$0xf]  ;;  %v5945_v11 = vld [vmem:[#allocation8 + $0x38] sm:$0xf0]  ;;  %v8705_v12 = vld [vmem:[#allocation7 + $0x4] sm:$0xf]  ;;  %v5872_v13 = vor.u32 %v8709_v5, %v5869_v6  ;;  %v5944_v17 = vor.u32 %v8728_v8, %v5943_v7 }
  0x47   :  { %5913 = vmatmul.msk.bf16.vlgmr.msra.gmra.mxu1 %vm334_vm0, %v9925_v57  ;;  %v5853_v14 = vld [vmem:[#allocation7 + $0x10] sm:$0xf0]  ;;  %v5927_v15 = vld [vmem:[#allocation8 + $0x8] sm:$0xf]  ;;  %v8724_v16 = vld [vmem:[#allocation8 + $0x14] sm:$0xf0]  ;;  %v5948_v25 = vor.u32 %v8726_v10, %v5945_v11 }
  0x48   :  { %355 = vmatpush.bf16.msrb.mxu1 %v5904_v54  ;;  %5915 = vmatmul.msk.bf16.vlgmr.msra.gmra.mxu2 %vm334_vm0, %v9925_v57  ;;  %v6099_v18 = vld [vmem:[#allocation11 + $0xe0] sm:$0xf]  ;;  %v8895_v19 = vld [vmem:[#allocation11 + $0xec] sm:$0xf0]  ;;  %v8733_v21 = vld [vmem:[#allocation8 + $0x64] sm:$0xf]  ;;  %v5856_v27 = vor.u32 %v8705_v12, %v5853_v14  ;;  %v5928_v32 = vor.u32 %v8724_v16, %v5927_v15 }
  0x49   :  { %528 = vmatpush.bf16.msrb.mxu2 %v5976_v58  ;;  %5916 = vmatmul.msk.bf16.vlgmr.msra.gmra.mxu3 %vm334_vm0, %v9925_v57  ;;  %v6083_v20 = vld [vmem:[#allocation11 + $0xc0] sm:$0xf]  ;;  %v5969_v22 = vld [vmem:[#allocation8 + $0x70] sm:$0xf0]  ;;  %v6100_v23 = vor.u32 %v8895_v19, %v6099_v18  ;;  %v8891_v24 = vld [vmem:[#allocation11 + $0xcc] sm:$0xf0] }
  0x4a   :  { %5981 = vmatmul.msk.bf16.vlgmr.msra.gmra.mxu0 %vm334_vm0, %v9927_v63  ;;  %541 = vmatpush.bf16.msrb.mxu3 %v5980_v0  ;;  %v8722_v26 = vld [vmem:[#allocation8 + $0xc] sm:$0xf]  ;;  %v5929_v28 = vld [vmem:[#allocation8 + $0x18] sm:$0xf0]  ;;  %v6084_v29 = vor.u32 %v8891_v24, %v6083_v20  ;;  %v6067_v30 = vld [vmem:[#allocation11 + $0xa0] sm:$0xf]  ;;  %v5972_v33 = vor.u32 %v8733_v21, %v5969_v22 }
  0x4b   :  { %1458 = vmatpush.bf16.msrb.mxu0 %v6100_v23  ;;  %v8887_v31 = vld [vmem:[#allocation11 + $0xac] sm:$0xf0]  ;;  %v6355_v34 = vld [vmem:[#allocation11 + $0x2e0] sm:$0xf]  ;;  %v5932_v39 = vor.u32 %v8722_v26, %v5929_v28  ;;  %v8729_v40 = vld [vmem:[#allocation8 + $0x44] sm:$0xf] }
  0x4c   :  { %356 = vmatpush.bf16.msrb.mxu1 %v5888_v1  ;;  %v8959_v35 = vld [vmem:[#allocation11 + $0x2ec] sm:$0xf0]  ;;  %v6483_v36 = vld [vmem:[#allocation11 + $0x3e0] sm:$0xf]  ;;  %v5953_v41 = vld [vmem:[#allocation8 + $0x50] sm:$0xf0]  ;;  %v6068_v42 = vor.u32 %v8887_v31, %v6067_v30 }
  0x4d   :  { %529 = vmatpush.bf16.msrb.mxu2 %v5960_v4  ;;  %v6356_v37 = vor.u32 %v8959_v35, %v6355_v34  ;;  %v8991_v38 = vld [vmem:[#allocation11 + $0x3ec] sm:$0xf0]  ;;  %v6051_v43 = vld [vmem:[#allocation11 + $0x80] sm:$0xf]  ;;  %v5956_v50 = vor.u32 %v8729_v40, %v5953_v41  ;;  %v8725_v51 = vld [vmem:[#allocation8 + $0x24] sm:$0xf] }
  0x4e   :  { %542 = vmatpush.bf16.msrb.mxu3 %v5964_v9  ;;  %v6484_v44 = vor.u32 %v8991_v38, %v6483_v36  ;;  %v6339_v45 = vld [vmem:[#allocation11 + $0x2c0] sm:$0xf]  ;;  %v8955_v46 = vld [vmem:[#allocation11 + $0x2cc] sm:$0xf0]  ;;  %v5937_v52 = vld [vmem:[#allocation8 + $0x30] sm:$0xf0] }
  0x4f   :  { %1459 = vmatpush.bf16.msrb.mxu0 %v6084_v29  ;;  %v8883_v47 = vld [vmem:[#allocation11 + $0x8c] sm:$0xf0]  ;;  %v6467_v48 = vld [vmem:[#allocation11 + $0x3c0] sm:$0xf]  ;;  %v6340_v53 = vor.u32 %v8955_v46, %v6339_v45  ;;  %v5940_v0 = vor.u32 %v8725_v51, %v5937_v52  ;;  %v8721_v1 = vld [vmem:[#allocation8 + $0x4] sm:$0xf] }
  0x50   :  { %357 = vmatpush.bf16.msrb.mxu1 %v5872_v13  ;;  %v8987_v49 = vld [vmem:[#allocation11 + $0x3cc] sm:$0xf0]  ;;  %v6052_v54 = vor.u32 %v8883_v47, %v6051_v43  ;;  %v6035_v55 = vld [vmem:[#allocation11 + $0x60] sm:$0xf]  ;;  %v5921_v2 = vld [vmem:[#allocation8 + $0x10] sm:$0xf0] }
  0x51   :  { %530 = vmatpush.bf16.msrb.mxu2 %v5944_v17  ;;  %v6468_v56 = vor.u32 %v8987_v49, %v6467_v48  ;;  %v6323_v58 = vld [vmem:[#allocation11 + $0x2a0] sm:$0xf]  ;;  %v8951_v59 = vld [vmem:[#allocation11 + $0x2ac] sm:$0xf0]  ;;  %v5924_v13 = vor.u32 %v8721_v1, %v5921_v2  ;;  %v8889_v46 = vld [vmem:[#allocation11 + $0xc4] sm:$0xf] }
  0x52   :  { %543 = vmatpush.bf16.msrb.mxu3 %v5948_v25  ;;  %v8879_v60 = vld [vmem:[#allocation11 + $0x6c] sm:$0xf0]  ;;  %v6451_v61 = vld [vmem:[#allocation11 + $0x3a0] sm:$0xf]  ;;  %v6324_v3 = vor.u32 %v8951_v59, %v6323_v58  ;;  %v8885_v59 = vld [vmem:[#allocation11 + $0xa4] sm:$0xf] }
  0x53   :  { %1460 = vmatpush.bf16.msrb.mxu0 %v6068_v42  ;;  %v8983_v62 = vld [vmem:[#allocation11 + $0x3ac] sm:$0xf0]  ;;  %v6036_v4 = vor.u32 %v8879_v60, %v6035_v55  ;;  %v6019_v5 = vld [vmem:[#allocation11 + $0x40] sm:$0xf]  ;;  %s5831_s5 = sshll.u32 %s9797_s21, 4  ;;  %s5833_s27 = sshll.u32 %s10283_s13, 4  ;;  %s5832_s5 = int_to_ptr.vmem [resolvable:$true] %s5831_s5  ;;  %s5834_s27 = int_to_ptr.hbm [resolvable:$true] %s5833_s27 }
  0x54   :  { %358 = vmatpush.bf16.msrb.mxu1 %v5856_v27  ;;  %v6307_v6 = vld [vmem:[#allocation11 + $0x280] sm:$0xf]  ;;  %v8947_v7 = vld [vmem:[#allocation11 + $0x28c] sm:$0xf0] }
  0x55   :  { %531 = vmatpush.bf16.msrb.mxu2 %v5928_v32  ;;  %v8875_v8 = vld [vmem:[#allocation11 + $0x4c] sm:$0xf0]  ;;  %v6227_v9 = vld [vmem:[#allocation11 + $0x1e0] sm:$0xf]  ;;  %v6308_v14 = vor.u32 %v8947_v7, %v6307_v6  ;;  %v6053_v6 = vld [vmem:[#allocation11 + $0x90] sm:$0xf0] }
  0x56   :  { %544 = vmatpush.bf16.msrb.mxu3 %v5932_v39  ;;  %v8927_v10 = vld [vmem:[#allocation11 + $0x1ec] sm:$0xf0]  ;;  %v6435_v11 = vld [vmem:[#allocation11 + $0x380] sm:$0xf]  ;;  %v6020_v15 = vor.u32 %v8875_v8, %v6019_v5  ;;  %v8877_v8 = vld [vmem:[#allocation11 + $0x64] sm:$0xf] }
  0x57   :  { %5914 = vmatmul.msk.bf16.vlgmr.msrb.gmra.mxu1 %vm334_vm0, %v9925_v57  ;;  %1461 = vmatpush.bf16.msrb.mxu0 %v6052_v54  ;;  %v6452_v57 = vor.u32 %v8983_v62, %v6451_v61  ;;  %v8979_v12 = vld [vmem:[#allocation11 + $0x38c] sm:$0xf0]  ;;  %v6003_v16 = vld [vmem:[#allocation11 + $0x20] sm:$0xf]  ;;  %v6228_v17 = vor.u32 %v8927_v10, %v6227_v9  ;;  %v6069_v62 = vld [vmem:[#allocation11 + $0xb0] sm:$0xf0] }
  0x58   :  { %515 = vmatpush.bf16.msra.mxu1 %v5972_v33  ;;  %5983 = vmatmul.msk.bf16.vlgmr.msrb.gmra.mxu2 %vm334_vm0, %v9927_v63  ;;  %v6291_v18 = vld [vmem:[#allocation11 + $0x260] sm:$0xf]  ;;  %v8943_v19 = vld [vmem:[#allocation11 + $0x26c] sm:$0xf0]  ;;  %v6436_v21 = vor.u32 %v8979_v12, %v6435_v11  ;;  %v8893_v33 = vld [vmem:[#allocation11 + $0xe4] sm:$0xf] }
  0x59   :  { %1484 = vmatpush.bf16.msra.mxu2 %v6356_v37  ;;  %5984 = vmatmul.msk.bf16.vlgmr.msrb.gmra.mxu3 %vm334_vm0, %v9927_v63  ;;  %v8871_v20 = vld [vmem:[#allocation11 + $0x2c] sm:$0xf0]  ;;  %v6211_v22 = vld [vmem:[#allocation11 + $0x1c0] sm:$0xf]  ;;  %v6292_v28 = vor.u32 %v8943_v19, %v6291_v18  ;;  %v6101_v37 = vld [vmem:[#allocation11 + $0xf0] sm:$0xf0] }
  0x5a   :  { %1497 = vmatpush.bf16.msra.mxu3 %v6484_v44  ;;  %v8923_v23 = vld [vmem:[#allocation11 + $0x1cc] sm:$0xf0]  ;;  %v6419_v24 = vld [vmem:[#allocation11 + $0x360] sm:$0xf]  ;;  %v6004_v29 = vor.u32 %v8871_v20, %v6003_v16  ;;  %v6104_v45 = vor.u32 %v8893_v33, %v6101_v37  ;;  %v6037_v9 = vld [vmem:[#allocation11 + $0x70] sm:$0xf0] }
  0x5b   :  { %1462 = vmatpush.bf16.msrb.mxu0 %v6036_v4  ;;  %v8975_v25 = vld [vmem:[#allocation11 + $0x36c] sm:$0xf0]  ;;  %v5987_v26 = vld [vmem:[#allocation11] sm:$0xf]  ;;  %v6212_v30 = vor.u32 %v8923_v23, %v6211_v22  ;;  %v6072_v4 = vor.u32 %v8885_v59, %v6069_v62  ;;  %v6040_v10 = vor.u32 %v8877_v8, %v6037_v9  ;;  %v8873_v11 = vld [vmem:[#allocation11 + $0x44] sm:$0xf] }
  0x5c   :  { %516 = vmatpush.bf16.msra.mxu1 %v5956_v50  ;;  %v8867_v27 = vld [vmem:[#allocation11 + $0xc] sm:$0xf0]  ;;  %v6275_v31 = vld [vmem:[#allocation11 + $0x240] sm:$0xf]  ;;  %v6420_v34 = vor.u32 %v8975_v25, %v6419_v24  ;;  %v6085_v50 = vld [vmem:[#allocation11 + $0xd0] sm:$0xf0] }
  0x5d   :  { %1485 = vmatpush.bf16.msra.mxu2 %v6340_v53  ;;  %v8939_v32 = vld [vmem:[#allocation11 + $0x24c] sm:$0xf0]  ;;  %v6195_v35 = vld [vmem:[#allocation11 + $0x1a0] sm:$0xf]  ;;  %v5988_v41 = vor.u32 %v8867_v27, %v5987_v26  ;;  %v6088_v58 = vor.u32 %v8889_v46, %v6085_v50  ;;  %v6021_v12 = vld [vmem:[#allocation11 + $0x50] sm:$0xf0] }
  0x5e   :  { %1498 = vmatpush.bf16.msra.mxu3 %v6468_v56  ;;  %v8919_v36 = vld [vmem:[#allocation11 + $0x1ac] sm:$0xf0]  ;;  %v6403_v38 = vld [vmem:[#allocation11 + $0x340] sm:$0xf]  ;;  %v6276_v40 = vor.u32 %v8939_v32, %v6275_v31  ;;  %v8989_v16 = vld [vmem:[#allocation11 + $0x3e4] sm:$0xf] }
  0x5f   :  { %1463 = vmatpush.bf16.msrb.mxu0 %v6020_v15  ;;  %v8971_v39 = vld [vmem:[#allocation11 + $0x34c] sm:$0xf0]  ;;  %v6196_v42 = vor.u32 %v8919_v36, %v6195_v35  ;;  %v6259_v43 = vld [vmem:[#allocation11 + $0x220] sm:$0xf]  ;;  %v6357_v15 = vld [vmem:[#allocation11 + $0x2f0] sm:$0xf0] }
  0x60   :  { %517 = vmatpush.bf16.msra.mxu1 %v5940_v0  ;;  %v8935_v44 = vld [vmem:[#allocation11 + $0x22c] sm:$0xf0]  ;;  %v6404_v47 = vor.u32 %v8971_v39, %v6403_v38  ;;  %v6179_v48 = vld [vmem:[#allocation11 + $0x180] sm:$0xf]  ;;  %v6485_v18 = vld [vmem:[#allocation11 + $0x3f0] sm:$0xf0] }
  0x61   :  { %1486 = vmatpush.bf16.msra.mxu2 %v6324_v3  ;;  %v8915_v49 = vld [vmem:[#allocation11 + $0x18c] sm:$0xf0]  ;;  %v6387_v51 = vld [vmem:[#allocation11 + $0x320] sm:$0xf]  ;;  %v6260_v53 = vor.u32 %v8935_v44, %v6259_v43  ;;  %v8869_v23 = vld [vmem:[#allocation11 + $0x24] sm:$0xf] }
  0x62   :  { %1499 = vmatpush.bf16.msra.mxu3 %v6452_v57  ;;  %v8967_v52 = vld [vmem:[#allocation11 + $0x32c] sm:$0xf0]  ;;  %v6180_v54 = vor.u32 %v8915_v49, %v6179_v48  ;;  %v6243_v55 = vld [vmem:[#allocation11 + $0x200] sm:$0xf]  ;;  %v8881_v57 = vld [vmem:[#allocation11 + $0x84] sm:$0xf] }
  0x63   :  { %1464 = vmatpush.bf16.msrb.mxu0 %v6004_v29  ;;  %v8931_v56 = vld [vmem:[#allocation11 + $0x20c] sm:$0xf0]  ;;  %v6163_v60 = vld [vmem:[#allocation11 + $0x160] sm:$0xf]  ;;  %v6056_v7 = vor.u32 %v8881_v57, %v6053_v6  ;;  %v6005_v24 = vld [vmem:[#allocation11 + $0x30] sm:$0xf0] }
  0x64   :  { %518 = vmatpush.bf16.msra.mxu1 %v5924_v13  ;;  %v8911_v61 = vld [vmem:[#allocation11 + $0x16c] sm:$0xf0]  ;;  %v6371_v0 = vld [vmem:[#allocation11 + $0x300] sm:$0xf]  ;;  %v6244_v2 = vor.u32 %v8931_v56, %v6243_v55  ;;  %v6024_v13 = vor.u32 %v8873_v11, %v6021_v12  ;;  %v6008_v25 = vor.u32 %v8869_v23, %v6005_v24  ;;  %v8953_v26 = vld [vmem:[#allocation11 + $0x2c4] sm:$0xf] }
  0x65   :  { %1487 = vmatpush.bf16.msra.mxu2 %v6308_v14  ;;  %v8963_v1 = vld [vmem:[#allocation11 + $0x30c] sm:$0xf0]  ;;  %v6164_v3 = vor.u32 %v8911_v61, %v6163_v60  ;;  %v8957_v14 = vld [vmem:[#allocation11 + $0x2e4] sm:$0xf]  ;;  %v6147_v19 = vld [vmem:[#allocation11 + $0x140] sm:$0xf] }
  0x66   :  { %1500 = vmatpush.bf16.msra.mxu3 %v6436_v21  ;;  %v6372_v5 = vor.u32 %v8963_v1, %v6371_v0  ;;  %v8907_v20 = vld [vmem:[#allocation11 + $0x14c] sm:$0xf0]  ;;  %v6488_v21 = vor.u32 %v8989_v16, %v6485_v18  ;;  %v6341_v27 = vld [vmem:[#allocation11 + $0x2d0] sm:$0xf0]  ;;  %v6131_v31 = vld [vmem:[#allocation11 + $0x120] sm:$0xf] }
  0x67   :  { %5982 = vmatmul.msk.bf16.vlgmr.msra.gmra.mxu1 %vm334_vm0, %v9927_v63  ;;  %1465 = vmatpush.bf16.msrb.mxu0 %v5988_v41  ;;  %v6388_v63 = vor.u32 %v8967_v52, %v6387_v51  ;;  %v6148_v22 = vor.u32 %v8907_v20, %v6147_v19  ;;  %v6344_v29 = vor.u32 %v8953_v26, %v6341_v27  ;;  %v8903_v32 = vld [vmem:[#allocation11 + $0x12c] sm:$0xf0]  ;;  %v8865_v35 = vld [vmem:[#allocation11 + $0x4] sm:$0xf]  ;;  %v5989_v36 = vld [vmem:[#allocation11 + $0x10] sm:$0xf0] }
  0x68   :  { %1471 = vmatpush.bf16.msrb.mxu1 %v6228_v17  ;;  %v6360_v17 = vor.u32 %v8957_v14, %v6357_v15  ;;  %v5992_v37 = vor.u32 %v8865_v35, %v5989_v36  ;;  %v8949_v38 = vld [vmem:[#allocation11 + $0x2a4] sm:$0xf]  ;;  %v6325_v39 = vld [vmem:[#allocation11 + $0x2b0] sm:$0xf0]  ;;  %v6115_v43 = vld [vmem:[#allocation11 + $0x100] sm:$0xf] }
  0x69   :  { %1488 = vmatpush.bf16.msra.mxu2 %v6292_v28  ;;  %v8985_v28 = vld [vmem:[#allocation11 + $0x3c4] sm:$0xf]  ;;  %v6309_v51 = vld [vmem:[#allocation11 + $0x290] sm:$0xf0] }
  0x6a   :  { %1501 = vmatpush.bf16.msra.mxu3 %v6420_v34  ;;  %v6132_v34 = vor.u32 %v8903_v32, %v6131_v31  ;;  %v8981_v41 = vld [vmem:[#allocation11 + $0x3a4] sm:$0xf]  ;;  %v6293_v60 = vld [vmem:[#allocation11 + $0x270] sm:$0xf0] }
  0x6b   :  { %1510 = vmatpush.bf16.msra.mxu0 %v6104_v45  ;;  %v8899_v45 = vld [vmem:[#allocation11 + $0x10c] sm:$0xf0]  ;;  %v8925_v46 = vld [vmem:[#allocation11 + $0x1e4] sm:$0xf]  ;;  %v6421_v0 = vld [vmem:[#allocation11 + $0x370] sm:$0xf0] }
  0x6c   :  { %1472 = vmatpush.bf16.msrb.mxu1 %v6212_v30  ;;  %v6469_v30 = vld [vmem:[#allocation11 + $0x3d0] sm:$0xf0]  ;;  %v6116_v48 = vor.u32 %v8899_v45, %v6115_v43  ;;  %v8945_v50 = vld [vmem:[#allocation11 + $0x284] sm:$0xf] }
  0x6d   :  { %1489 = vmatpush.bf16.msra.mxu2 %v6276_v40  ;;  %v6472_v33 = vor.u32 %v8985_v28, %v6469_v30  ;;  %v6328_v40 = vor.u32 %v8949_v38, %v6325_v39  ;;  %v6312_v52 = vor.u32 %v8945_v50, %v6309_v51  ;;  %v8921_v56 = vld [vmem:[#allocation11 + $0x1c4] sm:$0xf]  ;;  %v6277_v57 = vld [vmem:[#allocation11 + $0x250] sm:$0xf0]  ;;  %v8896_v38 = vld [vmem:[#allocation11 + $0xf4] sm:$0xf0] }
  0x6e   :  { %1502 = vmatpush.bf16.msra.mxu3 %v6404_v47  ;;  %v6229_v47 = vld [vmem:[#allocation11 + $0x1f0] sm:$0xf0]  ;;  %v8973_v61 = vld [vmem:[#allocation11 + $0x364] sm:$0xf] }
  0x6f   :  { %1511 = vmatpush.bf16.msra.mxu0 %v6088_v58  ;;  %v6232_v49 = vor.u32 %v8925_v46, %v6229_v47  ;;  %v6213_v58 = vld [vmem:[#allocation11 + $0x1d0] sm:$0xf0]  ;;  %v6424_v1 = vor.u32 %v8973_v61, %v6421_v0  ;;  %v8969_v6 = vld [vmem:[#allocation11 + $0x344] sm:$0xf]  ;;  %v6091_v47 = vld [vmem:[#allocation11 + $0xc8] sm:$0xf] }
  0x70   :  { %1473 = vmatpush.bf16.msrb.mxu1 %v6196_v42  ;;  %v6453_v42 = vld [vmem:[#allocation11 + $0x3b0] sm:$0xf0]  ;;  %v6216_v59 = vor.u32 %v8921_v56, %v6213_v58  ;;  %v8965_v16 = vld [vmem:[#allocation11 + $0x324] sm:$0xf] }
  0x71   :  { %1490 = vmatpush.bf16.msra.mxu2 %v6260_v53  ;;  %v6456_v44 = vor.u32 %v8981_v41, %v6453_v42  ;;  %v8977_v53 = vld [vmem:[#allocation11 + $0x384] sm:$0xf]  ;;  %v6405_v8 = vld [vmem:[#allocation11 + $0x350] sm:$0xf0] }
  0x72   :  { %1503 = vmatpush.bf16.msra.mxu3 %v6388_v63  ;;  %v8941_v63 = vld [vmem:[#allocation11 + $0x264] sm:$0xf]  ;;  %v6408_v9 = vor.u32 %v8969_v6, %v6405_v8  ;;  %v6181_v11 = vld [vmem:[#allocation11 + $0x190] sm:$0xf0]  ;;  %v6027_v8 = vld [vmem:[#allocation11 + $0x48] sm:$0xf] }
  0x73   :  { %1512 = vmatpush.bf16.msra.mxu0 %v6072_v4  ;;  %v6296_v62 = vor.u32 %v8941_v63, %v6293_v60  ;;  %v6261_v14 = vld [vmem:[#allocation11 + $0x230] sm:$0xf0]  ;;  %v8909_v19 = vld [vmem:[#allocation11 + $0x164] sm:$0xf]  ;;  %v6059_v63 = vld [vmem:[#allocation11 + $0x88] sm:$0xf] }
  0x74   :  { %1474 = vmatpush.bf16.msrb.mxu1 %v6180_v54  ;;  %v6437_v54 = vld [vmem:[#allocation11 + $0x390] sm:$0xf0]  ;;  %v8929_v23 = vld [vmem:[#allocation11 + $0x204] sm:$0xf]  ;;  %v8884_v60 = vld [vmem:[#allocation11 + $0x94] sm:$0xf0] }
  0x75   :  { %1491 = vmatpush.bf16.msra.mxu2 %v6244_v2  ;;  %v6440_v55 = vor.u32 %v8977_v53, %v6437_v54  ;;  %v8917_v2 = vld [vmem:[#allocation11 + $0x1a4] sm:$0xf]  ;;  %v6165_v20 = vld [vmem:[#allocation11 + $0x170] sm:$0xf0]  ;;  %v6075_v54 = vld [vmem:[#allocation11 + $0xa8] sm:$0xf]  ;;  %v6060_v0 = vor.u32 %v8884_v60, %v6059_v63 }
  0x76   :  { %1504 = vmatpush.bf16.msra.mxu3 %v6372_v5  ;;  %v8937_v5 = vld [vmem:[#allocation11 + $0x244] sm:$0xf]  ;;  %v6245_v24 = vld [vmem:[#allocation11 + $0x210] sm:$0xf0]  ;;  %v6093_v60 = vld [vmem:[#allocation11 + $0xd8] sm:$0xf0] }
  0x77   :  { %1513 = vmatpush.bf16.msra.mxu0 %v6056_v7  ;;  %v6280_v7 = vor.u32 %v8937_v5, %v6277_v57  ;;  %v6248_v26 = vor.u32 %v8929_v23, %v6245_v24  ;;  %v6373_v27 = vld [vmem:[#allocation11 + $0x310] sm:$0xf0]  ;;  %v8901_v35 = vld [vmem:[#allocation11 + $0x124] sm:$0xf]  ;;  %v8872_v23 = vld [vmem:[#allocation11 + $0x34] sm:$0xf0] }
  0x78   :  { %1475 = vmatpush.bf16.msrb.mxu1 %v6164_v3  ;;  %v6197_v3 = vld [vmem:[#allocation11 + $0x1b0] sm:$0xf0]  ;;  %v8897_v43 = vld [vmem:[#allocation11 + $0x104] sm:$0xf]  ;;  %v9966_v24 = vld [vmem:[#allocation19 + $0x8] sm:$0xff] }
  0x79   :  { %1536 = vmatpush.bf16.msrb.mxu2 %v6360_v17  ;;  %v6200_v4 = vor.u32 %v8917_v2, %v6197_v3  ;;  %v6389_v17 = vld [vmem:[#allocation11 + $0x330] sm:$0xf0]  ;;  %v6043_v2 = vld [vmem:[#allocation11 + $0x68] sm:$0xf]  ;;  %v8880_v3 = vld [vmem:[#allocation11 + $0x74] sm:$0xf0] }
  0x7a   :  { %1549 = vmatpush.bf16.msrb.mxu3 %v6488_v21  ;;  %v6392_v18 = vor.u32 %v8965_v16, %v6389_v17  ;;  %v9945_v21 = vld [vmem:[#allocation19] sm:$0xff]  ;;  %v6149_v31 = vld [vmem:[#allocation11 + $0x150] sm:$0xf0]  ;;  %v6044_v57 = vor.u32 %v8880_v3, %v6043_v2  ;;  %v8992_v16 = vld [vmem:[#allocation11 + $0x3f4] sm:$0xf0] }
  0x7b   :  { %1514 = vmatpush.bf16.msra.mxu0 %v6040_v10  ;;  %v8913_v10 = vld [vmem:[#allocation11 + $0x184] sm:$0xf]  ;;  %v411_v30 = vperm.slane %v9945_v21, 1  ;;  %v6133_v39 = vld [vmem:[#allocation11 + $0x130] sm:$0xf0] }
  0x7c   :  { %1476 = vmatpush.bf16.msrb.mxu1 %v6148_v22  ;;  %v6184_v12 = vor.u32 %v8913_v10, %v6181_v11  ;;  %v6168_v22 = vor.u32 %v8909_v19, %v6165_v20  ;;  %v8948_v2 = vld [vmem:[#allocation11 + $0x294] sm:$0xf0] }
  0x7d   :  { %1537 = vmatpush.bf16.msrb.mxu2 %v6344_v29  ;;  %v8905_v29 = vld [vmem:[#allocation11 + $0x144] sm:$0xf] }
  0x7e   :  { %1550 = vmatpush.bf16.msrb.mxu3 %v6472_v33  ;;  %v6152_v33 = vor.u32 %v8905_v29, %v6149_v31  ;;  %v8956_v29 = vld [vmem:[#allocation11 + $0x2d4] sm:$0xf0]  ;;  %v6475_v31 = vld [vmem:[#allocation11 + $0x3c8] sm:$0xf] }
  0x7f   :  { %1515 = vmatpush.bf16.msra.mxu0 %v6024_v13  ;;  %v8933_v13 = vld [vmem:[#allocation11 + $0x224] sm:$0xf] }
  0x80   :  { %1477 = vmatpush.bf16.msrb.mxu1 %v6132_v34  ;;  %v6264_v15 = vor.u32 %v8933_v13, %v6261_v14  ;;  %v6363_v13 = vld [vmem:[#allocation11 + $0x2e8] sm:$0xf]  ;;  %v8960_v14 = vld [vmem:[#allocation11 + $0x2f4] sm:$0xf0] }
  0x81   :  { %1538 = vmatpush.bf16.msrb.mxu2 %v6328_v40  ;;  %v6136_v40 = vor.u32 %v8901_v35, %v6133_v39  ;;  %v6364_v20 = vor.u32 %v8960_v14, %v6363_v13  ;;  %v8868_v39 = vld [vmem:[#allocation11 + $0x14] sm:$0xf0]  ;;  %v6077_v13 = vld [vmem:[#allocation11 + $0xb8] sm:$0xf0]  ;;  %v6299_v14 = vld [vmem:[#allocation11 + $0x268] sm:$0xf] }
  0x82   :  { %1551 = vmatpush.bf16.msrb.mxu3 %v6456_v44 }
  0x83   :  { %1516 = vmatpush.bf16.msra.mxu0 %v6008_v25  ;;  %v8961_v25 = vld [vmem:[#allocation11 + $0x304] sm:$0xf] }
  0x84   :  { %1478 = vmatpush.bf16.msrb.mxu1 %v6116_v48  ;;  %v6376_v28 = vor.u32 %v8961_v25, %v6373_v27  ;;  %v8892_v48 = vld [vmem:[#allocation11 + $0xd4] sm:$0xf0] }
  0x85   :  { %1539 = vmatpush.bf16.msrb.mxu2 %v6312_v52  ;;  %v6092_v52 = vor.u32 %v8892_v48, %v6091_v47  ;;  %v6331_v47 = vld [vmem:[#allocation11 + $0x2a8] sm:$0xf]  ;;  %v8952_v48 = vld [vmem:[#allocation11 + $0x2b4] sm:$0xf0] }
  0x86   :  { %1552 = vmatpush.bf16.msrb.mxu3 %v6440_v55  ;;  %v8888_v55 = vld [vmem:[#allocation11 + $0xb4] sm:$0xf0] }
  0x87   :  { %1517 = vmatpush.bf16.msra.mxu0 %v5992_v37  ;;  %v6107_v37 = vld [vmem:[#allocation11 + $0xe8] sm:$0xf]  ;;  %v6076_v56 = vor.u32 %v8888_v55, %v6075_v54  ;;  %v8928_v54 = vld [vmem:[#allocation11 + $0x1f4] sm:$0xf0] }
  0x88   :  { %1523 = vmatpush.bf16.msra.mxu1 %v6232_v49  ;;  %v6108_v42 = vor.u32 %v8896_v38, %v6107_v37  ;;  %v6117_v49 = vld [vmem:[#allocation11 + $0x110] sm:$0xf0]  ;;  %v5995_v38 = vld [vmem:[#allocation11 + $0x8] sm:$0xf] }
  0x89   :  { %1540 = vmatpush.bf16.msrb.mxu2 %v6296_v62  ;;  %v6120_v51 = vor.u32 %v8897_v43, %v6117_v49  ;;  %v9959_v62 = vld [vmem:[#allocation19 + $0x10] sm:$0xff]  ;;  %v6109_v43 = vld [vmem:[#allocation11 + $0xf8] sm:$0xf0] }
  0x8a   :  { %1553 = vmatpush.bf16.msrb.mxu3 %v6424_v1  ;;  %v9961_v1 = vld [vmem:[#allocation19 + $0x18] sm:$0xff] }
  0x8b   :  { %v414_v5 = vperm.slane %v9961_v1, 1 }
  0x8c   :  { %1524 = vmatpush.bf16.msra.mxu1 %v6216_v59 }
  0x8d   :  { %1541 = vmatpush.bf16.msrb.mxu2 %v6280_v7 }
  0x8e   :  { %1554 = vmatpush.bf16.msrb.mxu3 %v6408_v9  ;;  %v8876_v9 = vld [vmem:[#allocation11 + $0x54] sm:$0xf0] }
  0x8f   :  { %v6028_v19 = vor.u32 %v8876_v9, %v6027_v8 }
  0x90   :  { %1525 = vmatpush.bf16.msra.mxu1 %v6200_v4  ;;  %v413_v4 = vperm.slane %v9959_v62, 1 }
  0x91   :  { %1542 = vmatpush.bf16.msrb.mxu2 %v6264_v15  ;;  %v6491_v15 = vld [vmem:[#allocation11 + $0x3e8] sm:$0xf] }
  0x92   :  { %1555 = vmatpush.bf16.msrb.mxu3 %v6392_v18  ;;  %v6492_v27 = vor.u32 %v8992_v16, %v6491_v15  ;;  %v8944_v16 = vld [vmem:[#allocation11 + $0x274] sm:$0xf0] }
  0x94   :  { %1526 = vmatpush.bf16.msra.mxu1 %v6184_v12 }
  0x95   :  { %1543 = vmatpush.bf16.msrb.mxu2 %v6248_v26 }
  0x96   :  { %1556 = vmatpush.bf16.msrb.mxu3 %v6376_v28  ;;  %v6347_v28 = vld [vmem:[#allocation11 + $0x2c8] sm:$0xf] }
  0x97   :  { %v6348_v37 = vor.u32 %v8956_v29, %v6347_v28  ;;  %v8882_v28 = vld [vmem:[#allocation11 + $0x8c] sm:$0xf]  ;;  %v6061_v29 = vld [vmem:[#allocation11 + $0x98] sm:$0xf0] }
  0x98   :  { %1527 = vmatpush.bf16.msra.mxu1 %v6168_v22  ;;  %v6011_v22 = vld [vmem:[#allocation11 + $0x28] sm:$0xf] }
  0x9c   :  { %1528 = vmatpush.bf16.msra.mxu1 %v6152_v33  ;;  %v8988_v33 = vld [vmem:[#allocation11 + $0x3d4] sm:$0xf0] }
  0xa0   :  { %1529 = vmatpush.bf16.msra.mxu1 %v6136_v40  ;;  %v8894_v40 = vld [vmem:[#allocation11 + $0xec] sm:$0xf] }
  0xa4   :  { %1530 = vmatpush.bf16.msra.mxu1 %v6120_v51  ;;  %v8984_v51 = vld [vmem:[#allocation11 + $0x3b4] sm:$0xf0] }
  0xc4   :  { %v9948_v32 = vpop.f32.mrf.mxu1 }
  0xc7   :  { %v507_v34 = vpop.f32.mrf.mxu0 }
  0xc8   :  { %v508_v36 = vadd.f32 %v507_v34, %v411_v30  ;;  %v412_v30 = vperm.slane %v9966_v24, 1  ;;  %v6012_v34 = vor.u32 %v8872_v23, %v6011_v22  ;;  %v6300_v23 = vor.u32 %v8944_v16, %v6299_v14  ;;  %v8954_v16 = vld [vmem:[#allocation11 + $0x2cc] sm:$0xf] }
  0xca   :  { %v550_v41 = vmax.f32 %v508_v36, 0.0 }
  0xcb   :  { %v9952_v45 = vpop.f32.mrf.mxu2 }
  0xcc   :  { %v9950_v44 = vpack.c.bf16 %v550_v41, %v550_v41  ;;  %v9954_v46 = vpop.f32.mrf.mxu3  ;;  %v349_v50 = vpop.f32.mrf.mxu1 }
  0xcd   :  { %v6459_v50 = vld [vmem:[#allocation11 + $0x3a8] sm:$0xf] }
  0xce   :  { %1466 = vmatmul.bf16.vlgmr.msrb.gmra.mxu0 %v9950_v44  ;;  %v6460_v63 = vor.u32 %v8984_v51, %v6459_v50  ;;  %v8968_v50 = vld [vmem:[#allocation11 + $0x334] sm:$0xf0] }
  0xcf   :  { %1562 = vmatpush.bf16.msrb.mxu0 %v6108_v42  ;;  %v509_v53 = vpop.f32.mrf.mxu0  ;;  %v6476_v42 = vor.u32 %v8988_v33, %v6475_v31  ;;  %v8940_v33 = vld [vmem:[#allocation11 + $0x254] sm:$0xf0] }
  0xd0   :  { %v6235_v53 = vld [vmem:[#allocation11 + $0x1e8] sm:$0xf] }
  0xd3   :  { %1563 = vmatpush.bf16.msrb.mxu0 %v6092_v52  ;;  %v375_v58 = vpop.f32.mrf.mxu2  ;;  %v5996_v52 = vor.u32 %v8868_v39, %v5995_v38  ;;  %v6064_v38 = vor.u32 %v8882_v28, %v6061_v29  ;;  %v8866_v28 = vld [vmem:[#allocation11 + $0xc] sm:$0xf]  ;;  %v5997_v29 = vld [vmem:[#allocation11 + $0x18] sm:$0xf0] }
  0xd4   :  { %v388_v59 = vpop.f32.mrf.mxu3  ;;  %v9957_v61 = vpop.f32.mrf.mxu1  ;;  %v6332_v58 = vor.u32 %v8952_v48, %v6331_v47  ;;  %v8936_v48 = vld [vmem:[#allocation11 + $0x234] sm:$0xf0] }
  0xd5   :  { %v8890_v59 = vld [vmem:[#allocation11 + $0xcc] sm:$0xf] }
  0xd6   :  { %v6096_v8 = vor.u32 %v8890_v59, %v6093_v60  ;;  %v6251_v59 = vld [vmem:[#allocation11 + $0x208] sm:$0xf] }
  0xd7   :  { %1564 = vmatpush.bf16.msrb.mxu0 %v6076_v56  ;;  %v6112_v56 = vor.u32 %v8894_v40, %v6109_v43  ;;  %v6267_v43 = vld [vmem:[#allocation11 + $0x228] sm:$0xf] }
  0xd8   :  { %v6379_v60 = vld [vmem:[#allocation11 + $0x308] sm:$0xf] }
  0xdb   :  { %1565 = vmatpush.bf16.msrb.mxu0 %v6060_v0  ;;  %v533_v6 = vpop.f32.mrf.mxu2  ;;  %v6315_v0 = vld [vmem:[#allocation11 + $0x288] sm:$0xf] }
  0xdc   :  { %v546_v7 = vpop.f32.mrf.mxu3  ;;  %v534_v10 = vadd.f32 %v533_v6, %v413_v4  ;;  %v362_v12 = vpop.f32.mrf.mxu1  ;;  %v6236_v4 = vor.u32 %v8928_v54, %v6235_v53  ;;  %v6219_v6 = vld [vmem:[#allocation11 + $0x1c8] sm:$0xf]  ;;  %v6316_v9 = vor.u32 %v8948_v2, %v6315_v0  ;;  %v8912_v53 = vld [vmem:[#allocation11 + $0x174] sm:$0xf0]  ;;  %v8874_v54 = vld [vmem:[#allocation11 + $0x4c] sm:$0xf] }
  0xdd   :  { %v547_v11 = vadd.f32 %v546_v7, %v414_v5  ;;  %v6443_v5 = vld [vmem:[#allocation11 + $0x388] sm:$0xf]  ;;  %v8924_v7 = vld [vmem:[#allocation11 + $0x1d4] sm:$0xf0]  ;;  %v8886_v12 = vld [vmem:[#allocation11 + $0xac] sm:$0xf] }
  0xde   :  { %1518 = vmatmul.bf16.vlgmr.msra.gmra.mxu0 %v9950_v44  ;;  %v552_v17 = vmax.f32 %v534_v10, 0.0  ;;  %v6220_v15 = vor.u32 %v8924_v7, %v6219_v6  ;;  %v6080_v22 = vor.u32 %v8886_v12, %v6077_v13  ;;  %v8964_v0 = vld [vmem:[#allocation11 + $0x314] sm:$0xf0]  ;;  %v8958_v2 = vld [vmem:[#allocation11 + $0x2ec] sm:$0xf] }
  0xdf   :  { %v553_v18 = vmax.f32 %v547_v11, 0.0  ;;  %1566 = vmatpush.bf16.msrb.mxu0 %v6044_v57  ;;  %v8980_v57 = vld [vmem:[#allocation11 + $0x394] sm:$0xf0]  ;;  %v6493_v6 = vld [vmem:[#allocation11 + $0x3f8] sm:$0xf0] }
  0xe0   :  { %v9968_v25 = vpack.c.bf16 %v552_v17, %v552_v17  ;;  %v6444_v11 = vor.u32 %v8980_v57, %v6443_v5  ;;  %v6427_v17 = vld [vmem:[#allocation11 + $0x368] sm:$0xf]  ;;  %v6365_v5 = vld [vmem:[#allocation11 + $0x2f8] sm:$0xf0]  ;;  %v8990_v57 = vld [vmem:[#allocation11 + $0x3ec] sm:$0xf] }
  0xe1   :  { %v9970_v26 = vpack.c.bf16 %v553_v18, %v553_v18  ;;  %v8976_v18 = vld [vmem:[#allocation11 + $0x374] sm:$0xf0]  ;;  %v8870_v12 = vld [vmem:[#allocation11 + $0x2c] sm:$0xf]  ;;  %v6013_v13 = vld [vmem:[#allocation11 + $0x38] sm:$0xf0]  ;;  %v6368_v14 = vor.u32 %v8958_v2, %v6365_v5 }
  0xe2   :  { %1492 = vmatmul.bf16.vlgmr.msra.gmra.mxu2 %v9968_v25  ;;  %v6579_v5 = vld [vmem:[#allocation10 + $0xa0] sm:$0xf] }
  0xe3   :  { %1567 = vmatpush.bf16.msrb.mxu0 %v6028_v19  ;;  %1505 = vmatmul.bf16.vlgmr.msra.gmra.mxu3 %v9970_v26  ;;  %v535_v35 = vpop.f32.mrf.mxu2  ;;  %v6203_v19 = vld [vmem:[#allocation11 + $0x1a8] sm:$0xf] }
  0xe4   :  { %1588 = vmatpush.bf16.msra.mxu2 %v6364_v20  ;;  %v548_v36 = vpop.f32.mrf.mxu3  ;;  %1601 = vmatpush.bf16.msra.mxu3 %v6492_v27  ;;  %v520_v41 = vpop.f32.mrf.mxu1  ;;  %v8920_v20 = vld [vmem:[#allocation11 + $0x1b4] sm:$0xf0]  ;;  %v6428_v27 = vor.u32 %v8976_v18, %v6427_v17  ;;  %v6349_v18 = vld [vmem:[#allocation11 + $0x2d8] sm:$0xf0] }
  0xe5   :  { %v521_v49 = vadd.f32 %v520_v41, %v412_v30  ;;  %v6283_v30 = vld [vmem:[#allocation11 + $0x248] sm:$0xf]  ;;  %v6204_v31 = vor.u32 %v8920_v20, %v6203_v19  ;;  %v8972_v35 = vld [vmem:[#allocation11 + $0x354] sm:$0xf0]  ;;  %v8878_v41 = vld [vmem:[#allocation11 + $0x6c] sm:$0xf] }
  0xe6   :  { %v6187_v36 = vld [vmem:[#allocation11 + $0x188] sm:$0xf]  ;;  %v6284_v39 = vor.u32 %v8940_v33, %v6283_v30  ;;  %v8986_v19 = vld [vmem:[#allocation11 + $0x3cc] sm:$0xf]  ;;  %v6477_v20 = vld [vmem:[#allocation11 + $0x3d8] sm:$0xf0]  ;;  %v6352_v30 = vor.u32 %v8954_v16, %v6349_v18 }
  0xe7   :  { %1568 = vmatpush.bf16.msrb.mxu0 %v6012_v34  ;;  %v551_v55 = vmax.f32 %v521_v49, 0.0  ;;  %v6411_v34 = vld [vmem:[#allocation11 + $0x348] sm:$0xf]  ;;  %v6611_v33 = vld [vmem:[#allocation10 + $0xe0] sm:$0xf] }
  0xe8   :  { %1589 = vmatpush.bf16.msra.mxu2 %v6348_v37  ;;  %1602 = vmatpush.bf16.msra.mxu3 %v6476_v42  ;;  %v8916_v37 = vld [vmem:[#allocation11 + $0x194] sm:$0xf0]  ;;  %v6412_v40 = vor.u32 %v8972_v35, %v6411_v34  ;;  %v6045_v42 = vld [vmem:[#allocation11 + $0x78] sm:$0xf0]  ;;  %v6395_v49 = vld [vmem:[#allocation11 + $0x328] sm:$0xf] }
  0xe9   :  { %v9975_v3 = vpack.c.bf16 %v551_v55, %v551_v55  ;;  %v6188_v47 = vor.u32 %v8916_v37, %v6187_v36  ;;  %v6048_v51 = vor.u32 %v8878_v41, %v6045_v42  ;;  %v6268_v55 = vor.u32 %v8936_v48, %v6267_v43  ;;  %v8767_v34 = vld [vmem:[#allocation10 + $0xec] sm:$0xf0]  ;;  %v8950_v35 = vld [vmem:[#allocation11 + $0x2ac] sm:$0xf]  ;;  %v6333_v37 = vld [vmem:[#allocation11 + $0x2b8] sm:$0xf0] }
  0xea   :  { %v6123_v41 = vld [vmem:[#allocation11 + $0x108] sm:$0xf]  ;;  %v8900_v42 = vld [vmem:[#allocation11 + $0x114] sm:$0xf0]  ;;  %v6612_v43 = vor.u32 %v8767_v34, %v6611_v33  ;;  %v6237_v48 = vld [vmem:[#allocation11 + $0x1f8] sm:$0xf0] }
  0xeb   :  { %1569 = vmatpush.bf16.msrb.mxu0 %v5996_v52  ;;  %1479 = vmatmul.bf16.vlgmr.msrb.gmra.mxu1 %v9975_v3  ;;  %v6171_v52 = vld [vmem:[#allocation11 + $0x168] sm:$0xf]  ;;  %v6563_v16 = vld [vmem:[#allocation10 + $0x80] sm:$0xf]  ;;  %v8938_v18 = vld [vmem:[#allocation11 + $0x24c] sm:$0xf] }
  0xec   :  { %1590 = vmatpush.bf16.msra.mxu2 %v6332_v58  ;;  %1603 = vmatpush.bf16.msra.mxu3 %v6460_v63  ;;  %v522_v10 = vpop.f32.mrf.mxu1  ;;  %v6029_v58 = vld [vmem:[#allocation11 + $0x58] sm:$0xf0]  ;;  %v8932_v63 = vld [vmem:[#allocation11 + $0x214] sm:$0xf0]  ;;  %v8751_v33 = vld [vmem:[#allocation10 + $0x6c] sm:$0xf0] }
  0xed   :  { %1575 = vmatpush.bf16.msrb.mxu1 %v6236_v4  ;;  %v6172_v4 = vor.u32 %v8912_v53, %v6171_v52  ;;  %v6032_v7 = vor.u32 %v8874_v54, %v6029_v58  ;;  %v6252_v10 = vor.u32 %v8932_v63, %v6251_v59  ;;  %v8763_v52 = vld [vmem:[#allocation10 + $0xcc] sm:$0xf0]  ;;  %v8946_v53 = vld [vmem:[#allocation11 + $0x28c] sm:$0xf]  ;;  %v6124_v54 = vor.u32 %v8900_v42, %v6123_v41  ;;  %v6445_v58 = vld [vmem:[#allocation11 + $0x398] sm:$0xf0] }
  0xee   :  { %1570 = vmatmul.bf16.vlgmr.msrb.gmra.mxu0 %v9950_v44  ;;  %v8934_v34 = vld [vmem:[#allocation11 + $0x22c] sm:$0xf]  ;;  %v6173_v41 = vld [vmem:[#allocation11 + $0x178] sm:$0xf0]  ;;  %v6531_v42 = vld [vmem:[#allocation10 + $0x40] sm:$0xf] }
  0xef   :  { %1614 = vmatpush.bf16.msra.mxu0 %v6112_v56  ;;  %v6396_v56 = vor.u32 %v8968_v50, %v6395_v49  ;;  %v6336_v49 = vor.u32 %v8950_v35, %v6333_v37  ;;  %v6269_v35 = vld [vmem:[#allocation11 + $0x238] sm:$0xf0] }
  0xf0   :  { %1591 = vmatpush.bf16.msra.mxu2 %v6316_v9  ;;  %1604 = vmatpush.bf16.msra.mxu3 %v6444_v11  ;;  %v8908_v9 = vld [vmem:[#allocation11 + $0x154] sm:$0xf0]  ;;  %v6380_v11 = vor.u32 %v8964_v0, %v6379_v60  ;;  %v8922_v60 = vld [vmem:[#allocation11 + $0x1cc] sm:$0xf]  ;;  %v6221_v0 = vld [vmem:[#allocation11 + $0x1d8] sm:$0xf0] }
  0xf1   :  { %1576 = vmatpush.bf16.msrb.mxu1 %v6220_v15  ;;  %v6496_v15 = vor.u32 %v8990_v57, %v6493_v6  ;;  %v8759_v57 = vld [vmem:[#allocation10 + $0xac] sm:$0xf0]  ;;  %v8942_v6 = vld [vmem:[#allocation11 + $0x26c] sm:$0xf]  ;;  %v6397_v37 = vld [vmem:[#allocation11 + $0x338] sm:$0xf0] }
  0xf2   :  { %1544 = vmatmul.bf16.vlgmr.msrb.gmra.mxu2 %v9968_v25 }
  0xf3   :  { %1615 = vmatpush.bf16.msra.mxu0 %v6096_v8  ;;  %1557 = vmatmul.bf16.vlgmr.msrb.gmra.mxu3 %v9970_v26  ;;  %v6155_v8 = vld [vmem:[#allocation11 + $0x148] sm:$0xf] }
  0xf4   :  { %1592 = vmatpush.bf16.msra.mxu2 %v6300_v23  ;;  %1605 = vmatpush.bf16.msra.mxu3 %v6428_v27  ;;  %v6156_v17 = vor.u32 %v8908_v9, %v6155_v8  ;;  %v6139_v23 = vld [vmem:[#allocation11 + $0x128] sm:$0xf]  ;;  %v8904_v27 = vld [vmem:[#allocation11 + $0x134] sm:$0xf0]  ;;  %v8974_v8 = vld [vmem:[#allocation11 + $0x36c] sm:$0xf] }
  0xf5   :  { %1577 = vmatpush.bf16.msrb.mxu1 %v6204_v31  ;;  %v6480_v31 = vor.u32 %v8986_v19, %v6477_v20  ;;  %v6140_v36 = vor.u32 %v8904_v27, %v6139_v23  ;;  %v6429_v9 = vld [vmem:[#allocation11 + $0x378] sm:$0xf0]  ;;  %v8914_v27 = vld [vmem:[#allocation11 + $0x18c] sm:$0xf] }
  0xf6   :  { %v6285_v19 = vld [vmem:[#allocation11 + $0x258] sm:$0xf0] }
  0xf7   :  { %1616 = vmatpush.bf16.msra.mxu0 %v6080_v22  ;;  %v6016_v22 = vor.u32 %v8870_v12, %v6013_v13  ;;  %v8918_v12 = vld [vmem:[#allocation11 + $0x1ac] sm:$0xf]  ;;  %v6205_v13 = vld [vmem:[#allocation11 + $0x1b8] sm:$0xf0] }
  0xf8   :  { %1593 = vmatpush.bf16.msra.mxu2 %v6284_v39  ;;  %1606 = vmatpush.bf16.msra.mxu3 %v6412_v40  ;;  %v6461_v39 = vld [vmem:[#allocation11 + $0x3b8] sm:$0xf0]  ;;  %v6000_v40 = vor.u32 %v8866_v28, %v5997_v29  ;;  %v6288_v29 = vor.u32 %v8938_v18, %v6285_v19  ;;  %v8739_v19 = vld [vmem:[#allocation10 + $0xc] sm:$0xf0] }
  0xf9   :  { %1578 = vmatpush.bf16.msrb.mxu1 %v6188_v47  ;;  %v8926_v47 = vld [vmem:[#allocation11 + $0x1ec] sm:$0xf]  ;;  %v6413_v20 = vld [vmem:[#allocation11 + $0x358] sm:$0xf0] }
  0xfa   :  { %v6240_v59 = vor.u32 %v8926_v47, %v6237_v48  ;;  %v6189_v28 = vld [vmem:[#allocation11 + $0x198] sm:$0xf0]  ;;  %v8747_v48 = vld [vmem:[#allocation10 + $0x4c] sm:$0xf0] }
  0xfb   :  { %1617 = vmatpush.bf16.msra.mxu0 %v6064_v38  ;;  %1531 = vmatmul.bf16.vlgmr.msra.gmra.mxu1 %v9975_v3  ;;  %v8982_v38 = vld [vmem:[#allocation11 + $0x3ac] sm:$0xf] }
  0xfc   :  { %1594 = vmatpush.bf16.msra.mxu2 %v6268_v55  ;;  %1607 = vmatpush.bf16.msra.mxu3 %v6396_v56  ;;  %v6464_v50 = vor.u32 %v8982_v38, %v6461_v39  ;;  %v6317_v55 = vld [vmem:[#allocation11 + $0x298] sm:$0xf0]  ;;  %v8978_v56 = vld [vmem:[#allocation11 + $0x38c] sm:$0xf]  ;;  %v6192_v38 = vor.u32 %v8914_v27, %v6189_v28  ;;  %v8823_v27 = vld [vmem:[#allocation10 + $0x2ac] sm:$0xf0] }
  0xfd   :  { %1579 = vmatpush.bf16.msrb.mxu1 %v6172_v4  ;;  %v6320_v2 = vor.u32 %v8946_v53, %v6317_v55  ;;  %v6448_v4 = vor.u32 %v8978_v56, %v6445_v58  ;;  %v6867_v53 = vld [vmem:[#allocation10 + $0x2e0] sm:$0xf]  ;;  %v8831_v55 = vld [vmem:[#allocation10 + $0x2ec] sm:$0xf0] }
  0xfe   :  { %v6995_v56 = vld [vmem:[#allocation10 + $0x3e0] sm:$0xf]  ;;  %v8863_v58 = vld [vmem:[#allocation10 + $0x3ec] sm:$0xf0] }
  0xff   :  { %1618 = vmatpush.bf16.msra.mxu0 %v6048_v51  ;;  %v6595_v51 = vld [vmem:[#allocation10 + $0xc0] sm:$0xf] }
 0x100   :  { %1595 = vmatpush.bf16.msra.mxu2 %v6252_v10  ;;  %1608 = vmatpush.bf16.msra.mxu3 %v6380_v11  ;;  %v6596_v63 = vor.u32 %v8763_v52, %v6595_v51  ;;  %v6224_v10 = vor.u32 %v8922_v60, %v6221_v0  ;;  %v6580_v11 = vor.u32 %v8759_v57, %v6579_v5  ;;  %v8962_v51 = vld [vmem:[#allocation11 + $0x30c] sm:$0xf]  ;;  %v6381_v52 = vld [vmem:[#allocation11 + $0x318] sm:$0xf0]  ;;  %v250_v0 = vperm.slane %v9945_v21, 0 }
 0x101   :  { %1580 = vmatpush.bf16.msrb.mxu1 %v6156_v17  ;;  %v8755_v17 = vld [vmem:[#allocation10 + $0x8c] sm:$0xf0]  ;;  %v6157_v60 = vld [vmem:[#allocation11 + $0x158] sm:$0xf0]  ;;  %v6868_v5 = vor.u32 %v8831_v55, %v6867_v53  ;;  %v6996_v57 = vor.u32 %v8863_v58, %v6995_v56  ;;  %v6963_v28 = vld [vmem:[#allocation10 + $0x3a0] sm:$0xf] }
 0x102   :  { %v6564_v23 = vor.u32 %v8755_v17, %v6563_v16  ;;  %v348_v16 = vadd.f32 %v9948_v32, %v250_v0  ;;  %v6581_v55 = vld [vmem:[#allocation10 + $0xb0] sm:$0xf0]  ;;  %v6803_v56 = vld [vmem:[#allocation10 + $0x260] sm:$0xf] }
 0x103   :  { %1619 = vmatpush.bf16.msra.mxu0 %v6032_v7  ;;  %1596 = vmatmul.bf16.vlgmr.msra.gmra.mxu2 %v9968_v25  ;;  %v6301_v7 = vld [vmem:[#allocation11 + $0x278] sm:$0xf0]  ;;  %v6707_v0 = vld [vmem:[#allocation10 + $0x1a0] sm:$0xf] }
 0x104   :  { %1640 = vmatpush.bf16.msrb.mxu2 %v6368_v14  ;;  %1653 = vmatpush.bf16.msrb.mxu3 %v6496_v15  ;;  %v6304_v14 = vor.u32 %v8942_v6, %v6301_v7  ;;  %v6432_v15 = vor.u32 %v8974_v8, %v6429_v9  ;;  %v6515_v6 = vld [vmem:[#allocation10 + $0x20] sm:$0xf]  ;;  %v8743_v7 = vld [vmem:[#allocation10 + $0x2c] sm:$0xf0] }
 0x105   :  { %1609 = vmatmul.bf16.vlgmr.msra.gmra.mxu3 %v9970_v26  ;;  %1581 = vmatpush.bf16.msrb.mxu1 %v6140_v36  ;;  %v8966_v36 = vld [vmem:[#allocation11 + $0x32c] sm:$0xf]  ;;  %v6851_v8 = vld [vmem:[#allocation10 + $0x2c0] sm:$0xf]  ;;  %v6516_v21 = vor.u32 %v8743_v7, %v6515_v6  ;;  %v8753_v6 = vld [vmem:[#allocation10 + $0x84] sm:$0xf] }
 0x106   :  { %v6400_v47 = vor.u32 %v8966_v36, %v6397_v37  ;;  %v6565_v7 = vld [vmem:[#allocation10 + $0x90] sm:$0xf0] }
 0x107   :  { %1620 = vmatpush.bf16.msra.mxu0 %v6016_v22  ;;  %v6208_v22 = vor.u32 %v8918_v12, %v6205_v13  ;;  %v8859_v12 = vld [vmem:[#allocation10 + $0x3cc] sm:$0xf0]  ;;  %v8902_v13 = vld [vmem:[#allocation11 + $0x12c] sm:$0xf] }
 0x108   :  { %1641 = vmatpush.bf16.msrb.mxu2 %v6352_v30  ;;  %1654 = vmatpush.bf16.msrb.mxu3 %v6480_v31  ;;  %v6547_v31 = vld [vmem:[#allocation10 + $0x60] sm:$0xf] }
 0x109   :  { %1582 = vmatpush.bf16.msrb.mxu1 %v6124_v54  ;;  %v6548_v39 = vor.u32 %v8751_v33, %v6547_v31  ;;  %v6125_v31 = vld [vmem:[#allocation11 + $0x118] sm:$0xf0]  ;;  %v6739_v33 = vld [vmem:[#allocation10 + $0x1e0] sm:$0xf] }
 0x10b   :  { %1621 = vmatpush.bf16.msra.mxu0 %v6000_v40  ;;  %v8910_v40 = vld [vmem:[#allocation11 + $0x16c] sm:$0xf] }
 0x10c   :  { %1642 = vmatpush.bf16.msrb.mxu2 %v6336_v49  ;;  %1655 = vmatpush.bf16.msrb.mxu3 %v6464_v50  ;;  %v8930_v49 = vld [vmem:[#allocation11 + $0x20c] sm:$0xf]  ;;  %v6253_v50 = vld [vmem:[#allocation11 + $0x218] sm:$0xf0]  ;;  %v6176_v54 = vor.u32 %v8910_v40, %v6173_v41  ;;  %v8761_v40 = vld [vmem:[#allocation10 + $0xc4] sm:$0xf] }
 0x10d   :  { %1627 = vmatpush.bf16.msra.mxu1 %v6240_v59  ;;  %v6532_v59 = vor.u32 %v8747_v48, %v6531_v42  ;;  %v6597_v41 = vld [vmem:[#allocation10 + $0xd0] sm:$0xf0]  ;;  %v6723_v48 = vld [vmem:[#allocation10 + $0x1c0] sm:$0xf] }
 0x10e   :  { %1622 = vmatmul.bf16.vlgmr.msra.gmra.mxu0 %v9950_v44  ;;  %1583 = vmatmul.bf16.vlgmr.msrb.gmra.mxu1 %v9975_v3  ;;  %v8970_v44 = vld [vmem:[#allocation11 + $0x34c] sm:$0xf] }
 0x10f   :  { %2306 = vmatpush.bf16.msrb.mxu0 %v6612_v43  ;;  %v6416_v30 = vor.u32 %v8970_v44, %v6413_v20  ;;  %v6272_v43 = vor.u32 %v8934_v34, %v6269_v35  ;;  %v8765_v44 = vld [vmem:[#allocation10 + $0xe4] sm:$0xf]  ;;  %v6613_v20 = vld [vmem:[#allocation10 + $0xf0] sm:$0xf0]  ;;  %v8799_v34 = vld [vmem:[#allocation10 + $0x1ec] sm:$0xf0] }
 0x110   :  { %1643 = vmatpush.bf16.msrb.mxu2 %v6320_v2  ;;  %1656 = vmatpush.bf16.msrb.mxu3 %v6448_v4  ;;  %v6256_v2 = vor.u32 %v8930_v49, %v6253_v50  ;;  %v6384_v4 = vor.u32 %v8962_v51, %v6381_v52  ;;  %v390_v35 = vmax.f32 %v348_v16, 0.0  ;;  %v6616_v36 = vor.u32 %v8765_v44, %v6613_v20  ;;  %v8795_v49 = vld [vmem:[#allocation10 + $0x1cc] sm:$0xf0]  ;;  %v6771_v44 = vld [vmem:[#allocation10 + $0x220] sm:$0xf] }
 0x111   :  { %1628 = vmatpush.bf16.msra.mxu1 %v6224_v10  ;;  %v8827_v10 = vld [vmem:[#allocation10 + $0x2cc] sm:$0xf0]  ;;  %v6740_v42 = vor.u32 %v8799_v34, %v6739_v33  ;;  %v6600_v51 = vor.u32 %v8761_v40, %v6597_v41  ;;  %v6724_v58 = vor.u32 %v8795_v49, %v6723_v48  ;;  %v6533_v34 = vld [vmem:[#allocation10 + $0x50] sm:$0xf0]  ;;  %v8829_v40 = vld [vmem:[#allocation10 + $0x2e4] sm:$0xf] }
 0x112   :  { %v6852_v17 = vor.u32 %v8827_v10, %v6851_v8  ;;  %v9990_v50 = vpack.c.bf16 %v390_v35, %v390_v35  ;;  %v6787_v8 = vld [vmem:[#allocation10 + $0x240] sm:$0xf]  ;;  %v8811_v10 = vld [vmem:[#allocation10 + $0x24c] sm:$0xf0]  ;;  %v6869_v41 = vld [vmem:[#allocation10 + $0x2f0] sm:$0xf0] }
 0x113   :  { %2307 = vmatpush.bf16.msrb.mxu0 %v6596_v63  ;;  %v8906_v63 = vld [vmem:[#allocation11 + $0x14c] sm:$0xf]  ;;  %v6788_v16 = vor.u32 %v8811_v10, %v6787_v8  ;;  %v6755_v35 = vld [vmem:[#allocation10 + $0x200] sm:$0xf]  ;;  %v6619_v10 = vld [vmem:[#allocation10 + $0xe8] sm:$0xf] }
 0x114   :  { %1644 = vmatpush.bf16.msrb.mxu2 %v6304_v14  ;;  %1657 = vmatpush.bf16.msrb.mxu3 %v6432_v15  ;;  %v6160_v9 = vor.u32 %v8906_v63, %v6157_v60  ;;  %v6141_v14 = vld [vmem:[#allocation11 + $0x138] sm:$0xf0]  ;;  %v6499_v15 = vld [vmem:[#allocation10] sm:$0xf]  ;;  %v8847_v60 = vld [vmem:[#allocation10 + $0x36c] sm:$0xf0] }
 0x115   :  { %1629 = vmatpush.bf16.msra.mxu1 %v6208_v22  ;;  %v6144_v22 = vor.u32 %v8902_v13, %v6141_v14  ;;  %v6500_v32 = vor.u32 %v8739_v19, %v6499_v15  ;;  %v6931_v63 = vld [vmem:[#allocation10 + $0x360] sm:$0xf]  ;;  %v8787_v14 = vld [vmem:[#allocation10 + $0x18c] sm:$0xf0]  ;;  %v253_v15 = vperm.slane %v9961_v1, 0 }
 0x116   :  { %v6691_v13 = vld [vmem:[#allocation10 + $0x180] sm:$0xf]  ;;  %v6549_v19 = vld [vmem:[#allocation10 + $0x70] sm:$0xf0] }
 0x117   :  { %2308 = vmatpush.bf16.msrb.mxu0 %v6580_v11  ;;  %v6979_v11 = vld [vmem:[#allocation10 + $0x3c0] sm:$0xf]  ;;  %v6692_v20 = vor.u32 %v8787_v14, %v6691_v13  ;;  %v8821_v13 = vld [vmem:[#allocation10 + $0x2a4] sm:$0xf]  ;;  %v6837_v14 = vld [vmem:[#allocation10 + $0x2b0] sm:$0xf0] }
 0x118   :  { %1645 = vmatpush.bf16.msrb.mxu2 %v6288_v29  ;;  %1658 = vmatpush.bf16.msrb.mxu3 %v6416_v30  ;;  %v6980_v18 = vor.u32 %v8859_v12, %v6979_v11  ;;  %v8855_v29 = vld [vmem:[#allocation10 + $0x3ac] sm:$0xf0]  ;;  %v8898_v30 = vld [vmem:[#allocation11 + $0x10c] sm:$0xf]  ;;  %v6915_v11 = vld [vmem:[#allocation10 + $0x340] sm:$0xf] }
 0x119   :  { %1630 = vmatpush.bf16.msra.mxu1 %v6192_v38  ;;  %v6964_v38 = vor.u32 %v8855_v29, %v6963_v28  ;;  %v8843_v12 = vld [vmem:[#allocation10 + $0x34c] sm:$0xf0]  ;;  %v6675_v28 = vld [vmem:[#allocation10 + $0x160] sm:$0xf] }
 0x11a   :  { %v8783_v29 = vld [vmem:[#allocation10 + $0x16c] sm:$0xf0] }
 0x11b   :  { %2309 = vmatpush.bf16.msrb.mxu0 %v6564_v23  ;;  %v6835_v23 = vld [vmem:[#allocation10 + $0x2a0] sm:$0xf] }
 0x11c   :  { %1646 = vmatpush.bf16.msrb.mxu2 %v6272_v43  ;;  %1659 = vmatpush.bf16.msrb.mxu3 %v6400_v47  ;;  %v6836_v37 = vor.u32 %v8823_v27, %v6835_v23  ;;  %v6947_v43 = vld [vmem:[#allocation10 + $0x380] sm:$0xf]  ;;  %v8851_v47 = vld [vmem:[#allocation10 + $0x38c] sm:$0xf0] }
 0x11d   :  { %1631 = vmatpush.bf16.msra.mxu1 %v6176_v54  ;;  %v6948_v53 = vor.u32 %v8851_v47, %v6947_v43  ;;  %v8757_v54 = vld [vmem:[#allocation10 + $0xa4] sm:$0xf]  ;;  %v6899_v23 = vld [vmem:[#allocation10 + $0x320] sm:$0xf]  ;;  %v8839_v27 = vld [vmem:[#allocation10 + $0x32c] sm:$0xf0] }
 0x11e   :  { %v6900_v33 = vor.u32 %v8839_v27, %v6899_v23  ;;  %v8779_v43 = vld [vmem:[#allocation10 + $0x14c] sm:$0xf0]  ;;  %v6603_v27 = vld [vmem:[#allocation10 + $0xc8] sm:$0xf] }
 0x11f   :  { %2310 = vmatpush.bf16.msrb.mxu0 %v6548_v39  ;;  %v6128_v39 = vor.u32 %v8898_v30, %v6125_v31  ;;  %v8745_v30 = vld [vmem:[#allocation10 + $0x44] sm:$0xf]  ;;  %v387_v31 = vadd.f32 %v9954_v46, %v253_v15  ;;  %v6659_v46 = vld [vmem:[#allocation10 + $0x140] sm:$0xf]  ;;  %v6965_v15 = vld [vmem:[#allocation10 + $0x3b0] sm:$0xf0] }
 0x120   :  { %1647 = vmatpush.bf16.msrb.mxu2 %v6256_v2  ;;  %1660 = vmatpush.bf16.msrb.mxu3 %v6384_v4  ;;  %v8791_v2 = vld [vmem:[#allocation10 + $0x1ac] sm:$0xf0]  ;;  %v6584_v4 = vor.u32 %v8757_v54, %v6581_v55  ;;  %v8741_v54 = vld [vmem:[#allocation10 + $0x24] sm:$0xf]  ;;  %v6517_v55 = vld [vmem:[#allocation10 + $0x30] sm:$0xf0] }
 0x121   :  { %1632 = vmatpush.bf16.msra.mxu1 %v6160_v9  ;;  %v6708_v9 = vor.u32 %v8791_v2, %v6707_v0  ;;  %v393_v48 = vmax.f32 %v387_v31, 0.0  ;;  %v8775_v0 = vld [vmem:[#allocation10 + $0x12c] sm:$0xf0]  ;;  %v6949_v31 = vld [vmem:[#allocation10 + $0x390] sm:$0xf0] }
 0x123   :  { %2311 = vmatpush.bf16.msrb.mxu0 %v6532_v59  ;;  %1648 = vmatmul.bf16.vlgmr.msrb.gmra.mxu2 %v9968_v25  ;;  %v6819_v25 = vld [vmem:[#allocation10 + $0x280] sm:$0xf]  ;;  %v8815_v59 = vld [vmem:[#allocation10 + $0x26c] sm:$0xf0] }
 0x124   :  { %2332 = vmatpush.bf16.msra.mxu2 %v6868_v5  ;;  %2345 = vmatpush.bf16.msra.mxu3 %v6996_v57  ;;  %v6804_v5 = vor.u32 %v8815_v59, %v6803_v56  ;;  %v6932_v57 = vor.u32 %v8847_v60, %v6931_v63  ;;  %v8825_v56 = vld [vmem:[#allocation10 + $0x2c4] sm:$0xf]  ;;  %v6853_v59 = vld [vmem:[#allocation10 + $0x2d0] sm:$0xf0]  ;;  %v6643_v60 = vld [vmem:[#allocation10 + $0x120] sm:$0xf] }
 0x125   :  { %1661 = vmatmul.bf16.vlgmr.msrb.gmra.mxu3 %v9970_v26  ;;  %1633 = vmatpush.bf16.msra.mxu1 %v6144_v22  ;;  %v8819_v26 = vld [vmem:[#allocation10 + $0x28c] sm:$0xf0]  ;;  %v8857_v63 = vld [vmem:[#allocation10 + $0x3c4] sm:$0xf] }
 0x126   :  { %v6820_v52 = vor.u32 %v8819_v26, %v6819_v25  ;;  %v8807_v22 = vld [vmem:[#allocation10 + $0x22c] sm:$0xf0]  ;;  %v8861_v25 = vld [vmem:[#allocation10 + $0x3e4] sm:$0xf]  ;;  %v6536_v26 = vor.u32 %v8745_v30, %v6533_v34 }
 0x127   :  { %2312 = vmatpush.bf16.msrb.mxu0 %v6516_v21  ;;  %v252_v21 = vperm.slane %v9959_v62, 0  ;;  %v8849_v30 = vld [vmem:[#allocation10 + $0x384] sm:$0xf] }
 0x128   :  { %2333 = vmatpush.bf16.msra.mxu2 %v6852_v17  ;;  %2346 = vmatpush.bf16.msra.mxu3 %v6980_v18  ;;  %v6916_v17 = vor.u32 %v8843_v12, %v6915_v11  ;;  %v8749_v18 = vld [vmem:[#allocation10 + $0x64] sm:$0xf]  ;;  %v8768_v11 = vld [vmem:[#allocation10 + $0xf4] sm:$0xf0]  ;;  %v6644_v12 = vor.u32 %v8775_v0, %v6643_v60 }
 0x129   :  { %1634 = vmatpush.bf16.msra.mxu1 %v6128_v39  ;;  %v374_v62 = vadd.f32 %v9952_v45, %v252_v21  ;;  %v6552_v1 = vor.u32 %v8749_v18, %v6549_v19  ;;  %v8835_v39 = vld [vmem:[#allocation10 + $0x30c] sm:$0xf0]  ;;  %v6997_v45 = vld [vmem:[#allocation10 + $0x3f0] sm:$0xf0]  ;;  %v8853_v21 = vld [vmem:[#allocation10 + $0x3a4] sm:$0xf] }
 0x12a   :  { %v6741_v18 = vld [vmem:[#allocation10 + $0x1f0] sm:$0xf0] }
 0x12b   :  { %2313 = vmatpush.bf16.msrb.mxu0 %v6500_v32  ;;  %v6772_v32 = vor.u32 %v8807_v22, %v6771_v44  ;;  %v392_v47 = vmax.f32 %v374_v62, 0.0  ;;  %v6620_v44 = vor.u32 %v8768_v11, %v6619_v10  ;;  %v6968_v22 = vor.u32 %v8853_v21, %v6965_v15  ;;  %v6901_v10 = vld [vmem:[#allocation10 + $0x330] sm:$0xf0]  ;;  %v8781_v11 = vld [vmem:[#allocation10 + $0x164] sm:$0xf] }
 0x12c   :  { %2334 = vmatpush.bf16.msra.mxu2 %v6836_v37  ;;  %2347 = vmatpush.bf16.msra.mxu3 %v6964_v38  ;;  %v6676_v37 = vor.u32 %v8783_v29, %v6675_v28  ;;  %v6883_v38 = vld [vmem:[#allocation10 + $0x300] sm:$0xf]  ;;  %v8764_v28 = vld [vmem:[#allocation10 + $0xd4] sm:$0xf0]  ;;  %v8817_v29 = vld [vmem:[#allocation10 + $0x284] sm:$0xf] }
 0x12d   :  { %2319 = vmatpush.bf16.msrb.mxu1 %v6740_v42  ;;  %v251_v42 = vperm.slane %v9966_v24, 0  ;;  %v6981_v24 = vld [vmem:[#allocation10 + $0x3d0] sm:$0xf0]  ;;  %v9999_v2 = vpack.c.bf16 %v392_v47, %v392_v47  ;;  %v6604_v34 = vor.u32 %v8764_v28, %v6603_v27  ;;  %v8864_v27 = vld [vmem:[#allocation10 + $0x3f4] sm:$0xf0] }
 0x12e   :  { %2314 = vmatmul.bf16.vlgmr.msrb.gmra.mxu0 %v9990_v50  ;;  %1635 = vmatmul.bf16.vlgmr.msra.gmra.mxu1 %v9975_v3  ;;  %v6568_v3 = vor.u32 %v8753_v6, %v6565_v7  ;;  %v6856_v7 = vor.u32 %v8825_v56, %v6853_v59  ;;  %v6984_v8 = vor.u32 %v8857_v63, %v6981_v24  ;;  %v8841_v56 = vld [vmem:[#allocation10 + $0x344] sm:$0xf]  ;;  %v6693_v63 = vld [vmem:[#allocation10 + $0x190] sm:$0xf0] }
 0x12f   :  { %2358 = vmatpush.bf16.msra.mxu0 %v6616_v36  ;;  %v8803_v36 = vld [vmem:[#allocation10 + $0x20c] sm:$0xf0]  ;;  %v361_v6 = vadd.f32 %v9957_v61, %v251_v42  ;;  %v6933_v42 = vld [vmem:[#allocation10 + $0x370] sm:$0xf0]  ;;  %v8785_v59 = vld [vmem:[#allocation10 + $0x184] sm:$0xf] }
 0x130   :  { %2335 = vmatpush.bf16.msra.mxu2 %v6820_v52  ;;  %2348 = vmatpush.bf16.msra.mxu3 %v6948_v53  ;;  %v6756_v49 = vor.u32 %v8803_v36, %v6755_v35  ;;  %v6872_v52 = vor.u32 %v8829_v40, %v6869_v41  ;;  %v7000_v53 = vor.u32 %v8861_v25, %v6997_v45  ;;  %v6805_v25 = vld [vmem:[#allocation10 + $0x270] sm:$0xf0]  ;;  %v8845_v45 = vld [vmem:[#allocation10 + $0x364] sm:$0xf] }
 0x131   :  { %2320 = vmatpush.bf16.msrb.mxu1 %v6724_v58  ;;  %v6660_v58 = vor.u32 %v8779_v43, %v6659_v46  ;;  %v391_v19 = vmax.f32 %v361_v6, 0.0  ;;  %v6952_v36 = vor.u32 %v8849_v30, %v6949_v31  ;;  %v6709_v46 = vld [vmem:[#allocation10 + $0x1b0] sm:$0xf0]  ;;  %v8805_v6 = vld [vmem:[#allocation10 + $0x224] sm:$0xf] }
 0x133   :  { %2359 = vmatpush.bf16.msra.mxu0 %v6600_v51  ;;  %v6884_v51 = vor.u32 %v8835_v39, %v6883_v38  ;;  %v8760_v38 = vld [vmem:[#allocation10 + $0xb4] sm:$0xf0]  ;;  %v8813_v39 = vld [vmem:[#allocation10 + $0x264] sm:$0xf]  ;;  %v10006_v40 = vpack.c.bf16 %v391_v19, %v391_v19 }
 0x134   :  { %2336 = vmatpush.bf16.msra.mxu2 %v6804_v5  ;;  %2349 = vmatpush.bf16.msra.mxu3 %v6932_v57  ;;  %v6520_v5 = vor.u32 %v8741_v54, %v6517_v55  ;;  %v8737_v57 = vld [vmem:[#allocation10 + $0x4] sm:$0xf]  ;;  %v6808_v47 = vor.u32 %v8813_v39, %v6805_v25  ;;  %v6789_v55 = vld [vmem:[#allocation10 + $0x250] sm:$0xf0]  ;;  %v8860_v39 = vld [vmem:[#allocation10 + $0x3d4] sm:$0xf0] }
 0x135   :  { %2321 = vmatpush.bf16.msrb.mxu1 %v6708_v9  ;;  %v6501_v9 = vld [vmem:[#allocation10 + $0x10] sm:$0xf0]  ;;  %v8833_v19 = vld [vmem:[#allocation10 + $0x304] sm:$0xf] }
 0x136   :  { %v6504_v61 = vor.u32 %v8737_v57, %v6501_v9  ;;  %v8752_v57 = vld [vmem:[#allocation10 + $0x74] sm:$0xf0]  ;;  %v8837_v9 = vld [vmem:[#allocation10 + $0x324] sm:$0xf]  ;;  %v6645_v25 = vld [vmem:[#allocation10 + $0x130] sm:$0xf0] }
 0x137   :  { %2360 = vmatpush.bf16.msra.mxu0 %v6584_v4  ;;  %v10001_v4 = vpack.c.bf16 %v393_v48, %v393_v48  ;;  %v6936_v48 = vor.u32 %v8845_v45, %v6933_v42  ;;  %v6904_v15 = vor.u32 %v8837_v9, %v6901_v10  ;;  %v6507_v42 = vld [vmem:[#allocation10 + $0x8] sm:$0xf] }
 0x138   :  { %2337 = vmatpush.bf16.msra.mxu2 %v6788_v16  ;;  %2350 = vmatpush.bf16.msra.mxu3 %v6916_v17  ;;  %v8771_v16 = vld [vmem:[#allocation10 + $0x10c] sm:$0xf0]  ;;  %v8797_v17 = vld [vmem:[#allocation10 + $0x1e4] sm:$0xf]  ;;  %v6827_v9 = vld [vmem:[#allocation10 + $0x288] sm:$0xf] }
 0x139   :  { %2322 = vmatpush.bf16.msrb.mxu1 %v6692_v20  ;;  %v6840_v20 = vor.u32 %v8821_v13, %v6837_v14  ;;  %v6744_v62 = vor.u32 %v8797_v17, %v6741_v18  ;;  %v6539_v14 = vld [vmem:[#allocation10 + $0x48] sm:$0xf] }
 0x13b   :  { %2361 = vmatpush.bf16.msra.mxu0 %v6568_v3  ;;  %v6627_v3 = vld [vmem:[#allocation10 + $0x100] sm:$0xf] }
 0x13c   :  { %2338 = vmatpush.bf16.msra.mxu2 %v6772_v32  ;;  %2351 = vmatpush.bf16.msra.mxu3 %v6900_v33  ;;  %v6628_v23 = vor.u32 %v8771_v16, %v6627_v3  ;;  %v8793_v32 = vld [vmem:[#allocation10 + $0x1c4] sm:$0xf]  ;;  %v6725_v33 = vld [vmem:[#allocation10 + $0x1d0] sm:$0xf0]  ;;  %v8748_v3 = vld [vmem:[#allocation10 + $0x54] sm:$0xf0] }
 0x13d   :  { %2323 = vmatpush.bf16.msrb.mxu1 %v6676_v37  ;;  %v6587_v37 = vld [vmem:[#allocation10 + $0xa8] sm:$0xf]  ;;  %v6728_v41 = vor.u32 %v8793_v32, %v6725_v33  ;;  %v8801_v16 = vld [vmem:[#allocation10 + $0x204] sm:$0xf]  ;;  %v6540_v28 = vor.u32 %v8748_v3, %v6539_v14 }
 0x13e   :  { %v6588_v43 = vor.u32 %v8760_v38, %v6587_v37  ;;  %v6523_v33 = vld [vmem:[#allocation10 + $0x28] sm:$0xf]  ;;  %v8828_v37 = vld [vmem:[#allocation10 + $0x2d4] sm:$0xf0] }
 0x13f   :  { %2362 = vmatpush.bf16.msra.mxu0 %v6552_v1  ;;  %v6821_v1 = vld [vmem:[#allocation10 + $0x290] sm:$0xf0]  ;;  %v6987_v38 = vld [vmem:[#allocation10 + $0x3c8] sm:$0xf] }
 0x140   :  { %2339 = vmatpush.bf16.msra.mxu2 %v6756_v49  ;;  %2352 = vmatpush.bf16.msra.mxu3 %v6884_v51  ;;  %v6824_v35 = vor.u32 %v8817_v29, %v6821_v1  ;;  %v6571_v49 = vld [vmem:[#allocation10 + $0x88] sm:$0xf]  ;;  %v8756_v51 = vld [vmem:[#allocation10 + $0x94] sm:$0xf0]  ;;  %v8777_v29 = vld [vmem:[#allocation10 + $0x144] sm:$0xf] }
 0x141   :  { %2324 = vmatpush.bf16.msrb.mxu1 %v6660_v58  ;;  %v6917_v58 = vld [vmem:[#allocation10 + $0x350] sm:$0xf0]  ;;  %v6572_v24 = vor.u32 %v8756_v51, %v6571_v49  ;;  %v6621_v49 = vld [vmem:[#allocation10 + $0xf8] sm:$0xf0]  ;;  %v6731_v14 = vld [vmem:[#allocation10 + $0x1c8] sm:$0xf] }
 0x142   :  { %v6920_v0 = vor.u32 %v8841_v56, %v6917_v58  ;;  %v8856_v56 = vld [vmem:[#allocation10 + $0x3b4] sm:$0xf0]  ;;  %v8769_v58 = vld [vmem:[#allocation10 + $0x104] sm:$0xf] }
 0x143   :  { %2363 = vmatpush.bf16.msra.mxu0 %v6536_v26  ;;  %2340 = vmatmul.bf16.vlgmr.msra.gmra.mxu2 %v9999_v2  ;;  %v8789_v26 = vld [vmem:[#allocation10 + $0x1a4] sm:$0xf] }
 0x144   :  { %2384 = vmatpush.bf16.msrb.mxu2 %v6872_v52  ;;  %2397 = vmatpush.bf16.msrb.mxu3 %v7000_v53  ;;  %v8809_v52 = vld [vmem:[#allocation10 + $0x244] sm:$0xf]  ;;  %v6712_v54 = vor.u32 %v8789_v26, %v6709_v46 }
 0x145   :  { %2353 = vmatmul.bf16.vlgmr.msra.gmra.mxu3 %v10001_v4  ;;  %2325 = vmatpush.bf16.msrb.mxu1 %v6644_v12  ;;  %v6792_v60 = vor.u32 %v8809_v52, %v6789_v55  ;;  %v6677_v12 = vld [vmem:[#allocation10 + $0x170] sm:$0xf0]  ;;  %v6843_v52 = vld [vmem:[#allocation10 + $0x2a8] sm:$0xf] }
 0x146   :  { %v6680_v18 = vor.u32 %v8781_v11, %v6677_v12  ;;  %v6971_v55 = vld [vmem:[#allocation10 + $0x3a8] sm:$0xf]  ;;  %v8820_v11 = vld [vmem:[#allocation10 + $0x294] sm:$0xf0] }
 0x147   :  { %2364 = vmatpush.bf16.msra.mxu0 %v6520_v5  ;;  %v6555_v5 = vld [vmem:[#allocation10 + $0x68] sm:$0xf] }
 0x148   :  { %2385 = vmatpush.bf16.msrb.mxu2 %v6856_v7  ;;  %2398 = vmatpush.bf16.msrb.mxu3 %v6984_v8  ;;  %v6696_v7 = vor.u32 %v8785_v59, %v6693_v63  ;;  %v6773_v8 = vld [vmem:[#allocation10 + $0x230] sm:$0xf0]  ;;  %v6556_v13 = vor.u32 %v8752_v57, %v6555_v5  ;;  %v6972_v57 = vor.u32 %v8856_v56, %v6971_v55  ;;  %v6955_v12 = vld [vmem:[#allocation10 + $0x388] sm:$0xf]  ;;  %v8808_v55 = vld [vmem:[#allocation10 + $0x234] sm:$0xf0] }
 0x149   :  { %2326 = vmatpush.bf16.msrb.mxu1 %v6628_v23  ;;  %v6776_v21 = vor.u32 %v8805_v6, %v6773_v8  ;;  %v7003_v23 = vld [vmem:[#allocation10 + $0x3e8] sm:$0xf]  ;;  %v6629_v59 = vld [vmem:[#allocation10 + $0x110] sm:$0xf0]  ;;  %v6605_v8 = vld [vmem:[#allocation10 + $0xd8] sm:$0xf0] }
 0x14a   :  { %v7004_v32 = vor.u32 %v8864_v27, %v7003_v23  ;;  %v6632_v6 = vor.u32 %v8769_v58, %v6629_v59  ;;  %v8848_v23 = vld [vmem:[#allocation10 + $0x374] sm:$0xf0]  ;;  %v6907_v56 = vld [vmem:[#allocation10 + $0x328] sm:$0xf] }
 0x14b   :  { %2365 = vmatpush.bf16.msra.mxu0 %v6504_v61  ;;  %v10010_v53 = vpop.f32.mrf.mxu0  ;;  %v6757_v61 = vld [vmem:[#allocation10 + $0x210] sm:$0xf0]  ;;  %v8840_v58 = vld [vmem:[#allocation10 + $0x334] sm:$0xf0] }
 0x14c   :  { %2386 = vmatpush.bf16.msrb.mxu2 %v6840_v20  ;;  %2399 = vmatpush.bf16.msrb.mxu3 %v6968_v22  ;;  %v6875_v20 = vld [vmem:[#allocation10 + $0x2e8] sm:$0xf]  ;;  %v8832_v22 = vld [vmem:[#allocation10 + $0x2f4] sm:$0xf0]  ;;  %v6760_v1 = vor.u32 %v8801_v16, %v6757_v61  ;;  %v6828_v16 = vor.u32 %v8820_v11, %v6827_v9 }
 0x14d   :  { %2371 = vmatpush.bf16.msra.mxu1 %v6744_v62  ;;  %v6661_v62 = vld [vmem:[#allocation10 + $0x150] sm:$0xf0]  ;;  %v6876_v31 = vor.u32 %v8832_v22, %v6875_v20  ;;  %v8816_v20 = vld [vmem:[#allocation10 + $0x274] sm:$0xf0]  ;;  %v6939_v22 = vld [vmem:[#allocation10 + $0x368] sm:$0xf] }
 0x14e   :  { %2366 = vmatmul.bf16.vlgmr.msra.gmra.mxu0 %v9990_v50  ;;  %2327 = vmatmul.bf16.vlgmr.msrb.gmra.mxu1 %v10006_v40  ;;  %v8804_v9 = vld [vmem:[#allocation10 + $0x214] sm:$0xf0]  ;;  %v6891_v11 = vld [vmem:[#allocation10 + $0x308] sm:$0xf] }
 0x14f   :  { %2410 = vmatpush.bf16.msrb.mxu0 %v6620_v44  ;;  %v6885_v44 = vld [vmem:[#allocation10 + $0x310] sm:$0xf0] }
 0x150   :  { %2387 = vmatpush.bf16.msrb.mxu2 %v6824_v35  ;;  %2400 = vmatpush.bf16.msrb.mxu3 %v6952_v36  ;;  %v6888_v30 = vor.u32 %v8833_v19, %v6885_v44  ;;  %v6859_v35 = vld [vmem:[#allocation10 + $0x2c8] sm:$0xf]  ;;  %v6664_v36 = vor.u32 %v8777_v29, %v6661_v62  ;;  %v8792_v29 = vld [vmem:[#allocation10 + $0x1b4] sm:$0xf0] }
 0x151   :  { %2372 = vmatpush.bf16.msra.mxu1 %v6728_v41  ;;  %v8773_v41 = vld [vmem:[#allocation10 + $0x124] sm:$0xf]  ;;  %v6860_v46 = vor.u32 %v8828_v37, %v6859_v35  ;;  %v6811_v19 = vld [vmem:[#allocation10 + $0x268] sm:$0xf] }
 0x152   :  { %v6648_v51 = vor.u32 %v8773_v41, %v6645_v25  ;;  %v6923_v37 = vld [vmem:[#allocation10 + $0x348] sm:$0xf]  ;;  %v8788_v25 = vld [vmem:[#allocation10 + $0x194] sm:$0xf0] }
 0x153   :  { %2411 = vmatpush.bf16.msrb.mxu0 %v6604_v34  ;;  %v1469_v17 = vpop.f32.mrf.mxu0  ;;  %v8744_v34 = vld [vmem:[#allocation10 + $0x34] sm:$0xf0]  ;;  %v6699_v41 = vld [vmem:[#allocation10 + $0x188] sm:$0xf] }
 0x154   :  { %2388 = vmatpush.bf16.msrb.mxu2 %v6808_v47  ;;  %2401 = vmatpush.bf16.msrb.mxu3 %v6936_v48  ;;  %v6524_v45 = vor.u32 %v8744_v34, %v6523_v33  ;;  %v8740_v47 = vld [vmem:[#allocation10 + $0x14] sm:$0xf0]  ;;  %v8766_v48 = vld [vmem:[#allocation10 + $0xec] sm:$0xf]  ;;  %v6573_v33 = vld [vmem:[#allocation10 + $0x98] sm:$0xf0] }
 0x155   :  { %2373 = vmatpush.bf16.msra.mxu1 %v6712_v54  ;;  %v8824_v54 = vld [vmem:[#allocation10 + $0x2b4] sm:$0xf0]  ;;  %v6508_v63 = vor.u32 %v8740_v47, %v6507_v42  ;;  %v8758_v17 = vld [vmem:[#allocation10 + $0xac] sm:$0xf]  ;;  %v6795_v34 = vld [vmem:[#allocation10 + $0x248] sm:$0xf] }
 0x156   :  { %v6844_v5 = vor.u32 %v8824_v54, %v6843_v52  ;;  %v6700_v54 = vor.u32 %v8788_v25, %v6699_v41  ;;  %v8822_v41 = vld [vmem:[#allocation10 + $0x2ac] sm:$0xf]  ;;  %v6845_v25 = vld [vmem:[#allocation10 + $0x2b8] sm:$0xf0] }
 0x157   :  { %2412 = vmatpush.bf16.msrb.mxu0 %v6588_v43  ;;  %v6988_v43 = vor.u32 %v8860_v39, %v6987_v38  ;;  %v8844_v38 = vld [vmem:[#allocation10 + $0x354] sm:$0xf0] }
 0x158   :  { %2389 = vmatpush.bf16.msrb.mxu2 %v6792_v60  ;;  %2402 = vmatpush.bf16.msrb.mxu3 %v6920_v0  ;;  %v8800_v60 = vld [vmem:[#allocation10 + $0x1f4] sm:$0xf0]  ;;  %v6624_v0 = vor.u32 %v8766_v48, %v6621_v49  ;;  %v6924_v47 = vor.u32 %v8844_v38, %v6923_v37  ;;  %v8750_v48 = vld [vmem:[#allocation10 + $0x6c] sm:$0xf]  ;;  %v6557_v49 = vld [vmem:[#allocation10 + $0x78] sm:$0xf0] }
 0x159   :  { %2374 = vmatpush.bf16.msra.mxu1 %v6696_v7  ;;  %v8762_v7 = vld [vmem:[#allocation10 + $0xcc] sm:$0xf] }
 0x15a   :  { %v6608_v3 = vor.u32 %v8762_v7, %v6605_v8  ;;  %v6541_v7 = vld [vmem:[#allocation10 + $0x58] sm:$0xf0]  ;;  %v6763_v8 = vld [vmem:[#allocation10 + $0x208] sm:$0xf] }
 0x15b   :  { %2413 = vmatpush.bf16.msrb.mxu0 %v6572_v24  ;;  %v10012_v26 = vpop.f32.mrf.mxu0  ;;  %v6747_v24 = vld [vmem:[#allocation10 + $0x1e8] sm:$0xf] }
 0x15c   :  { %2390 = vmatpush.bf16.msrb.mxu2 %v6776_v21  ;;  %2403 = vmatpush.bf16.msrb.mxu3 %v6904_v15  ;;  %v6748_v10 = vor.u32 %v8800_v60, %v6747_v24  ;;  %v8796_v21 = vld [vmem:[#allocation10 + $0x1d4] sm:$0xf0]  ;;  %v6560_v60 = vor.u32 %v8750_v48, %v6557_v49 }
 0x15d   :  { %2375 = vmatpush.bf16.msra.mxu1 %v6680_v18  ;;  %v6589_v18 = vld [vmem:[#allocation10 + $0xb8] sm:$0xf0]  ;;  %v6732_v44 = vor.u32 %v8796_v21, %v6731_v14  ;;  %v8784_v24 = vld [vmem:[#allocation10 + $0x174] sm:$0xf0] }
 0x15e   :  { %v6877_v21 = vld [vmem:[#allocation10 + $0x2f8] sm:$0xf0]  ;;  %v8772_v49 = vld [vmem:[#allocation10 + $0x114] sm:$0xf0] }
 0x15f   :  { %2414 = vmatpush.bf16.msrb.mxu0 %v6556_v13  ;;  %v8852_v13 = vld [vmem:[#allocation10 + $0x394] sm:$0xf0] }
 0x160   :  { %2391 = vmatpush.bf16.msrb.mxu2 %v6760_v1  ;;  %2404 = vmatpush.bf16.msrb.mxu3 %v6888_v30  ;;  %v6956_v61 = vor.u32 %v8852_v13, %v6955_v12  ;;  %v6592_v1 = vor.u32 %v8758_v17, %v6589_v18  ;;  %v6812_v30 = vor.u32 %v8816_v20, %v6811_v19  ;;  %v8836_v12 = vld [vmem:[#allocation10 + $0x314] sm:$0xf0]  ;;  %v8830_v13 = vld [vmem:[#allocation10 + $0x2ec] sm:$0xf]  ;;  %v6667_v17 = vld [vmem:[#allocation10 + $0x148] sm:$0xf] }
 0x161   :  { %2376 = vmatpush.bf16.msra.mxu1 %v6664_v36  ;;  %v8812_v36 = vld [vmem:[#allocation10 + $0x254] sm:$0xf0]  ;;  %v6764_v19 = vor.u32 %v8804_v9, %v6763_v8  ;;  %v6880_v20 = vor.u32 %v8830_v13, %v6877_v21  ;;  %v6733_v13 = vld [vmem:[#allocation10 + $0x1d8] sm:$0xf0] }
 0x162   :  { %v8780_v18 = vld [vmem:[#allocation10 + $0x154] sm:$0xf0] }
 0x163   :  { %2415 = vmatpush.bf16.msrb.mxu0 %v6540_v28  ;;  %2392 = vmatmul.bf16.vlgmr.msrb.gmra.mxu2 %v9999_v2  ;;  %v1521_v15 = vpop.f32.mrf.mxu0  ;;  %v6715_v28 = vld [vmem:[#allocation10 + $0x1a8] sm:$0xf] }
 0x164   :  { %2436 = vmatpush.bf16.msra.mxu2 %v6876_v31  ;;  %2449 = vmatpush.bf16.msra.mxu3 %v7004_v32  ;;  %v6940_v31 = vor.u32 %v8848_v23, %v6939_v22  ;;  %v8754_v32 = vld [vmem:[#allocation10 + $0x8c] sm:$0xf]  ;;  %v6716_v35 = vor.u32 %v8792_v29, %v6715_v28  ;;  %v6668_v29 = vor.u32 %v8780_v18, %v6667_v17 }
 0x165   :  { %2405 = vmatmul.bf16.vlgmr.msrb.gmra.mxu3 %v10001_v4  ;;  %2377 = vmatpush.bf16.msra.mxu1 %v6648_v51  ;;  %v1493_v27 = vpop.f32.mrf.mxu2  ;;  %v6779_v51 = vld [vmem:[#allocation10 + $0x228] sm:$0xf]  ;;  %v8862_v15 = vld [vmem:[#allocation10 + $0x3ec] sm:$0xf] }
 0x166   :  { %v1506_v62 = vpop.f32.mrf.mxu3  ;;  %v8742_v23 = vld [vmem:[#allocation10 + $0x2c] sm:$0xf] }
 0x167   :  { %2416 = vmatpush.bf16.msrb.mxu0 %v6524_v45  ;;  %v8826_v28 = vld [vmem:[#allocation10 + $0x2cc] sm:$0xf] }
 0x168   :  { %2437 = vmatpush.bf16.msra.mxu2 %v6860_v46  ;;  %2450 = vmatpush.bf16.msra.mxu3 %v6988_v43  ;;  %v1480_v39 = vpop.f32.mrf.mxu1  ;;  %v6576_v46 = vor.u32 %v8754_v32, %v6573_v33  ;;  %v6796_v43 = vor.u32 %v8812_v36, %v6795_v34  ;;  %v6651_v33 = vld [vmem:[#allocation10 + $0x128] sm:$0xf]  ;;  %v8776_v34 = vld [vmem:[#allocation10 + $0x134] sm:$0xf0]  ;;  %v8738_v36 = vld [vmem:[#allocation10 + $0xc] sm:$0xf] }
 0x169   :  { %2378 = vmatpush.bf16.msra.mxu1 %v6632_v6  ;;  %v1481_v45 = vadd.f32 %v1480_v39, %v10010_v53  ;;  %v6908_v6 = vor.u32 %v8840_v58, %v6907_v56  ;;  %v6509_v39 = vld [vmem:[#allocation10 + $0x18] sm:$0xf0]  ;;  %v8798_v56 = vld [vmem:[#allocation10 + $0x1ec] sm:$0xf] }
 0x16a   :  { %v6749_v58 = vld [vmem:[#allocation10 + $0x1f8] sm:$0xf0] }
 0x16b   :  { %2417 = vmatpush.bf16.msrb.mxu0 %v6508_v63  ;;  %v10019_v42 = vpop.f32.mrf.mxu0  ;;  %v1494_v52 = vadd.f32 %v1493_v27, %v1481_v45  ;;  %v6683_v63 = vld [vmem:[#allocation10 + $0x168] sm:$0xf]  ;;  %v6525_v27 = vld [vmem:[#allocation10 + $0x38] sm:$0xf0]  ;;  %v6652_v45 = vor.u32 %v8776_v34, %v6651_v33  ;;  %v6752_v9 = vor.u32 %v8798_v56, %v6749_v58  ;;  %v7075_v34 = vld [vmem:[#allocation13 + $0x80] sm:$0xf] }
 0x16c   :  { %2438 = vmatpush.bf16.msra.mxu2 %v6844_v5  ;;  %2451 = vmatpush.bf16.msra.mxu3 %v6972_v57  ;;  %v6780_v57 = vor.u32 %v8808_v55, %v6779_v51  ;;  %v7123_v51 = vld [vmem:[#allocation13 + $0xe0] sm:$0xf]  ;;  %v6512_v55 = vor.u32 %v8738_v36, %v6509_v39  ;;  %v6925_v33 = vld [vmem:[#allocation10 + $0x358] sm:$0xf0] }
 0x16d   :  { %2423 = vmatpush.bf16.msrb.mxu1 %v6748_v10  ;;  %v1495_v59 = vpop.f32.mrf.mxu2  ;;  %v10021_v5 = vadd.f32 %v1506_v62, %v1494_v52  ;;  %v6684_v10 = vor.u32 %v8784_v24, %v6683_v63  ;;  %v9023_v52 = vld [vmem:[#allocation13 + $0xec] sm:$0xf0]  ;;  %v6701_v39 = vld [vmem:[#allocation10 + $0x198] sm:$0xf0] }
 0x16e   :  { %2418 = vmatmul.bf16.vlgmr.msrb.gmra.mxu0 %v9990_v50  ;;  %2379 = vmatmul.bf16.vlgmr.msra.gmra.mxu1 %v10006_v40  ;;  %v1508_v53 = vpop.f32.mrf.mxu3  ;;  %v6848_v59 = vor.u32 %v8822_v41, %v6845_v25  ;;  %v6685_v56 = vld [vmem:[#allocation10 + $0x178] sm:$0xf0] }
 0x16f   :  { %2462 = vmatpush.bf16.msra.mxu0 %v6624_v0  ;;  %v8746_v0 = vld [vmem:[#allocation10 + $0x4c] sm:$0xf] }
 0x170   :  { %2439 = vmatpush.bf16.msra.mxu2 %v6828_v16  ;;  %2452 = vmatpush.bf16.msra.mxu3 %v6956_v61  ;;  %v1482_v14 = vpop.f32.mrf.mxu1  ;;  %v6544_v61 = vor.u32 %v8746_v0, %v6541_v7  ;;  %v8818_v0 = vld [vmem:[#allocation10 + $0x28c] sm:$0xf]  ;;  %v7124_v7 = vor.u32 %v9023_v52, %v7123_v51  ;;  %v7059_v51 = vld [vmem:[#allocation13 + $0x60] sm:$0xf]  ;;  %v9007_v52 = vld [vmem:[#allocation13 + $0x6c] sm:$0xf0] }
 0x171   :  { %2424 = vmatpush.bf16.msrb.mxu1 %v6732_v44  ;;  %v6892_v44 = vor.u32 %v8836_v12, %v6891_v11  ;;  %v7107_v11 = vld [vmem:[#allocation13 + $0xc0] sm:$0xf]  ;;  %v8794_v12 = vld [vmem:[#allocation10 + $0x1cc] sm:$0xf] }
 0x173   :  { %2463 = vmatpush.bf16.msra.mxu0 %v6608_v3  ;;  %v7005_v3 = vld [vmem:[#allocation10 + $0x3f8] sm:$0xf0]  ;;  %v1573_v16 = vpop.f32.mrf.mxu0 }
 0x174   :  { %2440 = vmatpush.bf16.msra.mxu2 %v6812_v30  ;;  %2453 = vmatpush.bf16.msra.mxu3 %v6940_v31  ;;  %v7008_v22 = vor.u32 %v8862_v15, %v7005_v3  ;;  %v8858_v30 = vld [vmem:[#allocation10 + $0x3cc] sm:$0xf]  ;;  %v6989_v31 = vld [vmem:[#allocation10 + $0x3d8] sm:$0xf0] }
 0x175   :  { %2425 = vmatpush.bf16.msrb.mxu1 %v6716_v35  ;;  %v1545_v62 = vpop.f32.mrf.mxu2  ;;  %v6528_v35 = vor.u32 %v8742_v23, %v6525_v27  ;;  %v6992_v38 = vor.u32 %v8858_v30, %v6989_v31  ;;  %v8814_v3 = vld [vmem:[#allocation10 + $0x26c] sm:$0xf]  ;;  %v6813_v16 = vld [vmem:[#allocation10 + $0x278] sm:$0xf0] }
 0x176   :  { %v1558_v32 = vpop.f32.mrf.mxu3  ;;  %v8790_v23 = vld [vmem:[#allocation10 + $0x1ac] sm:$0xf]  ;;  %v6717_v27 = vld [vmem:[#allocation10 + $0x1b8] sm:$0xf0] }
 0x177   :  { %2464 = vmatpush.bf16.msra.mxu0 %v6592_v1  ;;  %v6861_v1 = vld [vmem:[#allocation10 + $0x2d8] sm:$0xf0]  ;;  %v8842_v30 = vld [vmem:[#allocation10 + $0x34c] sm:$0xf] }
 0x178   :  { %2441 = vmatpush.bf16.msra.mxu2 %v6796_v43  ;;  %2454 = vmatpush.bf16.msra.mxu3 %v6924_v47  ;;  %v6864_v37 = vor.u32 %v8826_v28, %v6861_v1  ;;  %v6973_v43 = vld [vmem:[#allocation10 + $0x3b8] sm:$0xf0]  ;;  %v6635_v47 = vld [vmem:[#allocation10 + $0x108] sm:$0xf]  ;;  %v1532_v48 = vpop.f32.mrf.mxu1  ;;  %v6816_v28 = vor.u32 %v8814_v3, %v6813_v16  ;;  %v6928_v25 = vor.u32 %v8842_v30, %v6925_v33  ;;  %v7251_v30 = vld [vmem:[#allocation13 + $0x1e0] sm:$0xf] }
 0x179   :  { %2426 = vmatpush.bf16.msrb.mxu1 %v6700_v54  ;;  %v1533_v54 = vadd.f32 %v1532_v48, %v10012_v26  ;;  %v6636_v53 = vor.u32 %v8772_v49, %v6635_v47  ;;  %v9019_v26 = vld [vmem:[#allocation13 + $0xcc] sm:$0xf0]  ;;  %v6797_v1 = vld [vmem:[#allocation10 + $0x258] sm:$0xf0] }
 0x17a   :  { %v7108_v17 = vor.u32 %v9019_v26, %v7107_v11  ;;  %v6909_v49 = vld [vmem:[#allocation10 + $0x338] sm:$0xf0] }
 0x17b   :  { %2465 = vmatpush.bf16.msra.mxu0 %v6576_v46  ;;  %v8854_v46 = vld [vmem:[#allocation10 + $0x3ac] sm:$0xf]  ;;  %v1546_v24 = vadd.f32 %v1545_v62, %v1533_v54 }
 0x17c   :  { %2442 = vmatpush.bf16.msra.mxu2 %v6780_v57  ;;  %2455 = vmatpush.bf16.msra.mxu3 %v6908_v6  ;;  %v6976_v63 = vor.u32 %v8854_v46, %v6973_v43  ;;  %v6829_v57 = vld [vmem:[#allocation10 + $0x298] sm:$0xf0]  ;;  %v8850_v6 = vld [vmem:[#allocation10 + $0x38c] sm:$0xf] }
 0x17d   :  { %2427 = vmatpush.bf16.msrb.mxu1 %v6684_v10  ;;  %v6957_v10 = vld [vmem:[#allocation10 + $0x398] sm:$0xf0]  ;;  %v10026_v14 = vadd.f32 %v1558_v32, %v1546_v24  ;;  %v6832_v21 = vor.u32 %v8818_v0, %v6829_v57  ;;  %v8810_v62 = vld [vmem:[#allocation10 + $0x24c] sm:$0xf]  ;;  %v6720_v32 = vor.u32 %v8790_v23, %v6717_v27  ;;  %v7060_v0 = vor.u32 %v9007_v52, %v7059_v51  ;;  %v7011_v27 = vld [vmem:[#allocation13] sm:$0xf] }
 0x17e   :  { %v1560_v8 = vpop.f32.mrf.mxu3  ;;  %v6960_v15 = vor.u32 %v8850_v6, %v6957_v10  ;;  %v6800_v41 = vor.u32 %v8810_v62, %v6797_v1  ;;  %v6781_v46 = vld [vmem:[#allocation10 + $0x238] sm:$0xf0]  ;;  %v8838_v43 = vld [vmem:[#allocation10 + $0x32c] sm:$0xf]  ;;  %v9003_v10 = vld [vmem:[#allocation13 + $0x4c] sm:$0xf0] }
 0x17f   :  { %2466 = vmatpush.bf16.msra.mxu0 %v6560_v60  ;;  %v1547_v60 = vpop.f32.mrf.mxu2  ;;  %v8802_v24 = vld [vmem:[#allocation10 + $0x20c] sm:$0xf]  ;;  %v6893_v8 = vld [vmem:[#allocation10 + $0x318] sm:$0xf0]  ;;  %v9021_v62 = vld [vmem:[#allocation13 + $0xe4] sm:$0xf] }
 0x180   :  { %2443 = vmatpush.bf16.msra.mxu2 %v6764_v19  ;;  %2456 = vmatpush.bf16.msra.mxu3 %v6892_v44  ;;  %v1534_v18 = vpop.f32.mrf.mxu1  ;;  %v6736_v19 = vor.u32 %v8794_v12, %v6733_v13  ;;  %v6941_v44 = vld [vmem:[#allocation10 + $0x378] sm:$0xf0]  ;;  %v8834_v60 = vld [vmem:[#allocation10 + $0x30c] sm:$0xf]  ;;  %v7125_v1 = vld [vmem:[#allocation13 + $0xf0] sm:$0xf0] }
 0x181   :  { %2428 = vmatpush.bf16.msrb.mxu1 %v6668_v29  ;;  %v8778_v12 = vld [vmem:[#allocation10 + $0x14c] sm:$0xf]  ;;  %v6669_v13 = vld [vmem:[#allocation10 + $0x158] sm:$0xf0]  ;;  %v7128_v33 = vor.u32 %v9021_v62, %v7125_v1  ;;  %v9009_v51 = vld [vmem:[#allocation13 + $0x84] sm:$0xf] }
 0x182   :  { %v6672_v16 = vor.u32 %v8778_v12, %v6669_v13  ;;  %v8770_v23 = vld [vmem:[#allocation10 + $0x10c] sm:$0xf]  ;;  %v7077_v52 = vld [vmem:[#allocation13 + $0x90] sm:$0xf0]  ;;  %v9035_v12 = vld [vmem:[#allocation13 + $0x14c] sm:$0xf0] }
 0x183   :  { %2467 = vmatpush.bf16.msra.mxu0 %v6544_v61  ;;  %2444 = vmatmul.bf16.vlgmr.msra.gmra.mxu2 %v9999_v2  ;;  %v8846_v61 = vld [vmem:[#allocation10 + $0x36c] sm:$0xf]  ;;  %v7013_v62 = vld [vmem:[#allocation13 + $0x10] sm:$0xf0] }
 0x184   :  { %2488 = vmatpush.bf16.msrb.mxu2 %v6880_v20  ;;  %2501 = vmatpush.bf16.msrb.mxu3 %v7008_v22  ;;  %v7091_v20 = vld [vmem:[#allocation13 + $0xa0] sm:$0xf]  ;;  %v9015_v22 = vld [vmem:[#allocation13 + $0xac] sm:$0xf0]  ;;  %v6944_v29 = vor.u32 %v8846_v61, %v6941_v44  ;;  %v6653_v44 = vld [vmem:[#allocation10 + $0x138] sm:$0xf0] }
 0x185   :  { %2457 = vmatmul.bf16.vlgmr.msra.gmra.mxu3 %v10001_v4  ;;  %2429 = vmatpush.bf16.msrb.mxu1 %v6652_v45  ;;  %v7092_v31 = vor.u32 %v9015_v22, %v7091_v20  ;;  %v8806_v45 = vld [vmem:[#allocation10 + $0x22c] sm:$0xf]  ;;  %v7027_v61 = vld [vmem:[#allocation13 + $0x20] sm:$0xf] }
 0x187   :  { %2468 = vmatpush.bf16.msra.mxu0 %v6528_v35  ;;  %v9011_v35 = vld [vmem:[#allocation13 + $0x8c] sm:$0xf0] }
 0x188   :  { %2489 = vmatpush.bf16.msrb.mxu2 %v6864_v37  ;;  %2502 = vmatpush.bf16.msrb.mxu3 %v6992_v38  ;;  %v1610_v36 = vpop.f32.mrf.mxu3  ;;  %v8786_v38 = vld [vmem:[#allocation10 + $0x18c] sm:$0xf]  ;;  %v7076_v47 = vor.u32 %v9011_v35, %v7075_v34  ;;  %v9017_v35 = vld [vmem:[#allocation13 + $0xc4] sm:$0xf] }
 0x189   :  { %2430 = vmatpush.bf16.msrb.mxu1 %v6636_v53  ;;  %v6704_v48 = vor.u32 %v8786_v38, %v6701_v39  ;;  %v6765_v53 = vld [vmem:[#allocation10 + $0x218] sm:$0xf0]  ;;  %v7235_v38 = vld [vmem:[#allocation13 + $0x1c0] sm:$0xf]  ;;  %v9051_v39 = vld [vmem:[#allocation13 + $0x1cc] sm:$0xf0] }
 0x18b   :  { %2469 = vmatpush.bf16.msra.mxu0 %v6512_v55  ;;  %v10030_v37 = vpop.f32.mrf.mxu0  ;;  %v1584_v54 = vpop.f32.mrf.mxu1  ;;  %v8782_v55 = vld [vmem:[#allocation10 + $0x16c] sm:$0xf] }
 0x18c   :  { %2490 = vmatpush.bf16.msrb.mxu2 %v6848_v59  ;;  %2503 = vmatpush.bf16.msrb.mxu3 %v6976_v63  ;;  %v1585_v58 = vadd.f32 %v1584_v54, %v10019_v42  ;;  %v6784_v59 = vor.u32 %v8806_v45, %v6781_v46  ;;  %v6912_v63 = vor.u32 %v8838_v43, %v6909_v49  ;;  %v7219_v45 = vld [vmem:[#allocation13 + $0x1a0] sm:$0xf]  ;;  %v9047_v46 = vld [vmem:[#allocation13 + $0x1ac] sm:$0xf0] }
 0x18d   :  { %2475 = vmatpush.bf16.msra.mxu1 %v6752_v9  ;;  %v7043_v9 = vld [vmem:[#allocation13 + $0x40] sm:$0xf]  ;;  %v6768_v42 = vor.u32 %v8802_v24, %v6765_v53  ;;  %v7220_v49 = vor.u32 %v9047_v46, %v7219_v45  ;;  %v9005_v24 = vld [vmem:[#allocation13 + $0x64] sm:$0xf]  ;;  %v7061_v53 = vld [vmem:[#allocation13 + $0x70] sm:$0xf0] }
 0x18e   :  { %2470 = vmatmul.bf16.vlgmr.msra.gmra.mxu0 %v9990_v50  ;;  %2431 = vmatmul.bf16.vlgmr.msrb.gmra.mxu1 %v10006_v40  ;;  %v1597_v50 = vpop.f32.mrf.mxu2  ;;  %v7044_v3 = vor.u32 %v9003_v10, %v7043_v9  ;;  %v7203_v54 = vld [vmem:[#allocation13 + $0x180] sm:$0xf]  ;;  %v9001_v10 = vld [vmem:[#allocation13 + $0x44] sm:$0xf] }
 0x18f   :  { %3298 = vmatpush.bf16.msrb.mxu0 %v7124_v7  ;;  %v1598_v57 = vadd.f32 %v1597_v50, %v1585_v58  ;;  %v6688_v7 = vor.u32 %v8782_v55, %v6685_v56  ;;  %v9043_v55 = vld [vmem:[#allocation13 + $0x18c] sm:$0xf0]  ;;  %v7080_v58 = vor.u32 %v9009_v51, %v7077_v52 }
 0x190   :  { %2491 = vmatpush.bf16.msrb.mxu2 %v6832_v21  ;;  %2504 = vmatpush.bf16.msrb.mxu3 %v6960_v15  ;;  %v1612_v11 = vpop.f32.mrf.mxu3  ;;  %v6896_v15 = vor.u32 %v8834_v60, %v6893_v8  ;;  %v7187_v60 = vld [vmem:[#allocation13 + $0x160] sm:$0xf]  ;;  %v9071_v51 = vld [vmem:[#allocation13 + $0x26c] sm:$0xf0] }
 0x191   :  { %2476 = vmatpush.bf16.msra.mxu1 %v6736_v19  ;;  %v10033_v21 = vadd.f32 %v1610_v36, %v1598_v57  ;;  %v8774_v19 = vld [vmem:[#allocation10 + $0x12c] sm:$0xf]  ;;  %v7109_v36 = vld [vmem:[#allocation13 + $0xd0] sm:$0xf0] }
 0x192   :  { %v6656_v22 = vor.u32 %v8774_v19, %v6653_v44  ;;  %v7045_v11 = vld [vmem:[#allocation13 + $0x50] sm:$0xf0]  ;;  %v7379_v19 = vld [vmem:[#allocation13 + $0x2e0] sm:$0xf]  ;;  %v9087_v44 = vld [vmem:[#allocation13 + $0x2ec] sm:$0xf0] }
 0x193   :  { %3299 = vmatpush.bf16.msrb.mxu0 %v7108_v17  ;;  %v1625_v26 = vpop.f32.mrf.mxu0  ;;  %v8999_v17 = vld [vmem:[#allocation13 + $0x2c] sm:$0xf0]  ;;  %v1586_v18 = vpop.f32.mrf.mxu1 }
 0x194   :  { %2492 = vmatpush.bf16.msrb.mxu2 %v6816_v28  ;;  %2505 = vmatpush.bf16.msrb.mxu3 %v6944_v29  ;;  %v7028_v20 = vor.u32 %v8999_v17, %v7027_v61  ;;  %v8995_v28 = vld [vmem:[#allocation13 + $0xc] sm:$0xf0]  ;;  %v6637_v29 = vld [vmem:[#allocation10 + $0x118] sm:$0xf0]  ;;  %v7171_v26 = vld [vmem:[#allocation13 + $0x140] sm:$0xf] }
 0x195   :  { %2477 = vmatpush.bf16.msra.mxu1 %v6720_v32  ;;  %v7012_v50 = vor.u32 %v8995_v28, %v7011_v27  ;;  %v6640_v32 = vor.u32 %v8770_v23, %v6637_v29  ;;  %v8997_v61 = vld [vmem:[#allocation13 + $0x24] sm:$0xf]  ;;  %v7029_v17 = vld [vmem:[#allocation13 + $0x30] sm:$0xf0]  ;;  %v9031_v18 = vld [vmem:[#allocation13 + $0x12c] sm:$0xf0] }
 0x196   :  { %v1599_v6 = vpop.f32.mrf.mxu2  ;;  %v7363_v23 = vld [vmem:[#allocation13 + $0x2c0] sm:$0xf]  ;;  %v9083_v27 = vld [vmem:[#allocation13 + $0x2cc] sm:$0xf0]  ;;  %v8993_v29 = vld [vmem:[#allocation13 + $0x4] sm:$0xf] }
 0x197   :  { %3300 = vmatpush.bf16.msrb.mxu0 %v7092_v31  ;;  %v9055_v31 = vld [vmem:[#allocation13 + $0x1ec] sm:$0xf0]  ;;  %v7064_v6 = vor.u32 %v9005_v24, %v7061_v53  ;;  %v7364_v1 = vor.u32 %v9083_v27, %v7363_v23  ;;  %v9029_v23 = vld [vmem:[#allocation13 + $0x124] sm:$0xf]  ;;  %v7157_v27 = vld [vmem:[#allocation13 + $0x130] sm:$0xf0] }
 0x198   :  { %2493 = vmatpush.bf16.msrb.mxu2 %v6800_v41  ;;  %2506 = vmatpush.bf16.msrb.mxu3 %v6928_v25  ;;  %v7252_v34 = vor.u32 %v9055_v31, %v7251_v30  ;;  %v7236_v41 = vor.u32 %v9051_v39, %v7235_v38  ;;  %v9013_v25 = vld [vmem:[#allocation13 + $0xa4] sm:$0xf]  ;;  %v7139_v30 = vld [vmem:[#allocation13 + $0x100] sm:$0xf]  ;;  %v9027_v31 = vld [vmem:[#allocation13 + $0x10c] sm:$0xf0] }
 0x199   :  { %2478 = vmatpush.bf16.msra.mxu1 %v6704_v48 }
 0x19b   :  { %3301 = vmatpush.bf16.msrb.mxu0 %v7076_v47 }
 0x19c   :  { %2494 = vmatpush.bf16.msrb.mxu2 %v6784_v59  ;;  %2507 = vmatpush.bf16.msrb.mxu3 %v6912_v63  ;;  %v7204_v63 = vor.u32 %v9043_v55, %v7203_v54  ;;  %v9041_v55 = vld [vmem:[#allocation13 + $0x184] sm:$0xf] }
 0x19d   :  { %2479 = vmatpush.bf16.msra.mxu1 %v6688_v7 }
 0x19f   :  { %3302 = vmatpush.bf16.msrb.mxu0 %v7060_v0  ;;  %v9039_v0 = vld [vmem:[#allocation13 + $0x16c] sm:$0xf0] }
 0x1a0   :  { %2495 = vmatpush.bf16.msrb.mxu2 %v6768_v42  ;;  %2508 = vmatpush.bf16.msrb.mxu3 %v6896_v15  ;;  %v7188_v9 = vor.u32 %v9039_v0, %v7187_v60  ;;  %v7048_v15 = vor.u32 %v9001_v10, %v7045_v11  ;;  %v9067_v60 = vld [vmem:[#allocation13 + $0x24c] sm:$0xf0]  ;;  %v9437_v10 = vld [vmem:[#allocation19] sm:$0xff] }
 0x1a1   :  { %2480 = vmatpush.bf16.msra.mxu1 %v6672_v16  ;;  %v7155_v16 = vld [vmem:[#allocation13 + $0x120] sm:$0xf]  ;;  %v2514_v11 = vperm.slane %v9437_v10, 2  ;;  %v7067_v10 = vld [vmem:[#allocation13 + $0x68] sm:$0xf] }
 0x1a2   :  { %v7156_v28 = vor.u32 %v9031_v18, %v7155_v16 }
 0x1a3   :  { %3303 = vmatpush.bf16.msrb.mxu0 %v7044_v3  ;;  %2496 = vmatmul.bf16.vlgmr.msrb.gmra.mxu2 %v9999_v2  ;;  %v7112_v2 = vor.u32 %v9017_v35, %v7109_v36  ;;  %v7016_v35 = vor.u32 %v8993_v29, %v7013_v62  ;;  %v7140_v36 = vor.u32 %v9027_v31, %v7139_v30  ;;  %v9119_v30 = vld [vmem:[#allocation13 + $0x3ec] sm:$0xf0]  ;;  %v9085_v31 = vld [vmem:[#allocation13 + $0x2e4] sm:$0xf] }
 0x1a4   :  { %2509 = vmatmul.bf16.vlgmr.msrb.gmra.mxu3 %v10001_v4  ;;  %v7093_v4 = vld [vmem:[#allocation13 + $0xb0] sm:$0xf0] }
 0x1a5   :  { %2481 = vmatpush.bf16.msra.mxu1 %v6656_v22  ;;  %v7096_v43 = vor.u32 %v9013_v25, %v7093_v4  ;;  %v7032_v22 = vor.u32 %v8997_v61, %v7029_v17  ;;  %v7331_v25 = vld [vmem:[#allocation13 + $0x280] sm:$0xf]  ;;  %v9075_v4 = vld [vmem:[#allocation13 + $0x28c] sm:$0xf0]  ;;  %v7131_v61 = vld [vmem:[#allocation13 + $0xe8] sm:$0xf] }
 0x1a6   :  { %v1649_v47 = vpop.f32.mrf.mxu2  ;;  %v7332_v45 = vor.u32 %v9075_v4, %v7331_v25  ;;  %v9024_v17 = vld [vmem:[#allocation13 + $0xf4] sm:$0xf0]  ;;  %v9025_v4 = vld [vmem:[#allocation13 + $0x104] sm:$0xf] }
 0x1a7   :  { %3304 = vmatpush.bf16.msrb.mxu0 %v7028_v20  ;;  %v7380_v20 = vor.u32 %v9087_v44, %v7379_v19  ;;  %v7267_v19 = vld [vmem:[#allocation13 + $0x200] sm:$0xf]  ;;  %v9059_v44 = vld [vmem:[#allocation13 + $0x20c] sm:$0xf0]  ;;  %v7132_v62 = vor.u32 %v9024_v17, %v7131_v61 }
 0x1a8   :  { %v1662_v48 = vpop.f32.mrf.mxu3 }
 0x1a9   :  { %2482 = vmatpush.bf16.msra.mxu1 %v6640_v32  ;;  %3324 = vmatpush.bf16.msra.mxu2 %v7380_v20  ;;  %v7253_v32 = vld [vmem:[#allocation13 + $0x1f0] sm:$0xf0] }
 0x1ab   :  { %3305 = vmatpush.bf16.msrb.mxu0 %v7012_v50  ;;  %v10038_v56 = vpop.f32.mrf.mxu0  ;;  %v1636_v59 = vpop.f32.mrf.mxu1  ;;  %v9053_v50 = vld [vmem:[#allocation13 + $0x1e4] sm:$0xf] }
 0x1ac   :  { %2483 = vmatmul.bf16.vlgmr.msra.gmra.mxu1 %v10006_v40  ;;  %v1637_v40 = vadd.f32 %v1636_v59, %v10030_v37  ;;  %v7172_v37 = vor.u32 %v9035_v12, %v7171_v26  ;;  %v7256_v39 = vor.u32 %v9053_v50, %v7253_v32  ;;  %v2316_v24 = vadd.f32 %v10038_v56, %v10021_v5  ;;  %v7283_v12 = vld [vmem:[#allocation13 + $0x220] sm:$0xf]  ;;  %v9033_v5 = vld [vmem:[#allocation13 + $0x144] sm:$0xf]  ;;  %v7173_v56 = vld [vmem:[#allocation13 + $0x150] sm:$0xf0] }
 0x1ad   :  { %3311 = vmatpush.bf16.msrb.mxu1 %v7252_v34  ;;  %v9079_v34 = vld [vmem:[#allocation13 + $0x2ac] sm:$0xf0]  ;;  %3325 = vmatpush.bf16.msra.mxu2 %v7364_v1  ;;  %v7507_v1 = vld [vmem:[#allocation13 + $0x3e0] sm:$0xf]  ;;  %v7115_v32 = vld [vmem:[#allocation13 + $0xc8] sm:$0xf] }
 0x1ae   :  { %v1650_v57 = vadd.f32 %v1649_v47, %v1637_v40  ;;  %v1651_v7 = vpop.f32.mrf.mxu2  ;;  %v7221_v47 = vld [vmem:[#allocation13 + $0x1b0] sm:$0xf0]  ;;  %v7299_v40 = vld [vmem:[#allocation13 + $0x240] sm:$0xf] }
 0x1af   :  { %3350 = vmatpush.bf16.msra.mxu0 %v7128_v33  ;;  %v7347_v33 = vld [vmem:[#allocation13 + $0x2a0] sm:$0xf]  ;;  %v7300_v7 = vor.u32 %v9067_v60, %v7299_v40  ;;  %v9012_v40 = vld [vmem:[#allocation13 + $0x94] sm:$0xf0] }
 0x1b0   :  { %v1664_v8 = vpop.f32.mrf.mxu3  ;;  %v10041_v13 = vadd.f32 %v1662_v48, %v1650_v57  ;;  %v7348_v38 = vor.u32 %v9079_v34, %v7347_v33  ;;  %v9037_v57 = vld [vmem:[#allocation13 + $0x164] sm:$0xf]  ;;  %v9020_v33 = vld [vmem:[#allocation13 + $0xd4] sm:$0xf0]  ;;  %v7508_v34 = vor.u32 %v9119_v30, %v7507_v1  ;;  %v7301_v30 = vld [vmem:[#allocation13 + $0x250] sm:$0xf0] }
 0x1b1   :  { %3312 = vmatpush.bf16.msrb.mxu1 %v7236_v41  ;;  %v7237_v41 = vld [vmem:[#allocation13 + $0x1d0] sm:$0xf0]  ;;  %v7116_v25 = vor.u32 %v9020_v33, %v7115_v32 }
 0x1b2   :  { %3326 = vmatpush.bf16.msra.mxu2 %v7348_v38  ;;  %v7160_v38 = vor.u32 %v9029_v23, %v7157_v27  ;;  %3337 = vmatpush.bf16.msra.mxu3 %v7508_v34  ;;  %v9099_v23 = vld [vmem:[#allocation13 + $0x34c] sm:$0xf0]  ;;  %v9065_v27 = vld [vmem:[#allocation13 + $0x244] sm:$0xf]  ;;  %v9438_v34 = vld [vmem:[#allocation19 + $0x8] sm:$0xff] }
 0x1b3   :  { %3351 = vmatpush.bf16.msra.mxu0 %v7112_v2  ;;  %v2317_v42 = vpop.f32.mrf.mxu0  ;;  %v1638_v3 = vpop.f32.mrf.mxu1  ;;  %v9049_v2 = vld [vmem:[#allocation13 + $0x1c4] sm:$0xf]  ;;  %v7304_v32 = vor.u32 %v9065_v27, %v7301_v30  ;;  %v9044_v30 = vld [vmem:[#allocation13 + $0x194] sm:$0xf0] }
 0x1b4   :  { %v7240_v46 = vor.u32 %v9049_v2, %v7237_v41  ;;  %v9063_v42 = vld [vmem:[#allocation13 + $0x22c] sm:$0xf0]  ;;  %v9081_v41 = vld [vmem:[#allocation13 + $0x2c4] sm:$0xf] }
 0x1b5   :  { %3313 = vmatpush.bf16.msrb.mxu1 %v7220_v49  ;;  %v7315_v49 = vld [vmem:[#allocation13 + $0x260] sm:$0xf]  ;;  %v9115_v2 = vld [vmem:[#allocation13 + $0x3cc] sm:$0xf0] }
 0x1b6   :  { %3327 = vmatpush.bf16.msra.mxu2 %v7332_v45  ;;  %v7316_v59 = vor.u32 %v9071_v51, %v7315_v49  ;;  %v7141_v45 = vld [vmem:[#allocation13 + $0x110] sm:$0xf0]  ;;  %v7475_v51 = vld [vmem:[#allocation13 + $0x3a0] sm:$0xf] }
 0x1b7   :  { %3352 = vmatpush.bf16.msra.mxu0 %v7096_v43  ;;  %v9045_v43 = vld [vmem:[#allocation13 + $0x1a4] sm:$0xf] }
 0x1b8   :  { %v7224_v48 = vor.u32 %v9045_v43, %v7221_v47  ;;  %v7365_v43 = vld [vmem:[#allocation13 + $0x2d0] sm:$0xf0]  ;;  %v7099_v47 = vld [vmem:[#allocation13 + $0xa8] sm:$0xf] }
 0x1b9   :  { %3314 = vmatpush.bf16.msrb.mxu1 %v7204_v63  ;;  %v7368_v49 = vor.u32 %v9081_v41, %v7365_v43  ;;  %v9022_v43 = vld [vmem:[#allocation13 + $0xec] sm:$0xf] }
 0x1ba   :  { %3328 = vmatpush.bf16.msra.mxu2 %v7316_v59 }
 0x1bb   :  { %3353 = vmatpush.bf16.msra.mxu0 %v7080_v58  ;;  %v7205_v58 = vld [vmem:[#allocation13 + $0x190] sm:$0xf0] }
 0x1bc   :  { %v7208_v53 = vor.u32 %v9041_v55, %v7205_v58  ;;  %v7144_v55 = vor.u32 %v9025_v4, %v7141_v45  ;;  %v7349_v58 = vld [vmem:[#allocation13 + $0x2b0] sm:$0xf0]  ;;  %v8996_v4 = vld [vmem:[#allocation13 + $0x14] sm:$0xf0] }
 0x1bd   :  { %3315 = vmatpush.bf16.msrb.mxu1 %v7188_v9 }
 0x1be   :  { %3329 = vmatpush.bf16.msra.mxu2 %v7300_v7  ;;  %v7333_v7 = vld [vmem:[#allocation13 + $0x290] sm:$0xf0] }
 0x1bf   :  { %3354 = vmatpush.bf16.msra.mxu0 %v7064_v6  ;;  %v7189_v6 = vld [vmem:[#allocation13 + $0x170] sm:$0xf0] }
 0x1c0   :  { %v7192_v26 = vor.u32 %v9037_v57, %v7189_v6  ;;  %v9107_v57 = vld [vmem:[#allocation13 + $0x38c] sm:$0xf0]  ;;  %v9073_v6 = vld [vmem:[#allocation13 + $0x284] sm:$0xf] }
 0x1c1   :  { %3316 = vmatpush.bf16.msrb.mxu1 %v7172_v37  ;;  %v7284_v37 = vor.u32 %v9063_v42, %v7283_v12  ;;  %v7443_v42 = vld [vmem:[#allocation13 + $0x360] sm:$0xf] }
 0x1c3   :  { %3355 = vmatpush.bf16.msra.mxu0 %v7048_v15  ;;  %3330 = vmatpush.bf16.msra.mxu2 %v7284_v37 }
 0x1c5   :  { %3317 = vmatpush.bf16.msrb.mxu1 %v7156_v28  ;;  %v7268_v28 = vor.u32 %v9059_v44, %v7267_v19 }
 0x1c6   :  { %v2341_v52 = vpop.f32.mrf.mxu2 }
 0x1c7   :  { %3356 = vmatpush.bf16.msra.mxu0 %v7032_v22  ;;  %v7176_v22 = vor.u32 %v9033_v5, %v7173_v56  ;;  %3331 = vmatpush.bf16.msra.mxu2 %v7268_v28  ;;  %v7051_v5 = vld [vmem:[#allocation13 + $0x48] sm:$0xf]  ;;  %v9004_v56 = vld [vmem:[#allocation13 + $0x54] sm:$0xf0] }
 0x1c8   :  { %v2354_v54 = vpop.f32.mrf.mxu3  ;;  %v7052_v44 = vor.u32 %v9004_v56, %v7051_v5  ;;  %v9113_v5 = vld [vmem:[#allocation13 + $0x3c4] sm:$0xf]  ;;  %v7493_v56 = vld [vmem:[#allocation13 + $0x3d0] sm:$0xf0] }
 0x1c9   :  { %3318 = vmatpush.bf16.msrb.mxu1 %v7140_v36 }
 0x1cb   :  { %3357 = vmatpush.bf16.msra.mxu0 %v7016_v35  ;;  %v10043_v63 = vpop.f32.mrf.mxu0  ;;  %v2328_v0 = vpop.f32.mrf.mxu1  ;;  %v7381_v35 = vld [vmem:[#allocation13 + $0x2f0] sm:$0xf0] }
 0x1cc   :  { %v2329_v8 = vadd.f32 %v2328_v0, %v2316_v24  ;;  %v7384_v36 = vor.u32 %v9085_v31, %v7381_v35  ;;  %v7459_v0 = vld [vmem:[#allocation13 + $0x380] sm:$0xf]  ;;  %v2368_v28 = vadd.f32 %v10043_v63, %v10026_v14  ;;  %v2515_v35 = vperm.slane %v9438_v34, 2  ;;  %v7285_v63 = vld [vmem:[#allocation13 + $0x230] sm:$0xf0] }
 0x1cd   :  { %3363 = vmatpush.bf16.msra.mxu1 %v7256_v39  ;;  %v7491_v39 = vld [vmem:[#allocation13 + $0x3c0] sm:$0xf] }
 0x1ce   :  { %v2342_v9 = vadd.f32 %v2341_v52, %v2329_v8  ;;  %v2343_v15 = vpop.f32.mrf.mxu2  ;;  %3376 = vmatpush.bf16.msrb.mxu2 %v7384_v36  ;;  %v9111_v52 = vld [vmem:[#allocation13 + $0x3ac] sm:$0xf0] }
 0x1cf   :  { %v7476_v24 = vor.u32 %v9111_v52, %v7475_v51  ;;  %v9103_v15 = vld [vmem:[#allocation13 + $0x36c] sm:$0xf0]  ;;  %v7259_v51 = vld [vmem:[#allocation13 + $0x1e8] sm:$0xf]  ;;  %v9056_v52 = vld [vmem:[#allocation13 + $0x1f4] sm:$0xf0] }
 0x1d0   :  { %v2356_v3 = vpop.f32.mrf.mxu3  ;;  %v2355_v16 = vadd.f32 %v2354_v54, %v2342_v9  ;;  %v9077_v54 = vld [vmem:[#allocation13 + $0x2a4] sm:$0xf]  ;;  %v7460_v9 = vor.u32 %v9107_v57, %v7459_v0  ;;  %v7444_v37 = vor.u32 %v9103_v15, %v7443_v42  ;;  %v7269_v0 = vld [vmem:[#allocation13 + $0x210] sm:$0xf0] }
 0x1d1   :  { %3364 = vmatpush.bf16.msra.mxu1 %v7240_v46  ;;  %v7492_v46 = vor.u32 %v9115_v2, %v7491_v39  ;;  %v7352_v60 = vor.u32 %v9077_v54, %v7349_v58  ;;  %v9069_v3 = vld [vmem:[#allocation13 + $0x264] sm:$0xf]  ;;  %v9095_v39 = vld [vmem:[#allocation13 + $0x32c] sm:$0xf0]  ;;  %v7395_v58 = vld [vmem:[#allocation13 + $0x300] sm:$0xf] }
 0x1d2   :  { %v10047_v20 = vadd.f32 %v2514_v11, %v2355_v16  ;;  %3377 = vmatpush.bf16.msrb.mxu2 %v7368_v49  ;;  %v9008_v11 = vld [vmem:[#allocation13 + $0x74] sm:$0xf0]  ;;  %v7317_v16 = vld [vmem:[#allocation13 + $0x270] sm:$0xf0]  ;;  %v9061_v2 = vld [vmem:[#allocation13 + $0x224] sm:$0xf] }
 0x1d3   :  { %v2369_v18 = vpop.f32.mrf.mxu0  ;;  %v2330_v29 = vpop.f32.mrf.mxu1  ;;  %3338 = vmatpush.bf16.msra.mxu3 %v7492_v46  ;;  %v7068_v12 = vor.u32 %v9008_v11, %v7067_v10  ;;  %v9117_v10 = vld [vmem:[#allocation13 + $0x3e4] sm:$0xf]  ;;  %v7509_v42 = vld [vmem:[#allocation13 + $0x3f0] sm:$0xf0] }
 0x1d4   :  { %v10051_v50 = vpack.c.bf16 %v10047_v20, %v10047_v20  ;;  %v7320_v18 = vor.u32 %v9069_v3, %v7317_v16  ;;  %v7035_v29 = vld [vmem:[#allocation13 + $0x28] sm:$0xf]  ;;  %v7512_v15 = vor.u32 %v9117_v10, %v7509_v42  ;;  %v9014_v16 = vld [vmem:[#allocation13 + $0xac] sm:$0xf]  ;;  %v9093_v10 = vld [vmem:[#allocation13 + $0x324] sm:$0xf] }
 0x1d5   :  { %3365 = vmatpush.bf16.msra.mxu1 %v7224_v48  ;;  %v9016_v48 = vld [vmem:[#allocation13 + $0xb4] sm:$0xf0]  ;;  %v8994_v42 = vld [vmem:[#allocation13 + $0xc] sm:$0xf] }
 0x1d6   :  { %3306 = vmatmul.bf16.vlgmr.msrb.gmra.mxu0 %v10051_v50  ;;  %v7100_v59 = vor.u32 %v9016_v48, %v7099_v47  ;;  %3378 = vmatpush.bf16.msrb.mxu2 %v7352_v60  ;;  %v7133_v47 = vld [vmem:[#allocation13 + $0xf8] sm:$0xf0]  ;;  %v7288_v48 = vor.u32 %v9061_v2, %v7285_v63  ;;  %v9040_v2 = vld [vmem:[#allocation13 + $0x174] sm:$0xf0] }
 0x1d7   :  { %3402 = vmatpush.bf16.msrb.mxu0 %v7132_v62  ;;  %3339 = vmatpush.bf16.msra.mxu3 %v7476_v24  ;;  %v9000_v62 = vld [vmem:[#allocation13 + $0x34] sm:$0xf0]  ;;  %v9057_v24 = vld [vmem:[#allocation13 + $0x204] sm:$0xf] }
 0x1d8   :  { %v7036_v36 = vor.u32 %v9000_v62, %v7035_v29  ;;  %v9010_v29 = vld [vmem:[#allocation13 + $0x8c] sm:$0xf]  ;;  %v7085_v62 = vld [vmem:[#allocation13 + $0x98] sm:$0xf0] }
 0x1d9   :  { %3366 = vmatpush.bf16.msra.mxu1 %v7208_v53  ;;  %v7083_v53 = vld [vmem:[#allocation13 + $0x88] sm:$0xf]  ;;  %v7088_v34 = vor.u32 %v9010_v29, %v7085_v62  ;;  %v9089_v62 = vld [vmem:[#allocation13 + $0x304] sm:$0xf] }
 0x1da   :  { %v7084_v8 = vor.u32 %v9012_v40, %v7083_v53  ;;  %v7136_v40 = vor.u32 %v9022_v43, %v7133_v47  ;;  %v7179_v43 = vld [vmem:[#allocation13 + $0x148] sm:$0xf]  ;;  %v9036_v47 = vld [vmem:[#allocation13 + $0x154] sm:$0xf0] }
 0x1db   :  { %3403 = vmatpush.bf16.msrb.mxu0 %v7116_v25  ;;  %3340 = vmatpush.bf16.msra.mxu3 %v7460_v9  ;;  %v7019_v25 = vld [vmem:[#allocation13 + $0x8] sm:$0xf]  ;;  %v7272_v9 = vor.u32 %v9057_v24, %v7269_v0  ;;  %v8998_v24 = vld [vmem:[#allocation13 + $0x2c] sm:$0xf] }
 0x1dc   :  { %v7163_v0 = vld [vmem:[#allocation13 + $0x128] sm:$0xf] }
 0x1dd   :  { %3367 = vmatpush.bf16.msra.mxu1 %v7192_v26  ;;  %v7336_v26 = vor.u32 %v9073_v6, %v7333_v7  ;;  %v7260_v6 = vor.u32 %v9056_v52, %v7259_v51  ;;  %v9018_v7 = vld [vmem:[#allocation13 + $0xcc] sm:$0xf] }
 0x1df   :  { %3404 = vmatpush.bf16.msrb.mxu0 %v7100_v59  ;;  %3379 = vmatpush.bf16.msrb.mxu2 %v7336_v26  ;;  %v9091_v59 = vld [vmem:[#allocation13 + $0x30c] sm:$0xf0]  ;;  %v7243_v26 = vld [vmem:[#allocation13 + $0x1c8] sm:$0xf] }
 0x1e0   :  { %3341 = vmatpush.bf16.msra.mxu3 %v7444_v37  ;;  %v7396_v60 = vor.u32 %v9091_v59, %v7395_v58  ;;  %v7180_v59 = vor.u32 %v9036_v47, %v7179_v43  ;;  %v9042_v47 = vld [vmem:[#allocation13 + $0x18c] sm:$0xf] }
 0x1e1   :  { %3368 = vmatpush.bf16.msra.mxu1 %v7176_v22  ;;  %v7427_v22 = vld [vmem:[#allocation13 + $0x340] sm:$0xf] }
 0x1e2   :  { %v7428_v1 = vor.u32 %v9099_v23, %v7427_v22  ;;  %v9109_v22 = vld [vmem:[#allocation13 + $0x3a4] sm:$0xf]  ;;  %v7477_v23 = vld [vmem:[#allocation13 + $0x3b0] sm:$0xf0] }
 0x1e3   :  { %3405 = vmatpush.bf16.msrb.mxu0 %v7084_v8  ;;  %3380 = vmatpush.bf16.msrb.mxu2 %v7320_v18  ;;  %v7117_v8 = vld [vmem:[#allocation13 + $0xd8] sm:$0xf0]  ;;  %v9048_v18 = vld [vmem:[#allocation13 + $0x1b4] sm:$0xf0] }
 0x1e4   :  { %3342 = vmatpush.bf16.msra.mxu3 %v7428_v1  ;;  %v7120_v3 = vor.u32 %v9018_v7, %v7117_v8  ;;  %v7211_v1 = vld [vmem:[#allocation13 + $0x188] sm:$0xf] }
 0x1e5   :  { %3369 = vmatpush.bf16.msra.mxu1 %v7160_v38  ;;  %v7411_v38 = vld [vmem:[#allocation13 + $0x320] sm:$0xf] }
 0x1e6   :  { %v2393_v61 = vpop.f32.mrf.mxu2  ;;  %3358 = vmatmul.bf16.vlgmr.msra.gmra.mxu0 %v10051_v50  ;;  %v7412_v14 = vor.u32 %v9095_v39, %v7411_v38  ;;  %v7069_v38 = vld [vmem:[#allocation13 + $0x78] sm:$0xf0]  ;;  %v7195_v39 = vld [vmem:[#allocation13 + $0x168] sm:$0xf] }
 0x1e7   :  { %3406 = vmatpush.bf16.msrb.mxu0 %v7068_v12  ;;  %3381 = vmatpush.bf16.msrb.mxu2 %v7304_v32  ;;  %v9052_v12 = vld [vmem:[#allocation13 + $0x1d4] sm:$0xf0]  ;;  %v9105_v32 = vld [vmem:[#allocation13 + $0x384] sm:$0xf]  ;;  %v7196_v63 = vor.u32 %v9040_v2, %v7195_v39 }
 0x1e8   :  { %v2406_v17 = vpop.f32.mrf.mxu3  ;;  %3343 = vmatpush.bf16.msra.mxu3 %v7412_v14  ;;  %v7244_v37 = vor.u32 %v9052_v12, %v7243_v26  ;;  %v7445_v14 = vld [vmem:[#allocation13 + $0x370] sm:$0xf0]  ;;  %v9084_v39 = vld [vmem:[#allocation13 + $0x2d4] sm:$0xf0] }
 0x1e9   :  { %3370 = vmatpush.bf16.msra.mxu1 %v7144_v55  ;;  %v7020_v55 = vor.u32 %v8996_v4, %v7019_v25  ;;  %v9101_v4 = vld [vmem:[#allocation13 + $0x364] sm:$0xf]  ;;  %v7413_v26 = vld [vmem:[#allocation13 + $0x330] sm:$0xf0] }
 0x1eb   :  { %v10055_v19 = vpop.f32.mrf.mxu0  ;;  %v2380_v31 = vpop.f32.mrf.mxu1  ;;  %3407 = vmatpush.bf16.msrb.mxu0 %v7052_v44  ;;  %3382 = vmatpush.bf16.msrb.mxu2 %v7288_v48  ;;  %v7496_v44 = vor.u32 %v9113_v5, %v7493_v56  ;;  %v7448_v48 = vor.u32 %v9101_v4, %v7445_v14  ;;  %v9439_v5 = vld [vmem:[#allocation19 + $0x10] sm:$0xff]  ;;  %v9046_v4 = vld [vmem:[#allocation13 + $0x1ac] sm:$0xf]  ;;  %v7229_v14 = vld [vmem:[#allocation13 + $0x1b8] sm:$0xf0] }
 0x1ec   :  { %v2381_v33 = vadd.f32 %v2380_v31, %v2368_v28  ;;  %3344 = vmatpush.bf16.msra.mxu3 %v7396_v60  ;;  %v7480_v31 = vor.u32 %v9109_v22, %v7477_v23  ;;  %v2420_v60 = vadd.f32 %v10055_v19, %v10033_v21  ;;  %v2516_v56 = vperm.slane %v9439_v5, 2  ;;  %v7387_v23 = vld [vmem:[#allocation13 + $0x2e8] sm:$0xf] }
 0x1ed   :  { %v7416_v21 = vor.u32 %v9093_v10, %v7413_v26  ;;  %v7291_v5 = vld [vmem:[#allocation13 + $0x228] sm:$0xf] }
 0x1ee   :  { %v2394_v41 = vadd.f32 %v2393_v61, %v2381_v33  ;;  %v2395_v45 = vpop.f32.mrf.mxu2  ;;  %v7101_v61 = vld [vmem:[#allocation13 + $0xb8] sm:$0xf0]  ;;  %v7461_v33 = vld [vmem:[#allocation13 + $0x390] sm:$0xf0] }
 0x1ef   :  { %3408 = vmatpush.bf16.msrb.mxu0 %v7036_v36  ;;  %3383 = vmatpush.bf16.msrb.mxu2 %v7272_v9  ;;  %v7104_v27 = vor.u32 %v9014_v16, %v7101_v61  ;;  %v9006_v36 = vld [vmem:[#allocation13 + $0x6c] sm:$0xf]  ;;  %v9028_v16 = vld [vmem:[#allocation13 + $0x114] sm:$0xf0] }
 0x1f0   :  { %v2408_v46 = vpop.f32.mrf.mxu3  ;;  %v2407_v49 = vadd.f32 %v2406_v17, %v2394_v41  ;;  %v7227_v17 = vld [vmem:[#allocation13 + $0x1a8] sm:$0xf]  ;;  %3389 = vmatpush.bf16.msrb.mxu3 %v7512_v15  ;;  %v7464_v41 = vor.u32 %v9105_v32, %v7461_v33  ;;  %v7072_v25 = vor.u32 %v9006_v36, %v7069_v38  ;;  %v9002_v45 = vld [vmem:[#allocation13 + $0x4c] sm:$0xf]  ;;  %v7021_v15 = vld [vmem:[#allocation13 + $0x18] sm:$0xf0] }
 0x1f1   :  { %v7228_v28 = vor.u32 %v9048_v18, %v7227_v17  ;;  %v7053_v46 = vld [vmem:[#allocation13 + $0x58] sm:$0xf0]  ;;  %v9054_v17 = vld [vmem:[#allocation13 + $0x1ec] sm:$0xf]  ;;  %v7024_v22 = vor.u32 %v8994_v42, %v7021_v15  ;;  %v7371_v38 = vld [vmem:[#allocation13 + $0x2c8] sm:$0xf] }
 0x1f2   :  { %v10059_v53 = vadd.f32 %v2515_v35, %v2407_v49  ;;  %v7212_v35 = vor.u32 %v9044_v30, %v7211_v1  ;;  %v7056_v52 = vor.u32 %v9002_v45, %v7053_v46  ;;  %v7261_v18 = vld [vmem:[#allocation13 + $0x1f8] sm:$0xf0]  ;;  %v7397_v1 = vld [vmem:[#allocation13 + $0x310] sm:$0xf0]  ;;  %v9080_v45 = vld [vmem:[#allocation13 + $0x2b4] sm:$0xf0]  ;;  %v7232_v46 = vor.u32 %v9046_v4, %v7229_v14 }
 0x1f3   :  { %v2421_v54 = vpop.f32.mrf.mxu0  ;;  %v2382_v57 = vpop.f32.mrf.mxu1  ;;  %3409 = vmatpush.bf16.msrb.mxu0 %v7020_v55  ;;  %v7429_v55 = vld [vmem:[#allocation13 + $0x350] sm:$0xf0]  ;;  %v7400_v2 = vor.u32 %v9089_v62, %v7397_v1  ;;  %v9030_v42 = vld [vmem:[#allocation13 + $0x12c] sm:$0xf]  ;;  %v7165_v15 = vld [vmem:[#allocation13 + $0x138] sm:$0xf0] }
 0x1f4   :  { %v10063_v11 = vpack.c.bf16 %v10059_v53, %v10059_v53  ;;  %3390 = vmatpush.bf16.msrb.mxu3 %v7496_v44  ;;  %v9097_v54 = vld [vmem:[#allocation13 + $0x344] sm:$0xf]  ;;  %v9032_v57 = vld [vmem:[#allocation13 + $0x134] sm:$0xf0]  ;;  %v9086_v62 = vld [vmem:[#allocation13 + $0x2ec] sm:$0xf] }
 0x1f5   :  { %v7164_v12 = vor.u32 %v9032_v57, %v7163_v0  ;;  %v9034_v0 = vld [vmem:[#allocation13 + $0x14c] sm:$0xf]  ;;  %v7181_v57 = vld [vmem:[#allocation13 + $0x158] sm:$0xf0] }
 0x1f6   :  { %3319 = vmatmul.bf16.vlgmr.msrb.gmra.mxu1 %v10063_v11  ;;  %3410 = vmatmul.bf16.vlgmr.msrb.gmra.mxu0 %v10051_v50  ;;  %v7184_v10 = vor.u32 %v9034_v0, %v7181_v57  ;;  %v7389_v1 = vld [vmem:[#allocation13 + $0x2f8] sm:$0xf0] }
 0x1f7   :  { %3454 = vmatpush.bf16.msra.mxu0 %v7136_v40  ;;  %3415 = vmatpush.bf16.msrb.mxu1 %v7260_v6  ;;  %v7037_v40 = vld [vmem:[#allocation13 + $0x38] sm:$0xf0]  ;;  %v7432_v6 = vor.u32 %v9097_v54, %v7429_v55  ;;  %v9038_v54 = vld [vmem:[#allocation13 + $0x16c] sm:$0xf] }
 0x1f8   :  { %3391 = vmatpush.bf16.msrb.mxu3 %v7480_v31  ;;  %v7040_v9 = vor.u32 %v8998_v24, %v7037_v40  ;;  %v7264_v31 = vor.u32 %v9054_v17, %v7261_v18  ;;  %v7197_v55 = vld [vmem:[#allocation13 + $0x178] sm:$0xf0]  ;;  %v9072_v24 = vld [vmem:[#allocation13 + $0x274] sm:$0xf0]  ;;  %v9026_v18 = vld [vmem:[#allocation13 + $0x10c] sm:$0xf] }
 0x1f9   :  { %v7200_v40 = vor.u32 %v9038_v54, %v7197_v55  ;;  %v7373_v4 = vld [vmem:[#allocation13 + $0x2d8] sm:$0xf0] }
 0x1fa   :  { %v7341_v54 = vld [vmem:[#allocation13 + $0x298] sm:$0xf0] }
 0x1fb   :  { %3455 = vmatpush.bf16.msra.mxu0 %v7120_v3  ;;  %3416 = vmatpush.bf16.msrb.mxu1 %v7244_v37  ;;  %v7147_v37 = vld [vmem:[#allocation13 + $0x108] sm:$0xf] }
 0x1fc   :  { %3392 = vmatpush.bf16.msrb.mxu3 %v7464_v41  ;;  %v7148_v29 = vor.u32 %v9028_v16, %v7147_v37  ;;  %v7168_v16 = vor.u32 %v9030_v42, %v7165_v15  ;;  %v9096_v42 = vld [vmem:[#allocation13 + $0x334] sm:$0xf0]  ;;  %v9062_v15 = vld [vmem:[#allocation13 + $0x22c] sm:$0xf] }
 0x1ff   :  { %3456 = vmatpush.bf16.msra.mxu0 %v7104_v27  ;;  %3417 = vmatpush.bf16.msrb.mxu1 %v7228_v28  ;;  %v9088_v27 = vld [vmem:[#allocation13 + $0x2f4] sm:$0xf0] }
 0x200   :  { %3393 = vmatpush.bf16.msrb.mxu3 %v7448_v48  ;;  %v7388_v33 = vor.u32 %v9088_v27, %v7387_v23  ;;  %v7213_v48 = vld [vmem:[#allocation13 + $0x198] sm:$0xf0]  ;;  %v7275_v23 = vld [vmem:[#allocation13 + $0x208] sm:$0xf] }
 0x203   :  { %3457 = vmatpush.bf16.msra.mxu0 %v7088_v34  ;;  %3418 = vmatpush.bf16.msrb.mxu1 %v7212_v35  ;;  %v9050_v34 = vld [vmem:[#allocation13 + $0x1cc] sm:$0xf]  ;;  %v7245_v35 = vld [vmem:[#allocation13 + $0x1d8] sm:$0xf0] }
 0x204   :  { %3394 = vmatpush.bf16.msrb.mxu3 %v7432_v6  ;;  %v7248_v41 = vor.u32 %v9050_v34, %v7245_v35 }
 0x206   :  { %v2445_v49 = vpop.f32.mrf.mxu2  ;;  %3371 = vmatmul.bf16.vlgmr.msra.gmra.mxu1 %v10063_v11 }
 0x207   :  { %3458 = vmatpush.bf16.msra.mxu0 %v7072_v25  ;;  %3419 = vmatpush.bf16.msrb.mxu1 %v7196_v63  ;;  %v7372_v25 = vor.u32 %v9084_v39, %v7371_v38  ;;  %v7355_v63 = vld [vmem:[#allocation13 + $0x2a8] sm:$0xf]  ;;  %v7392_v38 = vor.u32 %v9086_v62, %v7389_v1  ;;  %v9106_v62 = vld [vmem:[#allocation13 + $0x38c] sm:$0xf]  ;;  %v7469_v1 = vld [vmem:[#allocation13 + $0x398] sm:$0xf0] }
 0x208   :  { %v2458_v51 = vpop.f32.mrf.mxu3  ;;  %3395 = vmatpush.bf16.msrb.mxu3 %v7416_v21  ;;  %v7356_v43 = vor.u32 %v9080_v45, %v7355_v63  ;;  %v7499_v39 = vld [vmem:[#allocation13 + $0x3c8] sm:$0xf] }
 0x209   :  { %v7483_v45 = vld [vmem:[#allocation13 + $0x3a8] sm:$0xf] }
 0x20b   :  { %v10068_v58 = vpop.f32.mrf.mxu0  ;;  %v2432_v7 = vpop.f32.mrf.mxu1  ;;  %3459 = vmatpush.bf16.msra.mxu0 %v7056_v52  ;;  %3420 = vmatpush.bf16.msrb.mxu1 %v7180_v59  ;;  %v7216_v52 = vor.u32 %v9042_v47, %v7213_v48  ;;  %v7323_v59 = vld [vmem:[#allocation13 + $0x268] sm:$0xf]  ;;  %v7357_v47 = vld [vmem:[#allocation13 + $0x2b8] sm:$0xf0] }
 0x20c   :  { %v2433_v8 = vadd.f32 %v2432_v7, %v2420_v60  ;;  %3396 = vmatpush.bf16.msrb.mxu3 %v7400_v2  ;;  %v7324_v60 = vor.u32 %v9072_v24, %v7323_v59  ;;  %v7307_v7 = vld [vmem:[#allocation13 + $0x248] sm:$0xf]  ;;  %v2472_v26 = vadd.f32 %v10068_v58, %v10041_v13  ;;  %v9060_v13 = vld [vmem:[#allocation13 + $0x214] sm:$0xf0] }
 0x20d   :  { %v7515_v58 = vld [vmem:[#allocation13 + $0x3e8] sm:$0xf] }
 0x20e   :  { %v2446_v3 = vadd.f32 %v2445_v49, %v2433_v8  ;;  %v2447_v19 = vpop.f32.mrf.mxu2  ;;  %v7339_v49 = vld [vmem:[#allocation13 + $0x288] sm:$0xf]  ;;  %v9068_v8 = vld [vmem:[#allocation13 + $0x254] sm:$0xf0] }
 0x20f   :  { %3460 = vmatpush.bf16.msra.mxu0 %v7040_v9  ;;  %3421 = vmatpush.bf16.msrb.mxu1 %v7164_v12  ;;  %v7308_v12 = vor.u32 %v9068_v8, %v7307_v7  ;;  %v9440_v19 = vld [vmem:[#allocation19 + $0x18] sm:$0xff]  ;;  %v7451_v24 = vld [vmem:[#allocation13 + $0x368] sm:$0xf]  ;;  %v9066_v8 = vld [vmem:[#allocation13 + $0x24c] sm:$0xf] }
 0x210   :  { %v2460_v61 = vpop.f32.mrf.mxu3  ;;  %v2459_v44 = vadd.f32 %v2458_v51, %v2446_v3  ;;  %v9076_v51 = vld [vmem:[#allocation13 + $0x294] sm:$0xf0] }
 0x211   :  { %v2517_v61 = vperm.slane %v9440_v19, 2  ;;  %v9100_v7 = vld [vmem:[#allocation13 + $0x354] sm:$0xf0]  ;;  %v7277_v19 = vld [vmem:[#allocation13 + $0x218] sm:$0xf0] }
 0x212   :  { %v10072_v30 = vadd.f32 %v2516_v56, %v2459_v44  ;;  %v9064_v56 = vld [vmem:[#allocation13 + $0x234] sm:$0xf0]  ;;  %v7149_v44 = vld [vmem:[#allocation13 + $0x118] sm:$0xf0] }
 0x213   :  { %v2473_v28 = vpop.f32.mrf.mxu0  ;;  %v2434_v32 = vpop.f32.mrf.mxu1  ;;  %3461 = vmatpush.bf16.msra.mxu0 %v7024_v22  ;;  %3422 = vmatpush.bf16.msrb.mxu1 %v7148_v29  ;;  %v7292_v17 = vor.u32 %v9064_v56, %v7291_v5  ;;  %v9120_v29 = vld [vmem:[#allocation13 + $0x3f4] sm:$0xf0] }
 0x214   :  { %v10076_v36 = vpack.c.bf16 %v10072_v30, %v10072_v30  ;;  %v7516_v35 = vor.u32 %v9120_v29, %v7515_v58 }
 0x216   :  { %3332 = vmatmul.bf16.vlgmr.msra.gmra.mxu2 %v10076_v36  ;;  %3462 = vmatmul.bf16.vlgmr.msra.gmra.mxu0 %v10051_v50  ;;  %v7340_v50 = vor.u32 %v9076_v51, %v7339_v49  ;;  %v7467_v51 = vld [vmem:[#allocation13 + $0x388] sm:$0xf] }
 0x217   :  { %3467 = vmatpush.bf16.msra.mxu1 %v7264_v31  ;;  %3428 = vmatpush.bf16.msra.mxu2 %v7388_v33  ;;  %v7152_v31 = vor.u32 %v9026_v18, %v7149_v44  ;;  %v7276_v33 = vor.u32 %v9060_v13, %v7275_v23  ;;  %v9114_v23 = vld [vmem:[#allocation13 + $0x3cc] sm:$0xf]  ;;  %v7501_v13 = vld [vmem:[#allocation13 + $0x3d8] sm:$0xf0] }
 0x218   :  { %3423 = vmatmul.bf16.vlgmr.msrb.gmra.mxu1 %v10063_v11  ;;  %v7504_v58 = vor.u32 %v9114_v23, %v7501_v13  ;;  %v7715_v23 = vld [vmem:[#allocation14 + $0x180] sm:$0xf] }
 0x21b   :  { %3468 = vmatpush.bf16.msra.mxu1 %v7248_v41  ;;  %3429 = vmatpush.bf16.msra.mxu2 %v7372_v25  ;;  %v9116_v41 = vld [vmem:[#allocation13 + $0x3d4] sm:$0xf0]  ;;  %v9082_v25 = vld [vmem:[#allocation13 + $0x2cc] sm:$0xf] }
 0x21c   :  { %v7500_v14 = vor.u32 %v9116_v41, %v7499_v39  ;;  %v7376_v63 = vor.u32 %v9082_v25, %v7373_v4  ;;  %v9098_v39 = vld [vmem:[#allocation13 + $0x34c] sm:$0xf]  ;;  %v7437_v41 = vld [vmem:[#allocation13 + $0x358] sm:$0xf0]  ;;  %v7635_v4 = vld [vmem:[#allocation14 + $0xe0] sm:$0xf] }
 0x21f   :  { %3469 = vmatpush.bf16.msra.mxu1 %v7232_v46  ;;  %3430 = vmatpush.bf16.msra.mxu2 %v7356_v43  ;;  %v9112_v46 = vld [vmem:[#allocation13 + $0x3b4] sm:$0xf0]  ;;  %v9078_v43 = vld [vmem:[#allocation13 + $0x2ac] sm:$0xf] }
 0x220   :  { %v7484_v48 = vor.u32 %v9112_v46, %v7483_v45  ;;  %v7360_v49 = vor.u32 %v9078_v43, %v7357_v47  ;;  %v9094_v45 = vld [vmem:[#allocation13 + $0x32c] sm:$0xf]  ;;  %v7421_v46 = vld [vmem:[#allocation13 + $0x338] sm:$0xf0] }
 0x221   :  { %v7424_v43 = vor.u32 %v9094_v45, %v7421_v46  ;;  %v9090_v47 = vld [vmem:[#allocation13 + $0x30c] sm:$0xf]  ;;  %v7875_v45 = vld [vmem:[#allocation14 + $0x2c0] sm:$0xf]  ;;  %v9211_v46 = vld [vmem:[#allocation14 + $0x2cc] sm:$0xf0] }
 0x223   :  { %3470 = vmatpush.bf16.msra.mxu1 %v7216_v52  ;;  %3431 = vmatpush.bf16.msra.mxu2 %v7340_v50  ;;  %v9108_v52 = vld [vmem:[#allocation13 + $0x394] sm:$0xf0]  ;;  %v9074_v50 = vld [vmem:[#allocation13 + $0x28c] sm:$0xf] }
 0x224   :  { %v7468_v55 = vor.u32 %v9108_v52, %v7467_v51  ;;  %v7344_v59 = vor.u32 %v9074_v50, %v7341_v54  ;;  %v7405_v51 = vld [vmem:[#allocation13 + $0x318] sm:$0xf0]  ;;  %v7603_v50 = vld [vmem:[#allocation14 + $0xa0] sm:$0xf]  ;;  %v9143_v54 = vld [vmem:[#allocation14 + $0xac] sm:$0xf0] }
 0x226   :  { %v2497_v6 = vpop.f32.mrf.mxu2  ;;  %3384 = vmatmul.bf16.vlgmr.msrb.gmra.mxu2 %v10076_v36 }
 0x227   :  { %v2510_v9 = vpop.f32.mrf.mxu3  ;;  %3471 = vmatpush.bf16.msra.mxu1 %v7200_v40  ;;  %3432 = vmatpush.bf16.msra.mxu2 %v7324_v60  ;;  %v9104_v40 = vld [vmem:[#allocation13 + $0x374] sm:$0xf0]  ;;  %v7325_v60 = vld [vmem:[#allocation13 + $0x278] sm:$0xf0] }
 0x228   :  { %v7452_v0 = vor.u32 %v9104_v40, %v7451_v24  ;;  %v7408_v24 = vor.u32 %v9090_v47, %v7405_v51  ;;  %v7587_v40 = vld [vmem:[#allocation14 + $0x80] sm:$0xf]  ;;  %v7605_v47 = vld [vmem:[#allocation14 + $0xb0] sm:$0xf0]  ;;  %v7876_v51 = vor.u32 %v9211_v46, %v7875_v45  ;;  %v9169_v45 = vld [vmem:[#allocation14 + $0x184] sm:$0xf] }
 0x229   :  { %v2484_v3 = vpop.f32.mrf.mxu1 }
 0x22a   :  { %v2485_v37 = vadd.f32 %v2484_v3, %v2472_v26  ;;  %v7293_v3 = vld [vmem:[#allocation13 + $0x238] sm:$0xf0] }
 0x22b   :  { %3472 = vmatpush.bf16.msra.mxu1 %v7184_v10  ;;  %3433 = vmatpush.bf16.msra.mxu2 %v7308_v12  ;;  %v7419_v12 = vld [vmem:[#allocation13 + $0x328] sm:$0xf]  ;;  %v7296_v56 = vor.u32 %v9062_v15, %v7293_v3  ;;  %v7747_v15 = vld [vmem:[#allocation14 + $0x1c0] sm:$0xf] }
 0x22c   :  { %v2498_v21 = vadd.f32 %v2497_v6, %v2485_v37  ;;  %v7435_v6 = vld [vmem:[#allocation13 + $0x348] sm:$0xf]  ;;  %v7420_v5 = vor.u32 %v9096_v42, %v7419_v12  ;;  %v7555_v12 = vld [vmem:[#allocation14 + $0x40] sm:$0xf]  ;;  %v9131_v42 = vld [vmem:[#allocation14 + $0x4c] sm:$0xf0] }
 0x22d   :  { %v7436_v10 = vor.u32 %v9100_v7, %v7435_v6  ;;  %v7403_v37 = vld [vmem:[#allocation13 + $0x308] sm:$0xf]  ;;  %v7763_v6 = vld [vmem:[#allocation14 + $0x1e0] sm:$0xf]  ;;  %v9183_v7 = vld [vmem:[#allocation14 + $0x1ec] sm:$0xf0]  ;;  %v7556_v3 = vor.u32 %v9131_v42, %v7555_v12 }
 0x22e   :  { %v2499_v22 = vpop.f32.mrf.mxu2  ;;  %v2511_v27 = vadd.f32 %v2510_v9, %v2498_v21  ;;  %v7309_v9 = vld [vmem:[#allocation13 + $0x258] sm:$0xf0]  ;;  %v9058_v21 = vld [vmem:[#allocation13 + $0x20c] sm:$0xf]  ;;  %v7573_v12 = vld [vmem:[#allocation14 + $0x70] sm:$0xf0] }
 0x22f   :  { %v2512_v28 = vpop.f32.mrf.mxu3  ;;  %3473 = vmatpush.bf16.msra.mxu1 %v7168_v16  ;;  %3434 = vmatpush.bf16.msra.mxu2 %v7292_v17  ;;  %v7312_v26 = vor.u32 %v9066_v8, %v7309_v9  ;;  %v9092_v16 = vld [vmem:[#allocation13 + $0x314] sm:$0xf0]  ;;  %v7517_v17 = vld [vmem:[#allocation13 + $0x3f8] sm:$0xf0]  ;;  %v7280_v44 = vor.u32 %v9058_v21, %v7277_v19  ;;  %v7764_v9 = vor.u32 %v9183_v7, %v7763_v6  ;;  %v9127_v21 = vld [vmem:[#allocation14 + $0x2c] sm:$0xf0] }
 0x230   :  { %v10084_v32 = vadd.f32 %v2517_v61, %v2511_v27  ;;  %v9118_v61 = vld [vmem:[#allocation13 + $0x3ec] sm:$0xf]  ;;  %v7404_v18 = vor.u32 %v9092_v16, %v7403_v37  ;;  %v7485_v28 = vld [vmem:[#allocation13 + $0x3b8] sm:$0xf0]  ;;  %v7539_v16 = vld [vmem:[#allocation14 + $0x20] sm:$0xf] }
 0x231   :  { %v2486_v34 = vpop.f32.mrf.mxu1  ;;  %v7520_v22 = vor.u32 %v9118_v61, %v7517_v17  ;;  %v9110_v27 = vld [vmem:[#allocation13 + $0x3ac] sm:$0xf]  ;;  %v7731_v19 = vld [vmem:[#allocation14 + $0x1a0] sm:$0xf]  ;;  %v9175_v61 = vld [vmem:[#allocation14 + $0x1ac] sm:$0xf0] }
 0x232   :  { %v10088_v2 = vpack.c.bf16 %v10084_v32, %v10084_v32  ;;  %v7488_v29 = vor.u32 %v9110_v27, %v7485_v28  ;;  %v9102_v34 = vld [vmem:[#allocation13 + $0x36c] sm:$0xf]  ;;  %v7732_v17 = vor.u32 %v9175_v61, %v7731_v19  ;;  %v9149_v27 = vld [vmem:[#allocation14 + $0xe4] sm:$0xf]  ;;  %v7637_v28 = vld [vmem:[#allocation14 + $0xf0] sm:$0xf0] }
 0x233   :  { %3474 = vmatpush.bf16.msra.mxu1 %v7152_v31  ;;  %3435 = vmatpush.bf16.msra.mxu2 %v7276_v33  ;;  %v7472_v33 = vor.u32 %v9106_v62, %v7469_v1  ;;  %v7640_v1 = vor.u32 %v9149_v27, %v7637_v28  ;;  %v7651_v6 = vld [vmem:[#allocation14 + $0x100] sm:$0xf]  ;;  %v9155_v7 = vld [vmem:[#allocation14 + $0x10c] sm:$0xf0] }
 0x234   :  { %3345 = vmatmul.bf16.vlgmr.msra.gmra.mxu3 %v10088_v2  ;;  %v7827_v19 = vld [vmem:[#allocation14 + $0x260] sm:$0xf] }
 0x235   :  { %3441 = vmatpush.bf16.msra.mxu3 %v7516_v35  ;;  %v7453_v35 = vld [vmem:[#allocation13 + $0x378] sm:$0xf0]  ;;  %v7811_v28 = vld [vmem:[#allocation14 + $0x240] sm:$0xf] }
 0x236   :  { %3475 = vmatmul.bf16.vlgmr.msra.gmra.mxu1 %v10063_v11  ;;  %3436 = vmatmul.bf16.vlgmr.msra.gmra.mxu2 %v10076_v36  ;;  %v9070_v11 = vld [vmem:[#allocation13 + $0x26c] sm:$0xf] }
 0x237   :  { %3480 = vmatpush.bf16.msrb.mxu2 %v7392_v38  ;;  %v7328_v57 = vor.u32 %v9070_v11, %v7325_v60  ;;  %v7456_v38 = vor.u32 %v9102_v34, %v7453_v35  ;;  %v9139_v11 = vld [vmem:[#allocation14 + $0x8c] sm:$0xf0]  ;;  %v7571_v60 = vld [vmem:[#allocation14 + $0x60] sm:$0xf]  ;;  %4299 = vmatpush.bf16.msrb.mxu1 %v7764_v9 }
 0x238   :  { %v9167_v34 = vld [vmem:[#allocation14 + $0x16c] sm:$0xf0]  ;;  %v7891_v35 = vld [vmem:[#allocation14 + $0x2e0] sm:$0xf] }
 0x239   :  { %3442 = vmatpush.bf16.msra.mxu3 %v7500_v14  ;;  %v9151_v14 = vld [vmem:[#allocation14 + $0xec] sm:$0xf0] }
 0x23a   :  { %v9203_v9 = vld [vmem:[#allocation14 + $0x28c] sm:$0xf0] }
 0x23b   :  { %3481 = vmatpush.bf16.msrb.mxu2 %v7376_v63  ;;  %v7440_v63 = vor.u32 %v9098_v39, %v7437_v41  ;;  %v9215_v39 = vld [vmem:[#allocation14 + $0x2ec] sm:$0xf0]  ;;  %v9145_v41 = vld [vmem:[#allocation14 + $0xc4] sm:$0xf] }
 0x23d   :  { %3443 = vmatpush.bf16.msra.mxu3 %v7484_v48  ;;  %v7619_v48 = vld [vmem:[#allocation14 + $0xc0] sm:$0xf] }
 0x23f   :  { %3482 = vmatpush.bf16.msrb.mxu2 %v7360_v49  ;;  %v9147_v49 = vld [vmem:[#allocation14 + $0xcc] sm:$0xf0] }
 0x240   :  { %v7620_v52 = vor.u32 %v9147_v49, %v7619_v48 }
 0x241   :  { %3444 = vmatpush.bf16.msra.mxu3 %v7468_v55 }
 0x243   :  { %3483 = vmatpush.bf16.msrb.mxu2 %v7344_v59  ;;  %v7604_v59 = vor.u32 %v9143_v54, %v7603_v50  ;;  %v7667_v50 = vld [vmem:[#allocation14 + $0x120] sm:$0xf]  ;;  %v9159_v54 = vld [vmem:[#allocation14 + $0x12c] sm:$0xf0] }
 0x244   :  { %3397 = vmatmul.bf16.vlgmr.msrb.gmra.mxu3 %v10088_v2 }
 0x245   :  { %3445 = vmatpush.bf16.msra.mxu3 %v7452_v0  ;;  %v7588_v0 = vor.u32 %v9139_v11, %v7587_v40  ;;  %v9207_v40 = vld [vmem:[#allocation14 + $0x2ac] sm:$0xf0]  ;;  %v9137_v11 = vld [vmem:[#allocation14 + $0x84] sm:$0xf] }
 0x247   :  { %3484 = vmatpush.bf16.msrb.mxu2 %v7328_v57  ;;  %v9135_v57 = vld [vmem:[#allocation14 + $0x6c] sm:$0xf0] }
 0x249   :  { %3446 = vmatpush.bf16.msra.mxu3 %v7436_v10  ;;  %v7572_v10 = vor.u32 %v9135_v57, %v7571_v60  ;;  %v7589_v60 = vld [vmem:[#allocation14 + $0x90] sm:$0xf0] }
 0x24a   :  { %v7592_v57 = vor.u32 %v9137_v11, %v7589_v60  ;;  %v7701_v11 = vld [vmem:[#allocation14 + $0x170] sm:$0xf0] }
 0x24b   :  { %3485 = vmatpush.bf16.msrb.mxu2 %v7312_v26 }
 0x24d   :  { %3447 = vmatpush.bf16.msra.mxu3 %v7420_v5  ;;  %v9179_v5 = vld [vmem:[#allocation14 + $0x1cc] sm:$0xf0] }
 0x24e   :  { %v7748_v37 = vor.u32 %v9179_v5, %v7747_v15  ;;  %v7652_v15 = vor.u32 %v9155_v7, %v7651_v6  ;;  %v9181_v5 = vld [vmem:[#allocation14 + $0x1e4] sm:$0xf]  ;;  %v7893_v6 = vld [vmem:[#allocation14 + $0x2f0] sm:$0xf0] }
 0x24f   :  { %3486 = vmatpush.bf16.msrb.mxu2 %v7296_v56 }
 0x250   :  { %4300 = vmatpush.bf16.msrb.mxu1 %v7748_v37  ;;  %v7765_v37 = vld [vmem:[#allocation14 + $0x1f0] sm:$0xf0] }
 0x251   :  { %3448 = vmatpush.bf16.msra.mxu3 %v7404_v18 }
 0x253   :  { %3487 = vmatpush.bf16.msrb.mxu2 %v7280_v44  ;;  %v10096_v31 = vpop.f32.mrf.mxu0  ;;  %v7523_v44 = vld [vmem:[#allocation14] sm:$0xf] }
 0x254   :  { %3449 = vmatmul.bf16.vlgmr.msra.gmra.mxu3 %v10088_v2  ;;  %4301 = vmatpush.bf16.msrb.mxu1 %v7732_v17  ;;  %v9129_v17 = vld [vmem:[#allocation14 + $0x44] sm:$0xf] }
 0x255   :  { %3493 = vmatpush.bf16.msrb.mxu3 %v7520_v22  ;;  %v9123_v22 = vld [vmem:[#allocation14 + $0xc] sm:$0xf0] }
 0x256   :  { %3488 = vmatmul.bf16.vlgmr.msrb.gmra.mxu2 %v10076_v36  ;;  %v7636_v36 = vor.u32 %v9151_v14, %v7635_v4  ;;  %v7524_v13 = vor.u32 %v9123_v22, %v7523_v44  ;;  %v7892_v4 = vor.u32 %v9215_v39, %v7891_v35  ;;  %v9177_v44 = vld [vmem:[#allocation14 + $0x1c4] sm:$0xf] }
 0x258   :  { %4286 = vmatpush.bf16.msrb.mxu0 %v7636_v36  ;;  %v7683_v36 = vld [vmem:[#allocation14 + $0x140] sm:$0xf]  ;;  %4312 = vmatpush.bf16.msra.mxu2 %v7892_v4  ;;  %v9191_v4 = vld [vmem:[#allocation14 + $0x22c] sm:$0xf0] }
 0x259   :  { %3494 = vmatpush.bf16.msrb.mxu3 %v7504_v58  ;;  %v9171_v58 = vld [vmem:[#allocation14 + $0x18c] sm:$0xf0] }
 0x25a   :  { %v7716_v62 = vor.u32 %v9171_v58, %v7715_v23  ;;  %v7749_v23 = vld [vmem:[#allocation14 + $0x1d0] sm:$0xf0] }
 0x25b   :  { %v3309_v25 = vpop.f32.mrf.mxu0  ;;  %v7752_v58 = vor.u32 %v9177_v44, %v7749_v23 }
 0x25c   :  { %4287 = vmatpush.bf16.msrb.mxu0 %v7620_v52  ;;  %4302 = vmatpush.bf16.msrb.mxu1 %v7716_v62  ;;  %v7621_v25 = vld [vmem:[#allocation14 + $0xd0] sm:$0xf0] }
 0x25d   :  { %3495 = vmatpush.bf16.msrb.mxu3 %v7488_v29  ;;  %v7624_v14 = vor.u32 %v9145_v41, %v7621_v25  ;;  %4313 = vmatpush.bf16.msra.mxu2 %v7876_v51  ;;  %v7795_v25 = vld [vmem:[#allocation14 + $0x220] sm:$0xf] }
 0x260   :  { %4288 = vmatpush.bf16.msrb.mxu0 %v7604_v59  ;;  %v7859_v59 = vld [vmem:[#allocation14 + $0x2a0] sm:$0xf] }
 0x261   :  { %3496 = vmatpush.bf16.msrb.mxu3 %v7472_v33  ;;  %v7699_v33 = vld [vmem:[#allocation14 + $0x160] sm:$0xf] }
 0x263   :  { %v10098_v55 = vpop.f32.mrf.mxu0 }
 0x264   :  { %4289 = vmatpush.bf16.msrb.mxu0 %v7588_v0  ;;  %v7860_v0 = vor.u32 %v9207_v40, %v7859_v59  ;;  %v9165_v40 = vld [vmem:[#allocation14 + $0x164] sm:$0xf] }
 0x265   :  { %3497 = vmatpush.bf16.msrb.mxu3 %v7456_v38  ;;  %v7700_v38 = vor.u32 %v9167_v34, %v7699_v33  ;;  %v7541_v33 = vld [vmem:[#allocation14 + $0x30] sm:$0xf0]  ;;  %v9173_v34 = vld [vmem:[#allocation14 + $0x1a4] sm:$0xf] }
 0x266   :  { %4314 = vmatpush.bf16.msra.mxu2 %v7860_v0  ;;  %v7704_v0 = vor.u32 %v9165_v40, %v7701_v11 }
 0x267   :  { %4303 = vmatpush.bf16.msrb.mxu1 %v7700_v38  ;;  %v7733_v38 = vld [vmem:[#allocation14 + $0x1b0] sm:$0xf0] }
 0x268   :  { %4290 = vmatpush.bf16.msrb.mxu0 %v7572_v10  ;;  %v9133_v10 = vld [vmem:[#allocation14 + $0x64] sm:$0xf]  ;;  %v7736_v39 = vor.u32 %v9173_v34, %v7733_v38  ;;  %v7845_v38 = vld [vmem:[#allocation14 + $0x290] sm:$0xf0] }
 0x269   :  { %3498 = vmatpush.bf16.msrb.mxu3 %v7440_v63  ;;  %v9163_v63 = vld [vmem:[#allocation14 + $0x14c] sm:$0xf0]  ;;  %v9201_v34 = vld [vmem:[#allocation14 + $0x284] sm:$0xf] }
 0x26a   :  { %v7684_v49 = vor.u32 %v9163_v63, %v7683_v36  ;;  %v9121_v36 = vld [vmem:[#allocation14 + $0x4] sm:$0xf]  ;;  %v7525_v63 = vld [vmem:[#allocation14 + $0x10] sm:$0xf0] }
 0x26b   :  { %v3361_v8 = vpop.f32.mrf.mxu0  ;;  %v7528_v46 = vor.u32 %v9121_v36, %v7525_v63  ;;  %v9231_v36 = vld [vmem:[#allocation14 + $0x36c] sm:$0xf0] }
 0x26c   :  { %4291 = vmatpush.bf16.msrb.mxu0 %v7556_v3  ;;  %4304 = vmatpush.bf16.msrb.mxu1 %v7684_v49  ;;  %v7843_v8 = vld [vmem:[#allocation14 + $0x280] sm:$0xf] }
 0x26d   :  { %3499 = vmatpush.bf16.msrb.mxu3 %v7424_v43  ;;  %v9141_v43 = vld [vmem:[#allocation14 + $0xa4] sm:$0xf]  ;;  %v7844_v3 = vor.u32 %v9203_v9, %v7843_v8  ;;  %v8003_v9 = vld [vmem:[#allocation14 + $0x3c0] sm:$0xf] }
 0x26e   :  { %v7608_v52 = vor.u32 %v9141_v43, %v7605_v47  ;;  %v7717_v43 = vld [vmem:[#allocation14 + $0x190] sm:$0xf0] }
 0x26f   :  { %4315 = vmatpush.bf16.msra.mxu2 %v7844_v3  ;;  %v7720_v49 = vor.u32 %v9169_v45, %v7717_v43  ;;  %v9209_v3 = vld [vmem:[#allocation14 + $0x2c4] sm:$0xf] }
 0x270   :  { %v9197_v45 = vld [vmem:[#allocation14 + $0x264] sm:$0xf] }
 0x271   :  { %3500 = vmatpush.bf16.msrb.mxu3 %v7408_v24  ;;  %v7668_v24 = vor.u32 %v9159_v54, %v7667_v50  ;;  %v9187_v50 = vld [vmem:[#allocation14 + $0x20c] sm:$0xf0]  ;;  %v8019_v54 = vld [vmem:[#allocation14 + $0x3e0] sm:$0xf] }
 0x273   :  { %v10101_v26 = vpop.f32.mrf.mxu1  ;;  %v10103_v56 = vpop.f32.mrf.mxu0  ;;  %4305 = vmatpush.bf16.msrb.mxu1 %v7668_v24  ;;  %v9247_v24 = vld [vmem:[#allocation14 + $0x3ec] sm:$0xf0] }
 0x274   :  { %3501 = vmatmul.bf16.vlgmr.msrb.gmra.mxu3 %v10088_v2  ;;  %v7540_v2 = vor.u32 %v9127_v21, %v7539_v16  ;;  %v7576_v16 = vor.u32 %v9133_v10, %v7573_v12  ;;  %v7768_v21 = vor.u32 %v9181_v5, %v7765_v37  ;;  %v8020_v60 = vor.u32 %v9247_v24, %v8019_v54  ;;  %v9243_v10 = vld [vmem:[#allocation14 + $0x3cc] sm:$0xf0]  ;;  %v7877_v37 = vld [vmem:[#allocation14 + $0x2d0] sm:$0xf0] }
 0x275   :  { %v8004_v12 = vor.u32 %v9243_v10, %v8003_v9  ;;  %v7813_v24 = vld [vmem:[#allocation14 + $0x250] sm:$0xf0]  ;;  %v7643_v10 = vld [vmem:[#allocation14 + $0xe8] sm:$0xf] }
 0x276   :  { %4292 = vmatpush.bf16.msrb.mxu0 %v7540_v2  ;;  %v9199_v2 = vld [vmem:[#allocation14 + $0x26c] sm:$0xf0]  ;;  %4325 = vmatpush.bf16.msra.mxu3 %v8020_v60 }
 0x277   :  { %4306 = vmatpush.bf16.msrb.mxu1 %v7652_v15  ;;  %v7828_v61 = vor.u32 %v9199_v2, %v7827_v19  ;;  %v7685_v15 = vld [vmem:[#allocation14 + $0x150] sm:$0xf0]  ;;  %v9239_v19 = vld [vmem:[#allocation14 + $0x3ac] sm:$0xf0] }
 0x279   :  { %4316 = vmatpush.bf16.msra.mxu2 %v7828_v61  ;;  %v9157_v61 = vld [vmem:[#allocation14 + $0x124] sm:$0xf] }
 0x27a   :  { %4293 = vmatpush.bf16.msrb.mxu0 %v7524_v13  ;;  %4326 = vmatpush.bf16.msra.mxu3 %v8004_v12  ;;  %v9152_v12 = vld [vmem:[#allocation14 + $0xf4] sm:$0xf0] }
 0x27b   :  { %v3322_v18 = vpop.f32.mrf.mxu1  ;;  %v3413_v29 = vpop.f32.mrf.mxu0  ;;  %4351 = vmatpush.bf16.msra.mxu1 %v7768_v21  ;;  %v7987_v21 = vld [vmem:[#allocation14 + $0x3a0] sm:$0xf] }
 0x27c   :  { %v7557_v18 = vld [vmem:[#allocation14 + $0x50] sm:$0xf0]  ;;  %v9195_v29 = vld [vmem:[#allocation14 + $0x24c] sm:$0xf0]  ;;  %v7988_v2 = vor.u32 %v9239_v19, %v7987_v21  ;;  %v9185_v21 = vld [vmem:[#allocation14 + $0x204] sm:$0xf] }
 0x27d   :  { %v7560_v22 = vor.u32 %v9129_v17, %v7557_v18  ;;  %v7812_v62 = vor.u32 %v9195_v29, %v7811_v28  ;;  %v7669_v17 = vld [vmem:[#allocation14 + $0x130] sm:$0xf0]  ;;  %v9205_v18 = vld [vmem:[#allocation14 + $0x2a4] sm:$0xf]  ;;  %v7971_v28 = vld [vmem:[#allocation14 + $0x380] sm:$0xf] }
 0x27e   :  { %4338 = vmatpush.bf16.msra.mxu0 %v7640_v1  ;;  %v9125_v1 = vld [vmem:[#allocation14 + $0x24] sm:$0xf]  ;;  %v7672_v44 = vor.u32 %v9157_v61, %v7669_v17  ;;  %4327 = vmatpush.bf16.msra.mxu3 %v7988_v2  ;;  %v9235_v29 = vld [vmem:[#allocation14 + $0x38c] sm:$0xf0]  ;;  %v7781_v19 = vld [vmem:[#allocation14 + $0x210] sm:$0xf0] }
 0x27f   :  { %4352 = vmatpush.bf16.msra.mxu1 %v7752_v58  ;;  %v7544_v35 = vor.u32 %v9125_v1, %v7541_v33  ;;  %4317 = vmatpush.bf16.msra.mxu2 %v7812_v62  ;;  %v7972_v62 = vor.u32 %v9235_v29, %v7971_v28  ;;  %v9153_v1 = vld [vmem:[#allocation14 + $0x104] sm:$0xf]  ;;  %v7653_v33 = vld [vmem:[#allocation14 + $0x110] sm:$0xf0]  ;;  %v7627_v17 = vld [vmem:[#allocation14 + $0xc8] sm:$0xf] }
 0x280   :  { %v9245_v2 = vld [vmem:[#allocation14 + $0x3e4] sm:$0xf]  ;;  %v9442_v28 = vld [vmem:[#allocation19 + $0x8] sm:$0xff] }
 0x281   :  { %v2655_v29 = vperm.slane %v9442_v28, 3 }
 0x282   :  { %4339 = vmatpush.bf16.msra.mxu0 %v7624_v14  ;;  %v7796_v14 = vor.u32 %v9191_v4, %v7795_v25  ;;  %v9441_v25 = vld [vmem:[#allocation19] sm:$0xff]  ;;  %4328 = vmatpush.bf16.msra.mxu3 %v7972_v62 }
 0x283   :  { %v10105_v48 = vpop.f32.mrf.mxu1  ;;  %4353 = vmatpush.bf16.msra.mxu1 %v7736_v39  ;;  %v7848_v39 = vor.u32 %v9201_v34, %v7845_v38  ;;  %v2654_v4 = vperm.slane %v9441_v25, 3  ;;  %v9144_v34 = vld [vmem:[#allocation14 + $0xb4] sm:$0xf0]  ;;  %v8005_v38 = vld [vmem:[#allocation14 + $0x3d0] sm:$0xf0]  ;;  %v3360_v25 = vadd.f32 %v10098_v55, %v2655_v29 }
 0x284   :  { %4318 = vmatpush.bf16.msra.mxu2 %v7796_v14  ;;  %v7955_v14 = vld [vmem:[#allocation14 + $0x360] sm:$0xf]  ;;  %v7531_v29 = vld [vmem:[#allocation14 + $0x8] sm:$0xf] }
 0x285   :  { %v7956_v63 = vor.u32 %v9231_v36, %v7955_v14  ;;  %v7595_v36 = vld [vmem:[#allocation14 + $0x88] sm:$0xf] }
 0x286   :  { %4340 = vmatpush.bf16.msra.mxu0 %v7608_v52  ;;  %v7779_v52 = vld [vmem:[#allocation14 + $0x200] sm:$0xf] }
 0x287   :  { %4354 = vmatpush.bf16.msra.mxu1 %v7720_v49  ;;  %v7780_v59 = vor.u32 %v9187_v50, %v7779_v52  ;;  %4329 = vmatpush.bf16.msra.mxu3 %v7956_v63  ;;  %v9227_v52 = vld [vmem:[#allocation14 + $0x34c] sm:$0xf0]  ;;  %v3373_v63 = vadd.f32 %v10105_v48, %v3360_v25  ;;  %v7645_v25 = vld [vmem:[#allocation14 + $0xf8] sm:$0xf0] }
 0x289   :  { %4319 = vmatpush.bf16.msra.mxu2 %v7780_v59  ;;  %v9193_v59 = vld [vmem:[#allocation14 + $0x244] sm:$0xf] }
 0x28a   :  { %4341 = vmatpush.bf16.msra.mxu0 %v7592_v57  ;;  %v9213_v57 = vld [vmem:[#allocation14 + $0x2e4] sm:$0xf]  ;;  %v7816_v11 = vor.u32 %v9193_v59, %v7813_v24  ;;  %v9136_v59 = vld [vmem:[#allocation14 + $0x74] sm:$0xf0]  ;;  %v7771_v24 = vld [vmem:[#allocation14 + $0x1e8] sm:$0xf] }
 0x28b   :  { %v3374_v42 = vpop.f32.mrf.mxu1  ;;  %v7896_v7 = vor.u32 %v9213_v57, %v7893_v6  ;;  %4355 = vmatpush.bf16.msra.mxu1 %v7704_v0  ;;  %v7923_v0 = vld [vmem:[#allocation14 + $0x320] sm:$0xf]  ;;  %v9223_v57 = vld [vmem:[#allocation14 + $0x32c] sm:$0xf0] }
 0x28c   :  { %v9161_v42 = vld [vmem:[#allocation14 + $0x144] sm:$0xf] }
 0x28d   :  { %4364 = vmatpush.bf16.msrb.mxu2 %v7896_v7  ;;  %v7688_v5 = vor.u32 %v9161_v42, %v7685_v15  ;;  %v9189_v7 = vld [vmem:[#allocation14 + $0x224] sm:$0xf] }
 0x28e   :  { %4342 = vmatpush.bf16.msra.mxu0 %v7576_v16  ;;  %v7880_v16 = vor.u32 %v9209_v3, %v7877_v37 }
 0x28f   :  { %4356 = vmatpush.bf16.msra.mxu1 %v7688_v5  ;;  %v9219_v5 = vld [vmem:[#allocation14 + $0x30c] sm:$0xf0] }
 0x291   :  { %4365 = vmatpush.bf16.msrb.mxu2 %v7880_v16 }
 0x292   :  { %4343 = vmatpush.bf16.msra.mxu0 %v7560_v22  ;;  %v7861_v22 = vld [vmem:[#allocation14 + $0x2b0] sm:$0xf0] }
 0x293   :  { %v10107_v13 = vpop.f32.mrf.mxu0  ;;  %v7864_v23 = vor.u32 %v9205_v18, %v7861_v22  ;;  %4357 = vmatpush.bf16.msra.mxu1 %v7672_v44  ;;  %v9148_v18 = vld [vmem:[#allocation14 + $0xd4] sm:$0xf0]  ;;  %v7784_v44 = vor.u32 %v9185_v21, %v7781_v19  ;;  %v8021_v22 = vld [vmem:[#allocation14 + $0x3f0] sm:$0xf0]  ;;  %v7739_v19 = vld [vmem:[#allocation14 + $0x1a8] sm:$0xf] }
 0x294   :  { %v9128_v21 = vld [vmem:[#allocation14 + $0x34] sm:$0xf0] }
 0x295   :  { %v10109_v27 = vpop.f32.mrf.mxu1  ;;  %4366 = vmatpush.bf16.msrb.mxu2 %v7864_v23  ;;  %v8024_v23 = vor.u32 %v9245_v2, %v8021_v22  ;;  %v9176_v2 = vld [vmem:[#allocation14 + $0x1b4] sm:$0xf0] }
 0x296   :  { %4344 = vmatpush.bf16.msra.mxu0 %v7544_v35  ;;  %v7656_v35 = vor.u32 %v9153_v1, %v7653_v33  ;;  %v7628_v1 = vor.u32 %v9148_v18, %v7627_v17  ;;  %v7611_v33 = vld [vmem:[#allocation14 + $0xa8] sm:$0xf]  ;;  %v9225_v17 = vld [vmem:[#allocation14 + $0x344] sm:$0xf]  ;;  %v7941_v18 = vld [vmem:[#allocation14 + $0x350] sm:$0xf0]  ;;  %v7740_v28 = vor.u32 %v9176_v2, %v7739_v19 }
 0x297   :  { %v7612_v14 = vor.u32 %v9144_v34, %v7611_v33  ;;  %v9172_v34 = vld [vmem:[#allocation14 + $0x194] sm:$0xf0] }
 0x298   :  { %4358 = vmatpush.bf16.msra.mxu1 %v7656_v35  ;;  %v9241_v35 = vld [vmem:[#allocation14 + $0x3c4] sm:$0xf] }
 0x299   :  { %v10111_v41 = vpop.f32.mrf.mxu2  ;;  %4367 = vmatpush.bf16.msrb.mxu2 %v7848_v39  ;;  %v8008_v39 = vor.u32 %v9241_v35, %v8005_v38  ;;  %v9221_v35 = vld [vmem:[#allocation14 + $0x324] sm:$0xf]  ;;  %v7925_v38 = vld [vmem:[#allocation14 + $0x330] sm:$0xf0] }
 0x29a   :  { %4345 = vmatpush.bf16.msra.mxu0 %v7528_v46  ;;  %v7829_v46 = vld [vmem:[#allocation14 + $0x270] sm:$0xf0] }
 0x29b   :  { %v3465_v47 = vpop.f32.mrf.mxu0  ;;  %v7832_v43 = vor.u32 %v9197_v45, %v7829_v46  ;;  %v9140_v45 = vld [vmem:[#allocation14 + $0x94] sm:$0xf0]  ;;  %v9237_v46 = vld [vmem:[#allocation14 + $0x3a4] sm:$0xf] }
 0x29c   :  { %v3308_v47 = vadd.f32 %v10096_v31, %v2654_v4  ;;  %v7924_v31 = vor.u32 %v9223_v57, %v7923_v0 }
 0x29d   :  { %v3426_v51 = vpop.f32.mrf.mxu1  ;;  %4368 = vmatpush.bf16.msrb.mxu2 %v7832_v43  ;;  %v7989_v43 = vld [vmem:[#allocation14 + $0x3b0] sm:$0xf0] }
 0x29e   :  { %v7939_v51 = vld [vmem:[#allocation14 + $0x340] sm:$0xf]  ;;  %v3321_v40 = vadd.f32 %v10101_v26, %v3308_v47  ;;  %v7992_v47 = vor.u32 %v9237_v46, %v7989_v43  ;;  %v7707_v46 = vld [vmem:[#allocation14 + $0x168] sm:$0xf]  ;;  %v9168_v43 = vld [vmem:[#allocation14 + $0x174] sm:$0xf0] }
 0x29f   :  { %v7940_v54 = vor.u32 %v9227_v52, %v7939_v51  ;;  %v7907_v26 = vld [vmem:[#allocation14 + $0x300] sm:$0xf]  ;;  %v7596_v52 = vor.u32 %v9140_v45, %v7595_v36 }
 0x2a0   :  { %v3334_v60 = vadd.f32 %v10111_v41, %v3321_v40  ;;  %v7644_v41 = vor.u32 %v9152_v12, %v7643_v10  ;;  %v7908_v16 = vor.u32 %v9219_v5, %v7907_v26  ;;  %v9184_v40 = vld [vmem:[#allocation14 + $0x1f4] sm:$0xf0]  ;;  %v9229_v10 = vld [vmem:[#allocation14 + $0x364] sm:$0xf]  ;;  %v7957_v12 = vld [vmem:[#allocation14 + $0x370] sm:$0xf0] }
 0x2a1   :  { %v3335_v8 = vpop.f32.mrf.mxu2  ;;  %4330 = vmatpush.bf16.msra.mxu3 %v7940_v54  ;;  %4369 = vmatpush.bf16.msrb.mxu2 %v7816_v11  ;;  %v7579_v54 = vld [vmem:[#allocation14 + $0x68] sm:$0xf]  ;;  %v9233_v11 = vld [vmem:[#allocation14 + $0x384] sm:$0xf] }
 0x2a2   :  { %v7797_v8 = vld [vmem:[#allocation14 + $0x230] sm:$0xf0]  ;;  %v7580_v57 = vor.u32 %v9136_v59, %v7579_v54  ;;  %v9216_v54 = vld [vmem:[#allocation14 + $0x2f4] sm:$0xf0]  ;;  %v9146_v59 = vld [vmem:[#allocation14 + $0xcc] sm:$0xf] }
 0x2a3   :  { %v7800_v42 = vor.u32 %v9189_v7, %v7797_v8  ;;  %v9132_v7 = vld [vmem:[#allocation14 + $0x54] sm:$0xf0]  ;;  %v7755_v8 = vld [vmem:[#allocation14 + $0x1c8] sm:$0xf] }
 0x2a5   :  { %4331 = vmatpush.bf16.msra.mxu3 %v7924_v31  ;;  %4370 = vmatpush.bf16.msrb.mxu2 %v7800_v42  ;;  %v7563_v31 = vld [vmem:[#allocation14 + $0x48] sm:$0xf]  ;;  %v7960_v42 = vor.u32 %v9229_v10, %v7957_v12 }
 0x2a9   :  { %v10113_v58 = vpop.f32.mrf.mxu2  ;;  %4332 = vmatpush.bf16.msra.mxu3 %v7908_v16  ;;  %4371 = vmatpush.bf16.msrb.mxu2 %v7784_v44  ;;  %v7547_v16 = vld [vmem:[#allocation14 + $0x28] sm:$0xf]  ;;  %v7944_v44 = vor.u32 %v9225_v17, %v7941_v18 }
 0x2aa   :  { %v7659_v18 = vld [vmem:[#allocation14 + $0x108] sm:$0xf] }
 0x2ad   :  { %4377 = vmatpush.bf16.msrb.mxu3 %v8024_v23  ;;  %v7548_v23 = vor.u32 %v9128_v21, %v7547_v16  ;;  %v9138_v16 = vld [vmem:[#allocation14 + $0x8c] sm:$0xf]  ;;  %v7597_v21 = vld [vmem:[#allocation14 + $0x98] sm:$0xf0] }
 0x2ae   :  { %v7600_v17 = vor.u32 %v9138_v16, %v7597_v21  ;;  %v7709_v16 = vld [vmem:[#allocation14 + $0x178] sm:$0xf0]  ;;  %v9214_v21 = vld [vmem:[#allocation14 + $0x2ec] sm:$0xf] }
 0x2b1   :  { %v3387_v49 = vpop.f32.mrf.mxu2  ;;  %4378 = vmatpush.bf16.msrb.mxu3 %v8008_v39  ;;  %v9150_v39 = vld [vmem:[#allocation14 + $0xec] sm:$0xf] }
 0x2b2   :  { %v3386_v49 = vadd.f32 %v10113_v58, %v3373_v63 }
 0x2b3   :  { %v10116_v50 = vpop.f32.mrf.mxu1 }
 0x2b5   :  { %4379 = vmatpush.bf16.msrb.mxu3 %v7992_v47 }
 0x2b7   :  { %v3346_v6 = vpop.f32.mrf.mxu3 }
 0x2b8   :  { %v3347_v9 = vadd.f32 %v3346_v6, %v3334_v60  ;;  %v7973_v60 = vld [vmem:[#allocation14 + $0x390] sm:$0xf0]  ;;  %v7772_v6 = vor.u32 %v9184_v40, %v7771_v24  ;;  %v7629_v24 = vld [vmem:[#allocation14 + $0xd8] sm:$0xf0]  ;;  %v7708_v40 = vor.u32 %v9168_v43, %v7707_v46 }
 0x2b9   :  { %v10120_v3 = vpop.f32.mrf.mxu2  ;;  %v7976_v0 = vor.u32 %v9233_v11, %v7973_v60 }
 0x2ba   :  { %v3506_v15 = vmax.f32 %v3347_v9, 0.0  ;;  %v9180_v9 = vld [vmem:[#allocation14 + $0x1d4] sm:$0xf0] }
 0x2bb   :  { %v3478_v37 = vpop.f32.mrf.mxu1  ;;  %4380 = vmatpush.bf16.msrb.mxu3 %v7976_v0  ;;  %v7632_v0 = vor.u32 %v9146_v59, %v7629_v24  ;;  %v9174_v59 = vld [vmem:[#allocation14 + $0x1ac] sm:$0xf]  ;;  %v7741_v24 = vld [vmem:[#allocation14 + $0x1b8] sm:$0xf0] }
 0x2bc   :  { %v10122_v61 = vpack.c.bf16 %v3506_v15, %v3506_v15  ;;  %v9443_v15 = vld [vmem:[#allocation19 + $0x10] sm:$0xff]  ;;  %v7564_v37 = vor.u32 %v9132_v7, %v7563_v31  ;;  %v9212_v31 = vld [vmem:[#allocation14 + $0x2d4] sm:$0xf0]  ;;  %v9142_v7 = vld [vmem:[#allocation14 + $0xac] sm:$0xf] }
 0x2bd   :  { %v2656_v26 = vperm.slane %v9443_v15, 3 }
 0x2be   :  { %4294 = vmatmul.bf16.vlgmr.msrb.gmra.mxu0 %v10122_v61 }
 0x2bf   :  { %4390 = vmatpush.bf16.msrb.mxu0 %v7644_v41  ;;  %v3348_v62 = vpop.f32.mrf.mxu3  ;;  %v7756_v41 = vor.u32 %v9180_v9, %v7755_v8  ;;  %4381 = vmatpush.bf16.msrb.mxu3 %v7960_v42  ;;  %v3412_v22 = vadd.f32 %v10103_v56, %v2656_v26  ;;  %v7613_v8 = vld [vmem:[#allocation14 + $0xb8] sm:$0xf0]  ;;  %v7675_v26 = vld [vmem:[#allocation14 + $0x128] sm:$0xf] }
 0x2c0   :  { %v9124_v62 = vld [vmem:[#allocation14 + $0x14] sm:$0xf0]  ;;  %v7616_v15 = vor.u32 %v9142_v7, %v7613_v8  ;;  %v9170_v7 = vld [vmem:[#allocation14 + $0x18c] sm:$0xf]  ;;  %v7725_v8 = vld [vmem:[#allocation14 + $0x198] sm:$0xf0] }
 0x2c1   :  { %v3439_v4 = vpop.f32.mrf.mxu2  ;;  %v3425_v33 = vadd.f32 %v10109_v27, %v3412_v22  ;;  %v7532_v63 = vor.u32 %v9124_v62, %v7531_v29  ;;  %v7648_v27 = vor.u32 %v9150_v39, %v7645_v25  ;;  %v7851_v22 = vld [vmem:[#allocation14 + $0x288] sm:$0xf]  ;;  %v7581_v29 = vld [vmem:[#allocation14 + $0x78] sm:$0xf0]  ;;  %v9182_v62 = vld [vmem:[#allocation14 + $0x1ec] sm:$0xf] }
 0x2c2   :  { %v7928_v4 = vor.u32 %v9221_v35, %v7925_v38  ;;  %v7835_v38 = vld [vmem:[#allocation14 + $0x268] sm:$0xf]  ;;  %v9200_v25 = vld [vmem:[#allocation14 + $0x274] sm:$0xf0] }
 0x2c3   :  { %4391 = vmatpush.bf16.msrb.mxu0 %v7628_v1  ;;  %v7723_v1 = vld [vmem:[#allocation14 + $0x188] sm:$0xf]  ;;  %4382 = vmatpush.bf16.msrb.mxu3 %v7944_v44  ;;  %v9156_v44 = vld [vmem:[#allocation14 + $0x114] sm:$0xf0]  ;;  %v7836_v43 = vor.u32 %v9200_v25, %v7835_v38 }
 0x2c4   :  { %v7724_v45 = vor.u32 %v9172_v34, %v7723_v1  ;;  %v7773_v1 = vld [vmem:[#allocation14 + $0x1f8] sm:$0xf0]  ;;  %v7995_v25 = vld [vmem:[#allocation14 + $0x3a8] sm:$0xf] }
 0x2c5   :  { %v7776_v39 = vor.u32 %v9182_v62, %v7773_v1  ;;  %v7693_v62 = vld [vmem:[#allocation14 + $0x158] sm:$0xf0]  ;;  %v9210_v1 = vld [vmem:[#allocation14 + $0x2cc] sm:$0xf] }
 0x2c7   :  { %4392 = vmatpush.bf16.msrb.mxu0 %v7612_v14  ;;  %v3398_v51 = vpop.f32.mrf.mxu3  ;;  %v3438_v14 = vadd.f32 %v10120_v3, %v3425_v33  ;;  %4383 = vmatpush.bf16.msrb.mxu3 %v7928_v4  ;;  %v7660_v33 = vor.u32 %v9156_v44, %v7659_v18  ;;  %v9130_v4 = vld [vmem:[#allocation14 + $0x4c] sm:$0xf] }
 0x2c8   :  { %v3399_v55 = vadd.f32 %v3398_v51, %v3386_v49  ;;  %v7899_v49 = vld [vmem:[#allocation14 + $0x2e8] sm:$0xf]  ;;  %v9217_v51 = vld [vmem:[#allocation14 + $0x304] sm:$0xf] }
 0x2c9   :  { %v7900_v60 = vor.u32 %v9216_v54, %v7899_v49  ;;  %v7549_v54 = vld [vmem:[#allocation14 + $0x38] sm:$0xf0] }
 0x2ca   :  { %v3507_v48 = vmax.f32 %v3399_v55, 0.0 }
 0x2cb   :  { %4393 = vmatpush.bf16.msrb.mxu0 %v7596_v52  ;;  %v7909_v52 = vld [vmem:[#allocation14 + $0x310] sm:$0xf0] }
 0x2cc   :  { %v10128_v58 = vpack.c.bf16 %v3507_v48, %v3507_v48  ;;  %v7912_v55 = vor.u32 %v9217_v51, %v7909_v52  ;;  %v7691_v48 = vld [vmem:[#allocation14 + $0x148] sm:$0xf]  ;;  %v9196_v51 = vld [vmem:[#allocation14 + $0x254] sm:$0xf0]  ;;  %v9126_v52 = vld [vmem:[#allocation14 + $0x2c] sm:$0xf] }
 0x2ce   :  { %4307 = vmatmul.bf16.vlgmr.msrb.gmra.mxu1 %v10128_v58  ;;  %4346 = vmatmul.bf16.vlgmr.msra.gmra.mxu0 %v10122_v61 }
 0x2cf   :  { %4394 = vmatpush.bf16.msrb.mxu0 %v7580_v57  ;;  %4403 = vmatpush.bf16.msrb.mxu1 %v7772_v6  ;;  %v3400_v5 = vpop.f32.mrf.mxu3  ;;  %v9164_v57 = vld [vmem:[#allocation14 + $0x154] sm:$0xf0]  ;;  %v7883_v6 = vld [vmem:[#allocation14 + $0x2c8] sm:$0xf] }
 0x2d0   :  { %4384 = vmatpush.bf16.msrb.mxu3 %v7912_v55  ;;  %v7692_v12 = vor.u32 %v9164_v57, %v7691_v48  ;;  %v7884_v42 = vor.u32 %v9212_v31, %v7883_v6  ;;  %v9160_v5 = vld [vmem:[#allocation14 + $0x134] sm:$0xf0]  ;;  %v7744_v48 = vor.u32 %v9174_v59, %v7741_v24  ;;  %v9122_v6 = vld [vmem:[#allocation14 + $0xc] sm:$0xf]  ;;  %v7533_v31 = vld [vmem:[#allocation14 + $0x18] sm:$0xf0] }
 0x2d1   :  { %v7676_v19 = vor.u32 %v9160_v5, %v7675_v26  ;;  %v9192_v57 = vld [vmem:[#allocation14 + $0x234] sm:$0xf0]  ;;  %v7728_v5 = vor.u32 %v9170_v7, %v7725_v8  ;;  %v9194_v7 = vld [vmem:[#allocation14 + $0x24c] sm:$0xf]  ;;  %v7821_v8 = vld [vmem:[#allocation14 + $0x258] sm:$0xf0] }
 0x2d3   :  { %4395 = vmatpush.bf16.msrb.mxu0 %v7564_v37  ;;  %4404 = vmatpush.bf16.msrb.mxu1 %v7756_v41  ;;  %v7867_v37 = vld [vmem:[#allocation14 + $0x2a8] sm:$0xf]  ;;  %v9208_v41 = vld [vmem:[#allocation14 + $0x2b4] sm:$0xf0] }
 0x2d4   :  { %v7868_v2 = vor.u32 %v9208_v41, %v7867_v37  ;;  %v9248_v37 = vld [vmem:[#allocation14 + $0x3f4] sm:$0xf0]  ;;  %v9166_v41 = vld [vmem:[#allocation14 + $0x16c] sm:$0xf] }
 0x2d5   :  { %v7712_v44 = vor.u32 %v9166_v41, %v7709_v16  ;;  %v9186_v41 = vld [vmem:[#allocation14 + $0x20c] sm:$0xf]  ;;  %v7789_v16 = vld [vmem:[#allocation14 + $0x218] sm:$0xf0] }
 0x2d7   :  { %4396 = vmatpush.bf16.msrb.mxu0 %v7548_v23  ;;  %4405 = vmatpush.bf16.msrb.mxu1 %v7740_v28  ;;  %v3450_v56 = vpop.f32.mrf.mxu3  ;;  %v9204_v23 = vld [vmem:[#allocation14 + $0x294] sm:$0xf0]  ;;  %v9134_v28 = vld [vmem:[#allocation14 + $0x6c] sm:$0xf] }
 0x2d8   :  { %v3451_v47 = vadd.f32 %v3450_v56, %v3438_v14  ;;  %v7852_v34 = vor.u32 %v9204_v23, %v7851_v22  ;;  %v7584_v35 = vor.u32 %v9134_v28, %v7581_v29  ;;  %v7565_v14 = vld [vmem:[#allocation14 + $0x58] sm:$0xf0]  ;;  %v9178_v56 = vld [vmem:[#allocation14 + $0x1cc] sm:$0xf]  ;;  %v8011_v23 = vld [vmem:[#allocation14 + $0x3c8] sm:$0xf] }
 0x2d9   :  { %v10135_v36 = vpop.f32.mrf.mxu2  ;;  %v9244_v28 = vld [vmem:[#allocation14 + $0x3d4] sm:$0xf0]  ;;  %v9162_v29 = vld [vmem:[#allocation14 + $0x14c] sm:$0xf] }
 0x2da   :  { %v3508_v3 = vmax.f32 %v3451_v47, 0.0  ;;  %v7568_v47 = vor.u32 %v9130_v4, %v7565_v14  ;;  %v7696_v38 = vor.u32 %v9162_v29, %v7693_v62  ;;  %v9240_v4 = vld [vmem:[#allocation14 + $0x3b4] sm:$0xf0]  ;;  %v9158_v14 = vld [vmem:[#allocation14 + $0x12c] sm:$0xf] }
 0x2db   :  { %4397 = vmatpush.bf16.msrb.mxu0 %v7532_v63  ;;  %4406 = vmatpush.bf16.msrb.mxu1 %v7724_v45  ;;  %v7757_v63 = vld [vmem:[#allocation14 + $0x1d8] sm:$0xf0]  ;;  %v9234_v62 = vld [vmem:[#allocation14 + $0x38c] sm:$0xf] }
 0x2dc   :  { %v10137_v11 = vpack.c.bf16 %v3508_v3, %v3508_v3  ;;  %v9444_v45 = vld [vmem:[#allocation19 + $0x18] sm:$0xff]  ;;  %v7760_v49 = vor.u32 %v9178_v56, %v7757_v63  ;;  %v9206_v63 = vld [vmem:[#allocation14 + $0x2ac] sm:$0xf] }
 0x2dd   :  { %v2657_v46 = vperm.slane %v9444_v45, 3  ;;  %v7677_v56 = vld [vmem:[#allocation14 + $0x138] sm:$0xf0] }
 0x2de   :  { %4320 = vmatmul.bf16.vlgmr.msra.gmra.mxu2 %v10137_v11  ;;  %4359 = vmatmul.bf16.vlgmr.msra.gmra.mxu1 %v10128_v58  ;;  %v7869_v45 = vld [vmem:[#allocation14 + $0x2b8] sm:$0xf0] }
 0x2df   :  { %4442 = vmatpush.bf16.msra.mxu0 %v7648_v27  ;;  %4407 = vmatpush.bf16.msrb.mxu1 %v7708_v40  ;;  %v3452_v10 = vpop.f32.mrf.mxu3  ;;  %v7819_v27 = vld [vmem:[#allocation14 + $0x248] sm:$0xf]  ;;  %v3464_v55 = vadd.f32 %v10107_v13, %v2657_v46  ;;  %v7552_v40 = vor.u32 %v9126_v52, %v7549_v54  ;;  %v7996_v46 = vor.u32 %v9240_v4, %v7995_v25  ;;  %v9202_v52 = vld [vmem:[#allocation14 + $0x28c] sm:$0xf]  ;;  %v7853_v54 = vld [vmem:[#allocation14 + $0x298] sm:$0xf0] }
 0x2e0   :  { %4398 = vmatmul.bf16.vlgmr.msrb.gmra.mxu0 %v10122_v61  ;;  %4416 = vmatpush.bf16.msra.mxu2 %v7900_v60  ;;  %v7820_v3 = vor.u32 %v9196_v51, %v7819_v27  ;;  %v7803_v60 = vld [vmem:[#allocation14 + $0x228] sm:$0xf]  ;;  %v9236_v27 = vld [vmem:[#allocation14 + $0x394] sm:$0xf0]  ;;  %v7661_v51 = vld [vmem:[#allocation14 + $0x118] sm:$0xf0] }
 0x2e1   :  { %v3491_v9 = vpop.f32.mrf.mxu2  ;;  %v7804_v13 = vor.u32 %v9192_v57, %v7803_v60  ;;  %v9198_v60 = vld [vmem:[#allocation14 + $0x26c] sm:$0xf]  ;;  %v7949_v25 = vld [vmem:[#allocation14 + $0x358] sm:$0xf0] }
 0x2e3   :  { %4443 = vmatpush.bf16.msra.mxu0 %v7632_v0  ;;  %4408 = vmatpush.bf16.msrb.mxu1 %v7692_v12  ;;  %v3477_v0 = vadd.f32 %v10116_v50, %v3464_v55  ;;  %v7536_v12 = vor.u32 %v9122_v6, %v7533_v31  ;;  %v8027_v50 = vld [vmem:[#allocation14 + $0x3e8] sm:$0xf]  ;;  %v7856_v55 = vor.u32 %v9202_v52, %v7853_v54  ;;  %v9228_v31 = vld [vmem:[#allocation14 + $0x354] sm:$0xf0]  ;;  %v8115_v52 = vld [vmem:[#allocation16 + $0xa0] sm:$0xf] }
 0x2e4   :  { %4417 = vmatpush.bf16.msra.mxu2 %v7884_v42  ;;  %v7787_v42 = vld [vmem:[#allocation14 + $0x208] sm:$0xf]  ;;  %v9271_v54 = vld [vmem:[#allocation16 + $0xac] sm:$0xf0] }
 0x2e5   :  { %v3490_v9 = vadd.f32 %v10135_v36, %v3477_v0  ;;  %v7837_v0 = vld [vmem:[#allocation14 + $0x278] sm:$0xf0]  ;;  %v7947_v6 = vld [vmem:[#allocation14 + $0x348] sm:$0xf] }
 0x2e6   :  { %v7840_v57 = vor.u32 %v9198_v60, %v7837_v0  ;;  %v8083_v60 = vld [vmem:[#allocation16 + $0x60] sm:$0xf]  ;;  %v9263_v0 = vld [vmem:[#allocation16 + $0x6c] sm:$0xf0] }
 0x2e7   :  { %4444 = vmatpush.bf16.msra.mxu0 %v7616_v15  ;;  %4409 = vmatpush.bf16.msrb.mxu1 %v7676_v19  ;;  %v9188_v15 = vld [vmem:[#allocation14 + $0x214] sm:$0xf0]  ;;  %v7901_v19 = vld [vmem:[#allocation14 + $0x2f8] sm:$0xf0] }
 0x2e8   :  { %4418 = vmatpush.bf16.msra.mxu2 %v7868_v2  ;;  %v7788_v36 = vor.u32 %v9188_v15, %v7787_v42  ;;  %v7904_v22 = vor.u32 %v9214_v21, %v7901_v19  ;;  %v9190_v42 = vld [vmem:[#allocation14 + $0x22c] sm:$0xf]  ;;  %v7805_v15 = vld [vmem:[#allocation14 + $0x238] sm:$0xf0] }
 0x2e9   :  { %v9246_v21 = vld [vmem:[#allocation14 + $0x3ec] sm:$0xf]  ;;  %v8029_v19 = vld [vmem:[#allocation14 + $0x3f8] sm:$0xf0] }
 0x2eb   :  { %4445 = vmatpush.bf16.msra.mxu0 %v7600_v17  ;;  %4410 = vmatpush.bf16.msrb.mxu1 %v7660_v33  ;;  %v8028_v17 = vor.u32 %v9248_v37, %v8027_v50  ;;  %v7885_v33 = vld [vmem:[#allocation14 + $0x2d8] sm:$0xf0]  ;;  %v7915_v50 = vld [vmem:[#allocation14 + $0x308] sm:$0xf]  ;;  %v9220_v37 = vld [vmem:[#allocation14 + $0x314] sm:$0xf0] }
 0x2ec   :  { %4419 = vmatpush.bf16.msra.mxu2 %v7852_v34 }
 0x2ee   :  { %4372 = vmatmul.bf16.vlgmr.msrb.gmra.mxu2 %v10137_v11  ;;  %4411 = vmatmul.bf16.vlgmr.msrb.gmra.mxu1 %v10128_v58 }
 0x2ef   :  { %4446 = vmatpush.bf16.msra.mxu0 %v7584_v35  ;;  %4455 = vmatpush.bf16.msra.mxu1 %v7776_v39  ;;  %v8012_v35 = vor.u32 %v9244_v28, %v8011_v23  ;;  %v7888_v39 = vor.u32 %v9210_v1, %v7885_v33  ;;  %v9238_v23 = vld [vmem:[#allocation14 + $0x3ac] sm:$0xf]  ;;  %v7997_v28 = vld [vmem:[#allocation14 + $0x3b8] sm:$0xf0] }
 0x2f0   :  { %4420 = vmatpush.bf16.msra.mxu2 %v7836_v43  ;;  %v7872_v43 = vor.u32 %v9206_v63, %v7869_v45  ;;  %v8000_v29 = vor.u32 %v9238_v23, %v7997_v28  ;;  %v7981_v1 = vld [vmem:[#allocation14 + $0x398] sm:$0xf0]  ;;  %v8147_v63 = vld [vmem:[#allocation16 + $0xe0] sm:$0xf]  ;;  %v9279_v45 = vld [vmem:[#allocation16 + $0xec] sm:$0xf0] }
 0x2f1   :  { %v7984_v33 = vor.u32 %v9234_v62, %v7981_v1  ;;  %v8211_v28 = vld [vmem:[#allocation16 + $0x160] sm:$0xf] }
 0x2f2   :  { %v8403_v62 = vld [vmem:[#allocation16 + $0x2e0] sm:$0xf] }
 0x2f3   :  { %4447 = vmatpush.bf16.msra.mxu0 %v7568_v47  ;;  %4456 = vmatpush.bf16.msra.mxu1 %v7760_v49  ;;  %v7979_v47 = vld [vmem:[#allocation14 + $0x388] sm:$0xf]  ;;  %v9154_v49 = vld [vmem:[#allocation14 + $0x10c] sm:$0xf] }
 0x2f4   :  { %4421 = vmatpush.bf16.msra.mxu2 %v7820_v3  ;;  %v7980_v59 = vor.u32 %v9236_v27, %v7979_v47  ;;  %v7664_v24 = vor.u32 %v9154_v49, %v7661_v51  ;;  %v7963_v3 = vld [vmem:[#allocation14 + $0x368] sm:$0xf]  ;;  %v9218_v47 = vld [vmem:[#allocation14 + $0x30c] sm:$0xf]  ;;  %v7917_v27 = vld [vmem:[#allocation14 + $0x318] sm:$0xf0] }
 0x2f5   :  { %v7920_v51 = vor.u32 %v9218_v47, %v7917_v27  ;;  %v8179_v27 = vld [vmem:[#allocation16 + $0x120] sm:$0xf] }
 0x2f7   :  { %v3502_v10 = vpop.f32.mrf.mxu3  ;;  %4448 = vmatpush.bf16.msra.mxu0 %v7552_v40  ;;  %4457 = vmatpush.bf16.msra.mxu1 %v7744_v48  ;;  %v9232_v40 = vld [vmem:[#allocation14 + $0x374] sm:$0xf0] }
 0x2f8   :  { %v3503_v26 = vadd.f32 %v3502_v10, %v3490_v9  ;;  %4422 = vmatpush.bf16.msra.mxu2 %v7804_v13  ;;  %v7964_v48 = vor.u32 %v9232_v40, %v7963_v3  ;;  %v7948_v9 = vor.u32 %v9228_v31, %v7947_v6  ;;  %v7824_v10 = vor.u32 %v9194_v7, %v7821_v8  ;;  %v7931_v13 = vld [vmem:[#allocation14 + $0x328] sm:$0xf]  ;;  %v9311_v6 = vld [vmem:[#allocation16 + $0x1ec] sm:$0xf0]  ;;  %v8067_v7 = vld [vmem:[#allocation16 + $0x40] sm:$0xf] }
 0x2f9   :  { %v9259_v8 = vld [vmem:[#allocation16 + $0x4c] sm:$0xf0] }
 0x2fa   :  { %v3509_v2 = vmax.f32 %v3503_v26, 0.0 }
 0x2fb   :  { %4449 = vmatpush.bf16.msra.mxu0 %v7536_v12  ;;  %4458 = vmatpush.bf16.msra.mxu1 %v7728_v5  ;;  %v9224_v12 = vld [vmem:[#allocation14 + $0x334] sm:$0xf0]  ;;  %v7808_v5 = vor.u32 %v9190_v42, %v7805_v15  ;;  %v9255_v15 = vld [vmem:[#allocation16 + $0x2c] sm:$0xf0] }
 0x2fc   :  { %v10147_v18 = vpack.c.bf16 %v3509_v2, %v3509_v2  ;;  %4423 = vmatpush.bf16.msra.mxu2 %v7788_v36  ;;  %v7932_v26 = vor.u32 %v9224_v12, %v7931_v13  ;;  %v7916_v2 = vor.u32 %v9220_v37, %v7915_v50  ;;  %v8032_v36 = vor.u32 %v9246_v21, %v8029_v19  ;;  %v9307_v13 = vld [vmem:[#allocation16 + $0x1cc] sm:$0xf0]  ;;  %v8035_v37 = vld [vmem:[#allocation16] sm:$0xf] }
 0x2fd   :  { %v9303_v50 = vld [vmem:[#allocation16 + $0x1ac] sm:$0xf0]  ;;  %v8227_v21 = vld [vmem:[#allocation16 + $0x180] sm:$0xf] }
 0x2fe   :  { %4333 = vmatmul.bf16.vlgmr.msra.gmra.mxu3 %v10147_v18  ;;  %4450 = vmatmul.bf16.vlgmr.msra.gmra.mxu0 %v10122_v61  ;;  %v7680_v61 = vor.u32 %v9158_v14, %v7677_v56  ;;  %v9222_v14 = vld [vmem:[#allocation14 + $0x32c] sm:$0xf]  ;;  %v7933_v56 = vld [vmem:[#allocation14 + $0x338] sm:$0xf0]  ;;  %v9299_v19 = vld [vmem:[#allocation16 + $0x18c] sm:$0xf0] }
 0x2ff   :  { %4429 = vmatpush.bf16.msra.mxu3 %v8028_v17  ;;  %v3504_v34 = vpop.f32.mrf.mxu3  ;;  %4459 = vmatpush.bf16.msra.mxu1 %v7712_v44  ;;  %v9242_v17 = vld [vmem:[#allocation14 + $0x3cc] sm:$0xf]  ;;  %v8013_v44 = vld [vmem:[#allocation14 + $0x3d8] sm:$0xf0] }
 0x300   :  { %4468 = vmatpush.bf16.msrb.mxu2 %v7904_v22  ;;  %v8016_v22 = vor.u32 %v9242_v17, %v8013_v44  ;;  %v9230_v34 = vld [vmem:[#allocation14 + $0x36c] sm:$0xf]  ;;  %v8149_v17 = vld [vmem:[#allocation16 + $0xf0] sm:$0xf0] }
 0x301   :  { %4424 = vmatmul.bf16.vlgmr.msra.gmra.mxu2 %v10137_v11 }
 0x303   :  { %4430 = vmatpush.bf16.msra.mxu3 %v8012_v35  ;;  %4460 = vmatpush.bf16.msra.mxu1 %v7696_v38  ;;  %v7965_v35 = vld [vmem:[#allocation14 + $0x378] sm:$0xf0] }
 0x304   :  { %4469 = vmatpush.bf16.msrb.mxu2 %v7888_v39  ;;  %v7968_v38 = vor.u32 %v9230_v34, %v7965_v35  ;;  %v9226_v39 = vld [vmem:[#allocation14 + $0x34c] sm:$0xf]  ;;  %v9273_v34 = vld [vmem:[#allocation16 + $0xc4] sm:$0xf]  ;;  %v8133_v35 = vld [vmem:[#allocation16 + $0xd0] sm:$0xf0] }
 0x305   :  { %v7952_v4 = vor.u32 %v9226_v39, %v7949_v25  ;;  %v8136_v39 = vor.u32 %v9273_v34, %v8133_v35  ;;  %v8195_v25 = vld [vmem:[#allocation16 + $0x140] sm:$0xf] }
 0x306   :  { %v8307_v35 = vld [vmem:[#allocation16 + $0x220] sm:$0xf] }
 0x307   :  { %4431 = vmatpush.bf16.msra.mxu3 %v7996_v46  ;;  %4461 = vmatpush.bf16.msra.mxu1 %v7680_v61  ;;  %v8148_v46 = vor.u32 %v9279_v45, %v8147_v63  ;;  %v9275_v61 = vld [vmem:[#allocation16 + $0xcc] sm:$0xf0] }
 0x308   :  { %4470 = vmatpush.bf16.msrb.mxu2 %v7872_v43  ;;  %v7936_v43 = vor.u32 %v9222_v14, %v7933_v56  ;;  %v8387_v14 = vld [vmem:[#allocation16 + $0x2c0] sm:$0xf]  ;;  %v9339_v56 = vld [vmem:[#allocation16 + $0x2cc] sm:$0xf0] }
 0x309   :  { %5278 = vmatpush.bf16.msrb.mxu0 %v8148_v46  ;;  %v8388_v45 = vor.u32 %v9339_v56, %v8387_v14  ;;  %v9269_v46 = vld [vmem:[#allocation16 + $0xa4] sm:$0xf]  ;;  %v8037_v14 = vld [vmem:[#allocation16 + $0x10] sm:$0xf0] }
 0x30a   :  { %v9297_v56 = vld [vmem:[#allocation16 + $0x184] sm:$0xf] }
 0x30b   :  { %4432 = vmatpush.bf16.msra.mxu3 %v7980_v59  ;;  %4462 = vmatpush.bf16.msra.mxu1 %v7664_v24  ;;  %v8099_v59 = vld [vmem:[#allocation16 + $0x80] sm:$0xf]  ;;  %v8116_v24 = vor.u32 %v9271_v54, %v8115_v52  ;;  %v9335_v54 = vld [vmem:[#allocation16 + $0x2ac] sm:$0xf0] }
 0x30c   :  { %4471 = vmatpush.bf16.msrb.mxu2 %v7856_v55  ;;  %v9267_v55 = vld [vmem:[#allocation16 + $0x8c] sm:$0xf0] }
 0x30d   :  { %v8100_v3 = vor.u32 %v9267_v55, %v8099_v59  ;;  %v9265_v59 = vld [vmem:[#allocation16 + $0x84] sm:$0xf] }
 0x30e   :  { %4385 = vmatmul.bf16.vlgmr.msrb.gmra.mxu3 %v10147_v18  ;;  %4463 = vmatmul.bf16.vlgmr.msra.gmra.mxu1 %v10128_v58  ;;  %v7792_v58 = vor.u32 %v9186_v41, %v7789_v16  ;;  %v9251_v41 = vld [vmem:[#allocation16 + $0xc] sm:$0xf0] }
 0x30f   :  { %4433 = vmatpush.bf16.msra.mxu3 %v7964_v48  ;;  %v8275_v48 = vld [vmem:[#allocation16 + $0x1e0] sm:$0xf] }
 0x310   :  { %4472 = vmatpush.bf16.msrb.mxu2 %v7840_v57  ;;  %v8084_v57 = vor.u32 %v9263_v0, %v8083_v60  ;;  %v8276_v31 = vor.u32 %v9311_v6, %v8275_v48  ;;  %v8163_v60 = vld [vmem:[#allocation16 + $0x100] sm:$0xf]  ;;  %v9283_v0 = vld [vmem:[#allocation16 + $0x10c] sm:$0xf0] }
 0x311   :  { %v8355_v48 = vld [vmem:[#allocation16 + $0x280] sm:$0xf]  ;;  %v9331_v6 = vld [vmem:[#allocation16 + $0x28c] sm:$0xf0] }
 0x312   :  { %5291 = vmatpush.bf16.msrb.mxu1 %v8276_v31  ;;  %v9261_v31 = vld [vmem:[#allocation16 + $0x64] sm:$0xf] }
 0x313   :  { %4434 = vmatpush.bf16.msra.mxu3 %v7948_v9  ;;  %v8259_v9 = vld [vmem:[#allocation16 + $0x1c0] sm:$0xf] }
 0x314   :  { %4473 = vmatpush.bf16.msrb.mxu2 %v7824_v10  ;;  %v8068_v10 = vor.u32 %v9259_v8, %v8067_v7  ;;  %v8260_v12 = vor.u32 %v9307_v13, %v8259_v9  ;;  %v8085_v7 = vld [vmem:[#allocation16 + $0x70] sm:$0xf0]  ;;  %v8356_v8 = vor.u32 %v9331_v6, %v8355_v48  ;;  %v9371_v48 = vld [vmem:[#allocation16 + $0x3cc] sm:$0xf0]  ;;  %v9289_v6 = vld [vmem:[#allocation16 + $0x144] sm:$0xf] }
 0x315   :  { %v8088_v9 = vor.u32 %v9261_v31, %v8085_v7  ;;  %v8277_v13 = vld [vmem:[#allocation16 + $0x1f0] sm:$0xf0]  ;;  %v9337_v7 = vld [vmem:[#allocation16 + $0x2c4] sm:$0xf] }
 0x316   :  { %5292 = vmatpush.bf16.msrb.mxu1 %v8260_v12  ;;  %v8339_v12 = vld [vmem:[#allocation16 + $0x260] sm:$0xf]  ;;  %v8197_v31 = vld [vmem:[#allocation16 + $0x150] sm:$0xf0] }
 0x317   :  { %4435 = vmatpush.bf16.msra.mxu3 %v7932_v26  ;;  %v8243_v26 = vld [vmem:[#allocation16 + $0x1a0] sm:$0xf] }
 0x318   :  { %4474 = vmatpush.bf16.msrb.mxu2 %v7808_v5  ;;  %v8244_v16 = vor.u32 %v9303_v50, %v8243_v26  ;;  %v9257_v50 = vld [vmem:[#allocation16 + $0x44] sm:$0xf] }
 0x31a   :  { %5293 = vmatpush.bf16.msrb.mxu1 %v8244_v16 }
 0x31b   :  { %4436 = vmatpush.bf16.msra.mxu3 %v7916_v2  ;;  %v8036_v2 = vor.u32 %v9251_v41, %v8035_v37  ;;  %v8069_v37 = vld [vmem:[#allocation16 + $0x50] sm:$0xf0]  ;;  %v9305_v41 = vld [vmem:[#allocation16 + $0x1c4] sm:$0xf] }
 0x31c   :  { %4475 = vmatpush.bf16.msrb.mxu2 %v7792_v58  ;;  %v8228_v58 = vor.u32 %v9299_v19, %v8227_v21  ;;  %v8072_v16 = vor.u32 %v9257_v50, %v8069_v37  ;;  %v8261_v21 = vld [vmem:[#allocation16 + $0x1d0] sm:$0xf0]  ;;  %v9333_v50 = vld [vmem:[#allocation16 + $0x2a4] sm:$0xf] }
 0x31d   :  { %v8264_v19 = vor.u32 %v9305_v41, %v8261_v21 }
 0x31e   :  { %4437 = vmatmul.bf16.vlgmr.msra.gmra.mxu3 %v10147_v18  ;;  %5294 = vmatpush.bf16.msrb.mxu1 %v8228_v58  ;;  %v9323_v58 = vld [vmem:[#allocation16 + $0x24c] sm:$0xf0] }
 0x31f   :  { %4481 = vmatpush.bf16.msrb.mxu3 %v8032_v36  ;;  %4476 = vmatmul.bf16.vlgmr.msrb.gmra.mxu2 %v10137_v11  ;;  %v8131_v11 = vld [vmem:[#allocation16 + $0xc0] sm:$0xf]  ;;  %v9277_v36 = vld [vmem:[#allocation16 + $0xe4] sm:$0xf] }
 0x320   :  { %v8132_v49 = vor.u32 %v9275_v61, %v8131_v11  ;;  %v8152_v44 = vor.u32 %v9277_v36, %v8149_v17  ;;  %v8117_v11 = vld [vmem:[#allocation16 + $0xb0] sm:$0xf0]  ;;  %v9253_v17 = vld [vmem:[#allocation16 + $0x24] sm:$0xf] }
 0x321   :  { %v8120_v61 = vor.u32 %v9269_v46, %v8117_v11  ;;  %v8291_v11 = vld [vmem:[#allocation16 + $0x200] sm:$0xf] }
 0x322   :  { %5279 = vmatpush.bf16.msrb.mxu0 %v8132_v49  ;;  %v9287_v49 = vld [vmem:[#allocation16 + $0x12c] sm:$0xf0] }
 0x323   :  { %4482 = vmatpush.bf16.msrb.mxu3 %v8016_v22  ;;  %v8180_v52 = vor.u32 %v9287_v49, %v8179_v27  ;;  %v9375_v27 = vld [vmem:[#allocation16 + $0x3ec] sm:$0xf0]  ;;  %v9293_v49 = vld [vmem:[#allocation16 + $0x164] sm:$0xf] }
 0x326   :  { %5280 = vmatpush.bf16.msrb.mxu0 %v8116_v24  ;;  %v8101_v24 = vld [vmem:[#allocation16 + $0x90] sm:$0xf0] }
 0x327   :  { %4483 = vmatpush.bf16.msrb.mxu3 %v8000_v29  ;;  %v9295_v29 = vld [vmem:[#allocation16 + $0x16c] sm:$0xf0] }
 0x328   :  { %v8212_v1 = vor.u32 %v9295_v29, %v8211_v28  ;;  %v9301_v28 = vld [vmem:[#allocation16 + $0x1a4] sm:$0xf] }
 0x32a   :  { %5281 = vmatpush.bf16.msrb.mxu0 %v8100_v3  ;;  %5295 = vmatpush.bf16.msrb.mxu1 %v8212_v1  ;;  %v8104_v3 = vor.u32 %v9265_v59, %v8101_v24  ;;  %v8245_v1 = vld [vmem:[#allocation16 + $0x1b0] sm:$0xf0]  ;;  %v9341_v24 = vld [vmem:[#allocation16 + $0x2e4] sm:$0xf] }
 0x32b   :  { %4484 = vmatpush.bf16.msrb.mxu3 %v7984_v33  ;;  %v9343_v33 = vld [vmem:[#allocation16 + $0x2ec] sm:$0xf0] }
 0x32e   :  { %5282 = vmatpush.bf16.msrb.mxu0 %v8084_v57  ;;  %v8164_v57 = vor.u32 %v9283_v0, %v8163_v60  ;;  %v8515_v0 = vld [vmem:[#allocation16 + $0x3c0] sm:$0xf] }
 0x32f   :  { %4485 = vmatpush.bf16.msrb.mxu3 %v7968_v38  ;;  %v8404_v38 = vor.u32 %v9343_v33, %v8403_v62  ;;  %v8248_v33 = vor.u32 %v9301_v28, %v8245_v1  ;;  %v9329_v28 = vld [vmem:[#allocation16 + $0x284] sm:$0xf] }
 0x331   :  { %5304 = vmatpush.bf16.msra.mxu2 %v8404_v38  ;;  %v9319_v38 = vld [vmem:[#allocation16 + $0x22c] sm:$0xf0] }
 0x332   :  { %5283 = vmatpush.bf16.msrb.mxu0 %v8068_v10  ;;  %v9309_v10 = vld [vmem:[#allocation16 + $0x1e4] sm:$0xf] }
 0x333   :  { %4486 = vmatpush.bf16.msrb.mxu3 %v7952_v4  ;;  %v9291_v4 = vld [vmem:[#allocation16 + $0x14c] sm:$0xf0] }
 0x334   :  { %v8196_v63 = vor.u32 %v9291_v4, %v8195_v25  ;;  %v8308_v25 = vor.u32 %v9319_v38, %v8307_v35  ;;  %v9249_v4 = vld [vmem:[#allocation16 + $0x4] sm:$0xf]  ;;  %v8467_v38 = vld [vmem:[#allocation16 + $0x360] sm:$0xf] }
 0x335   :  { %5305 = vmatpush.bf16.msra.mxu2 %v8388_v45  ;;  %v8229_v45 = vld [vmem:[#allocation16 + $0x190] sm:$0xf0] }
 0x336   :  { %5296 = vmatpush.bf16.msrb.mxu1 %v8196_v63  ;;  %v8040_v63 = vor.u32 %v9249_v4, %v8037_v14  ;;  %v8232_v46 = vor.u32 %v9297_v56, %v8229_v45  ;;  %v9325_v14 = vld [vmem:[#allocation16 + $0x264] sm:$0xf]  ;;  %v8341_v56 = vld [vmem:[#allocation16 + $0x270] sm:$0xf0] }
 0x337   :  { %4487 = vmatpush.bf16.msrb.mxu3 %v7936_v43 }
 0x33a   :  { %5297 = vmatpush.bf16.msrb.mxu1 %v8180_v52 }
 0x33b   :  { %4488 = vmatpush.bf16.msrb.mxu3 %v7920_v51  ;;  %v10157_v40 = vpop.f32.mrf.mxu0  ;;  %v8371_v51 = vld [vmem:[#allocation16 + $0x2a0] sm:$0xf] }
 0x33c   :  { %v8372_v55 = vor.u32 %v9335_v54, %v8371_v51  ;;  %v8213_v51 = vld [vmem:[#allocation16 + $0x170] sm:$0xf0] }
 0x33d   :  { %v8216_v59 = vor.u32 %v9293_v49, %v8213_v51  ;;  %v8325_v49 = vld [vmem:[#allocation16 + $0x250] sm:$0xf0] }
 0x33e   :  { %4489 = vmatmul.bf16.vlgmr.msrb.gmra.mxu3 %v10147_v18  ;;  %v8051_v18 = vld [vmem:[#allocation16 + $0x20] sm:$0xf]  ;;  %5306 = vmatpush.bf16.msra.mxu2 %v8372_v55  ;;  %v8405_v55 = vld [vmem:[#allocation16 + $0x2f0] sm:$0xf0] }
 0x33f   :  { %v8052_v5 = vor.u32 %v9255_v15, %v8051_v18  ;;  %v9327_v18 = vld [vmem:[#allocation16 + $0x26c] sm:$0xf0]  ;;  %5298 = vmatpush.bf16.msrb.mxu1 %v8164_v57  ;;  %v8516_v57 = vor.u32 %v9371_v48, %v8515_v0  ;;  %v9317_v0 = vld [vmem:[#allocation16 + $0x224] sm:$0xf] }
 0x340   :  { %v8340_v26 = vor.u32 %v9327_v18, %v8339_v12  ;;  %v9367_v12 = vld [vmem:[#allocation16 + $0x3ac] sm:$0xf0]  ;;  %v9285_v18 = vld [vmem:[#allocation16 + $0x124] sm:$0xf] }
 0x341   :  { %5284 = vmatpush.bf16.msrb.mxu0 %v8052_v5 }
 0x342   :  { %5307 = vmatpush.bf16.msra.mxu2 %v8356_v8  ;;  %v8200_v8 = vor.u32 %v9289_v6, %v8197_v31  ;;  %v9280_v6 = vld [vmem:[#allocation16 + $0xf4] sm:$0xf0] }
 0x343   :  { %v4297_v42 = vpop.f32.mrf.mxu0 }
 0x344   :  { %v8280_v42 = vor.u32 %v9309_v10, %v8277_v13  ;;  %v8499_v13 = vld [vmem:[#allocation16 + $0x3a0] sm:$0xf] }
 0x345   :  { %5285 = vmatpush.bf16.msrb.mxu0 %v8036_v2  ;;  %v8323_v2 = vld [vmem:[#allocation16 + $0x240] sm:$0xf] }
 0x346   :  { %5343 = vmatpush.bf16.msra.mxu1 %v8280_v42  ;;  %5308 = vmatpush.bf16.msra.mxu2 %v8340_v26  ;;  %v8324_v36 = vor.u32 %v9323_v58, %v8323_v2  ;;  %v8500_v42 = vor.u32 %v9367_v12, %v8499_v13  ;;  %v8181_v26 = vld [vmem:[#allocation16 + $0x130] sm:$0xf0]  ;;  %v8483_v2 = vld [vmem:[#allocation16 + $0x380] sm:$0xf]  ;;  %v9363_v58 = vld [vmem:[#allocation16 + $0x38c] sm:$0xf0] }
 0x347   :  { %v8184_v41 = vor.u32 %v9285_v18, %v8181_v26  ;;  %v9347_v13 = vld [vmem:[#allocation16 + $0x30c] sm:$0xf0]  ;;  %v9313_v18 = vld [vmem:[#allocation16 + $0x204] sm:$0xf]  ;;  %v8293_v26 = vld [vmem:[#allocation16 + $0x210] sm:$0xf0] }
 0x349   :  { %5330 = vmatpush.bf16.msra.mxu0 %v8152_v44  ;;  %v8053_v44 = vld [vmem:[#allocation16 + $0x30] sm:$0xf0] }
 0x34a   :  { %5344 = vmatpush.bf16.msra.mxu1 %v8264_v19  ;;  %v8056_v62 = vor.u32 %v9253_v17, %v8053_v44  ;;  %5309 = vmatpush.bf16.msra.mxu2 %v8324_v36  ;;  %v8484_v36 = vor.u32 %v9363_v58, %v8483_v2  ;;  %v9281_v17 = vld [vmem:[#allocation16 + $0x104] sm:$0xf]  ;;  %v8165_v44 = vld [vmem:[#allocation16 + $0x110] sm:$0xf0] }
 0x34b   :  { %v10159_v22 = vpop.f32.mrf.mxu1  ;;  %v10161_v23 = vpop.f32.mrf.mxu0 }
 0x34d   :  { %5331 = vmatpush.bf16.msra.mxu0 %v8136_v39 }
 0x34e   :  { %5345 = vmatpush.bf16.msra.mxu1 %v8248_v33  ;;  %5310 = vmatpush.bf16.msra.mxu2 %v8308_v25  ;;  %v8168_v33 = vor.u32 %v9281_v17, %v8165_v44  ;;  %v8123_v17 = vld [vmem:[#allocation16 + $0xa8] sm:$0xf] }
 0x351   :  { %5332 = vmatpush.bf16.msra.mxu0 %v8120_v61  ;;  %v9315_v61 = vld [vmem:[#allocation16 + $0x20c] sm:$0xf0] }
 0x352   :  { %5346 = vmatpush.bf16.msra.mxu1 %v8232_v46  ;;  %v8344_v46 = vor.u32 %v9325_v14, %v8341_v56  ;;  %v8107_v14 = vld [vmem:[#allocation16 + $0x88] sm:$0xf] }
 0x353   :  { %v4310_v43 = vpop.f32.mrf.mxu1  ;;  %v4349_v47 = vpop.f32.mrf.mxu0 }
 0x354   :  { %v8531_v43 = vld [vmem:[#allocation16 + $0x3e0] sm:$0xf]  ;;  %v8292_v47 = vor.u32 %v9315_v61, %v8291_v11 }
 0x355   :  { %5333 = vmatpush.bf16.msra.mxu0 %v8104_v3  ;;  %v8532_v54 = vor.u32 %v9375_v27, %v8531_v43  ;;  %v8408_v3 = vor.u32 %v9341_v24, %v8405_v55  ;;  %v8451_v61 = vld [vmem:[#allocation16 + $0x340] sm:$0xf]  ;;  %v9355_v43 = vld [vmem:[#allocation16 + $0x34c] sm:$0xf0]  ;;  %v9321_v27 = vld [vmem:[#allocation16 + $0x244] sm:$0xf] }
 0x356   :  { %5311 = vmatpush.bf16.msra.mxu2 %v8292_v47  ;;  %5347 = vmatpush.bf16.msra.mxu1 %v8216_v59  ;;  %v8452_v47 = vor.u32 %v9355_v43, %v8451_v61  ;;  %v8435_v24 = vld [vmem:[#allocation16 + $0x320] sm:$0xf]  ;;  %v9351_v55 = vld [vmem:[#allocation16 + $0x32c] sm:$0xf0] }
 0x357   :  { %5317 = vmatpush.bf16.msra.mxu3 %v8532_v54 }
 0x359   :  { %5334 = vmatpush.bf16.msra.mxu0 %v8088_v9  ;;  %v8389_v9 = vld [vmem:[#allocation16 + $0x2d0] sm:$0xf0] }
 0x35a   :  { %5356 = vmatpush.bf16.msrb.mxu2 %v8408_v3  ;;  %v8392_v10 = vor.u32 %v9337_v7, %v8389_v9  ;;  %5348 = vmatpush.bf16.msra.mxu1 %v8200_v8  ;;  %v8436_v3 = vor.u32 %v9351_v55, %v8435_v24  ;;  %v10184_v8 = vld [vmem:[#allocation19 + $0x8] sm:$0xff]  ;;  %v10196_v24 = vld [vmem:[#allocation19 + $0x10] sm:$0xff] }
 0x35b   :  { %v10163_v15 = vpop.f32.mrf.mxu1  ;;  %5318 = vmatpush.bf16.msra.mxu3 %v8516_v57  ;;  %v8155_v57 = vld [vmem:[#allocation16 + $0xe8] sm:$0xf]  ;;  %v3644_v55 = vperm.slane %v10196_v24, 4 }
 0x35c   :  { %v8156_v12 = vor.u32 %v9280_v6, %v8155_v57  ;;  %v8267_v57 = vld [vmem:[#allocation16 + $0x1c8] sm:$0xf] }
 0x35d   :  { %v10165_v5 = vpop.f32.mrf.mxu0  ;;  %5335 = vmatpush.bf16.msra.mxu0 %v8072_v16  ;;  %v8373_v16 = vld [vmem:[#allocation16 + $0x2b0] sm:$0xf0] }
 0x35e   :  { %5357 = vmatpush.bf16.msrb.mxu2 %v8392_v10  ;;  %v8376_v21 = vor.u32 %v9333_v50, %v8373_v16  ;;  %5349 = vmatpush.bf16.msra.mxu1 %v8184_v41  ;;  %v8419_v10 = vld [vmem:[#allocation16 + $0x300] sm:$0xf]  ;;  %v9373_v50 = vld [vmem:[#allocation16 + $0x3e4] sm:$0xf]  ;;  %v8139_v41 = vld [vmem:[#allocation16 + $0xc8] sm:$0xf] }
 0x35f   :  { %5319 = vmatpush.bf16.msra.mxu3 %v8500_v42  ;;  %v8420_v42 = vor.u32 %v9347_v13, %v8419_v10  ;;  %v9276_v16 = vld [vmem:[#allocation16 + $0xd4] sm:$0xf0] }
 0x361   :  { %v10167_v29 = vpop.f32.mrf.mxu2  ;;  %5336 = vmatpush.bf16.msra.mxu0 %v8056_v62  ;;  %v10173_v62 = vld [vmem:[#allocation19] sm:$0xff] }
 0x362   :  { %5358 = vmatpush.bf16.msrb.mxu2 %v8376_v21  ;;  %v3642_v1 = vperm.slane %v10173_v62, 4  ;;  %5350 = vmatpush.bf16.msra.mxu1 %v8168_v33  ;;  %v8296_v21 = vor.u32 %v9313_v18, %v8293_v26  ;;  %v9369_v33 = vld [vmem:[#allocation16 + $0x3c4] sm:$0xf]  ;;  %v9256_v18 = vld [vmem:[#allocation16 + $0x34] sm:$0xf0] }
 0x363   :  { %v4362_v34 = vpop.f32.mrf.mxu1  ;;  %5320 = vmatpush.bf16.msra.mxu3 %v8484_v36  ;;  %v8140_v36 = vor.u32 %v9276_v16, %v8139_v41  ;;  %v8251_v26 = vld [vmem:[#allocation16 + $0x1a8] sm:$0xf]  ;;  %v9304_v41 = vld [vmem:[#allocation16 + $0x1b4] sm:$0xf0]  ;;  %v9353_v16 = vld [vmem:[#allocation16 + $0x344] sm:$0xf] }
 0x364   :  { %v8357_v34 = vld [vmem:[#allocation16 + $0x290] sm:$0xf0] }
 0x365   :  { %v4401_v39 = vpop.f32.mrf.mxu0  ;;  %5337 = vmatpush.bf16.msra.mxu0 %v8040_v63  ;;  %v8360_v35 = vor.u32 %v9329_v28, %v8357_v34  ;;  %v4296_v63 = vadd.f32 %v10157_v40, %v3642_v1  ;;  %v9272_v1 = vld [vmem:[#allocation16 + $0xb4] sm:$0xf0]  ;;  %v8517_v34 = vld [vmem:[#allocation16 + $0x3d0] sm:$0xf0] }
 0x366   :  { %v9359_v39 = vld [vmem:[#allocation16 + $0x36c] sm:$0xf0] }
 0x367   :  { %5359 = vmatpush.bf16.msrb.mxu2 %v8360_v35  ;;  %v8468_v4 = vor.u32 %v9359_v39, %v8467_v38  ;;  %v4309_v11 = vadd.f32 %v10159_v22, %v4296_v63  ;;  %v8309_v22 = vld [vmem:[#allocation16 + $0x230] sm:$0xf0]  ;;  %v8520_v38 = vor.u32 %v9369_v33, %v8517_v34  ;;  %v9268_v63 = vld [vmem:[#allocation16 + $0x94] sm:$0xf0] }
 0x368   :  { %v8312_v31 = vor.u32 %v9317_v0, %v8309_v22  ;;  %v8108_v43 = vor.u32 %v9268_v63, %v8107_v14  ;;  %v8075_v22 = vld [vmem:[#allocation16 + $0x48] sm:$0xf]  ;;  %v9300_v34 = vld [vmem:[#allocation16 + $0x194] sm:$0xf0] }
 0x369   :  { %v4323_v52 = vpop.f32.mrf.mxu2  ;;  %5321 = vmatpush.bf16.msra.mxu3 %v8468_v4  ;;  %v4322_v51 = vadd.f32 %v10167_v29, %v4309_v11  ;;  %v3643_v29 = vperm.slane %v10184_v8, 4  ;;  %v8124_v4 = vor.u32 %v9272_v1, %v8123_v17  ;;  %v8043_v17 = vld [vmem:[#allocation16 + $0x8] sm:$0xf] }
 0x36a   :  { %v8328_v52 = vor.u32 %v9321_v27, %v8325_v49  ;;  %v9264_v27 = vld [vmem:[#allocation16 + $0x74] sm:$0xf0]  ;;  %v8283_v49 = vld [vmem:[#allocation16 + $0x1e8] sm:$0xf] }
 0x36b   :  { %v10169_v60 = vpop.f32.mrf.mxu1  ;;  %5360 = vmatpush.bf16.msrb.mxu2 %v8344_v46  ;;  %v4348_v44 = vadd.f32 %v10161_v23, %v3643_v29  ;;  %v8501_v46 = vld [vmem:[#allocation16 + $0x3b0] sm:$0xf0]  ;;  %v8235_v1 = vld [vmem:[#allocation16 + $0x188] sm:$0xf] }
 0x36c   :  { %v8469_v29 = vld [vmem:[#allocation16 + $0x370] sm:$0xf0] }
 0x36d   :  { %5322 = vmatpush.bf16.msra.mxu3 %v8452_v47  ;;  %v4361_v39 = vadd.f32 %v10163_v15, %v4348_v44  ;;  %v8091_v47 = vld [vmem:[#allocation16 + $0x68] sm:$0xf]  ;;  %v9252_v44 = vld [vmem:[#allocation16 + $0x14] sm:$0xf0] }
 0x36f   :  { %5361 = vmatpush.bf16.msrb.mxu2 %v8328_v52  ;;  %v9312_v52 = vld [vmem:[#allocation16 + $0x1f4] sm:$0xf0] }
 0x370   :  { %v8284_v0 = vor.u32 %v9312_v52, %v8283_v49  ;;  %v9274_v49 = vld [vmem:[#allocation16 + $0xcc] sm:$0xf] }
 0x371   :  { %v10171_v37 = vpop.f32.mrf.mxu2  ;;  %5323 = vmatpush.bf16.msra.mxu3 %v8436_v3  ;;  %v8092_v3 = vor.u32 %v9264_v27, %v8091_v47  ;;  %v8421_v47 = vld [vmem:[#allocation16 + $0x310] sm:$0xf0]  ;;  %v9344_v27 = vld [vmem:[#allocation16 + $0x2f4] sm:$0xf0] }
 0x372   :  { %v4374_v56 = vadd.f32 %v10171_v37, %v4361_v39  ;;  %v9278_v39 = vld [vmem:[#allocation16 + $0xec] sm:$0xf] }
 0x373   :  { %v4414_v19 = vpop.f32.mrf.mxu1  ;;  %5362 = vmatpush.bf16.msrb.mxu2 %v8312_v31  ;;  %v9357_v31 = vld [vmem:[#allocation16 + $0x364] sm:$0xf] }
 0x374   :  { %v8533_v19 = vld [vmem:[#allocation16 + $0x3f0] sm:$0xf0]  ;;  %v8472_v10 = vor.u32 %v9357_v31, %v8469_v29 }
 0x375   :  { %v8536_v58 = vor.u32 %v9373_v50, %v8533_v19  ;;  %5324 = vmatpush.bf16.msra.mxu3 %v8420_v42  ;;  %v8059_v42 = vld [vmem:[#allocation16 + $0x28] sm:$0xf]  ;;  %v4400_v50 = vadd.f32 %v10165_v5, %v3644_v55  ;;  %v8437_v5 = vld [vmem:[#allocation16 + $0x330] sm:$0xf0] }
 0x377   :  { %5363 = vmatpush.bf16.msrb.mxu2 %v8296_v21  ;;  %v8453_v21 = vld [vmem:[#allocation16 + $0x350] sm:$0xf0] }
 0x378   :  { %v8456_v19 = vor.u32 %v9353_v16, %v8453_v21  ;;  %v8171_v21 = vld [vmem:[#allocation16 + $0x108] sm:$0xf] }
 0x379   :  { %v4375_v45 = vpop.f32.mrf.mxu2  ;;  %5369 = vmatpush.bf16.msrb.mxu3 %v8536_v58  ;;  %v8060_v58 = vor.u32 %v9256_v18, %v8059_v42  ;;  %v9336_v42 = vld [vmem:[#allocation16 + $0x2b4] sm:$0xf0]  ;;  %v9266_v18 = vld [vmem:[#allocation16 + $0x8c] sm:$0xf] }
 0x37a   :  { %v9365_v45 = vld [vmem:[#allocation16 + $0x3a4] sm:$0xf] }
 0x37b   :  { %v10176_v25 = vpop.f32.mrf.mxu0  ;;  %v8504_v11 = vor.u32 %v9365_v45, %v8501_v46  ;;  %v8236_v45 = vor.u32 %v9300_v34, %v8235_v1  ;;  %v8219_v46 = vld [vmem:[#allocation16 + $0x168] sm:$0xf]  ;;  %v8285_v1 = vld [vmem:[#allocation16 + $0x1f8] sm:$0xf0] }
 0x37c   :  { %v10214_v34 = vld [vmem:[#allocation19 + $0x18] sm:$0xff] }
 0x37d   :  { %5370 = vmatpush.bf16.msrb.mxu3 %v8520_v38 }
 0x381   :  { %v4334_v54 = vpop.f32.mrf.mxu3  ;;  %5371 = vmatpush.bf16.msrb.mxu3 %v8504_v11 }
 0x382   :  { %v4335_v59 = vadd.f32 %v4334_v54, %v4322_v51  ;;  %v9361_v54 = vld [vmem:[#allocation16 + $0x384] sm:$0xf] }
 0x383   :  { %v4453_v40 = vpop.f32.mrf.mxu0 }
 0x384   :  { %v4494_v48 = vadd.f32 %v4335_v59, %v10047_v20  ;;  %v10182_v7 = vpop.f32.mrf.mxu2  ;;  %v8485_v59 = vld [vmem:[#allocation16 + $0x390] sm:$0xf0] }
 0x385   :  { %v8488_v37 = vor.u32 %v9361_v54, %v8485_v59 }
 0x386   :  { %v4498_v9 = vmax.f32 %v4494_v48, 0.0  ;;  %v9260_v48 = vld [vmem:[#allocation16 + $0x54] sm:$0xf0] }
 0x387   :  { %5372 = vmatpush.bf16.msrb.mxu3 %v8488_v37  ;;  %v8076_v13 = vor.u32 %v9260_v48, %v8075_v22  ;;  %v9340_v22 = vld [vmem:[#allocation16 + $0x2d4] sm:$0xf0]  ;;  %v9270_v48 = vld [vmem:[#allocation16 + $0xac] sm:$0xf] }
 0x388   :  { %v10187_v20 = vpack.c.bf16 %v4498_v9, %v4498_v9 }
 0x389   :  { %v4336_v2 = vpop.f32.mrf.mxu3 }
 0x38a   :  { %5286 = vmatmul.bf16.vlgmr.msrb.gmra.mxu0 %v10187_v20  ;;  %v4413_v2 = vadd.f32 %v10169_v60, %v4400_v50  ;;  %v8044_v60 = vor.u32 %v9252_v44, %v8043_v17  ;;  %v8093_v17 = vld [vmem:[#allocation16 + $0x78] sm:$0xf0]  ;;  %v9310_v44 = vld [vmem:[#allocation16 + $0x1ec] sm:$0xf] }
 0x38b   :  { %5382 = vmatpush.bf16.msrb.mxu0 %v8156_v12  ;;  %v10191_v28 = vpop.f32.mrf.mxu1  ;;  %5373 = vmatpush.bf16.msrb.mxu3 %v8472_v10  ;;  %v8187_v10 = vld [vmem:[#allocation16 + $0x128] sm:$0xf] }
 0x38c   :  { %v4427_v35 = vpop.f32.mrf.mxu2  ;;  %v4426_v33 = vadd.f32 %v10182_v7, %v4413_v2  ;;  %v8363_v2 = vld [vmem:[#allocation16 + $0x288] sm:$0xf] }
 0x38d   :  { %v9349_v35 = vld [vmem:[#allocation16 + $0x324] sm:$0xf] }
 0x38e   :  { %v8440_v14 = vor.u32 %v9349_v35, %v8437_v5  ;;  %v3645_v35 = vperm.slane %v10214_v34, 4 }
 0x38f   :  { %5383 = vmatpush.bf16.msrb.mxu0 %v8140_v36  ;;  %v8252_v36 = vor.u32 %v9304_v41, %v8251_v26  ;;  %5374 = vmatpush.bf16.msrb.mxu3 %v8456_v19  ;;  %v8109_v26 = vld [vmem:[#allocation16 + $0x98] sm:$0xf0]  ;;  %v9284_v19 = vld [vmem:[#allocation16 + $0x114] sm:$0xf0] }
 0x390   :  { %v8112_v16 = vor.u32 %v9266_v18, %v8109_v26  ;;  %v8221_v18 = vld [vmem:[#allocation16 + $0x178] sm:$0xf0]  ;;  %v9342_v26 = vld [vmem:[#allocation16 + $0x2ec] sm:$0xf] }
 0x391   :  { %v4386_v23 = vpop.f32.mrf.mxu3 }
 0x392   :  { %v4387_v61 = vadd.f32 %v4386_v23, %v4374_v56  ;;  %v9296_v23 = vld [vmem:[#allocation16 + $0x174] sm:$0xf0] }
 0x393   :  { %5384 = vmatpush.bf16.msrb.mxu0 %v8124_v4  ;;  %v4466_v15 = vpop.f32.mrf.mxu1  ;;  %v8157_v4 = vld [vmem:[#allocation16 + $0xf8] sm:$0xf0]  ;;  %5375 = vmatpush.bf16.msrb.mxu3 %v8440_v14  ;;  %v8220_v54 = vor.u32 %v9296_v23, %v8219_v46  ;;  %v9328_v14 = vld [vmem:[#allocation16 + $0x274] sm:$0xf0] }
 0x394   :  { %v4495_v51 = vadd.f32 %v4387_v61, %v10059_v53  ;;  %v9308_v53 = vld [vmem:[#allocation16 + $0x1d4] sm:$0xf0]  ;;  %v8160_v7 = vor.u32 %v9278_v39, %v8157_v4  ;;  %v8411_v61 = vld [vmem:[#allocation16 + $0x2e8] sm:$0xf]  ;;  %v8288_v4 = vor.u32 %v9310_v44, %v8285_v1  ;;  %v8269_v46 = vld [vmem:[#allocation16 + $0x1d8] sm:$0xf0] }
 0x395   :  { %v8268_v12 = vor.u32 %v9308_v53, %v8267_v57  ;;  %v8412_v37 = vor.u32 %v9344_v27, %v8411_v61  ;;  %v8125_v57 = vld [vmem:[#allocation16 + $0xb8] sm:$0xf0]  ;;  %v8347_v39 = vld [vmem:[#allocation16 + $0x268] sm:$0xf]  ;;  %v4452_v61 = vadd.f32 %v10176_v25, %v3645_v35  ;;  %v9254_v27 = vld [vmem:[#allocation16 + $0x2c] sm:$0xf] }
 0x396   :  { %v4499_v40 = vmax.f32 %v4495_v51, 0.0  ;;  %v8141_v51 = vld [vmem:[#allocation16 + $0xd8] sm:$0xf0]  ;;  %v8348_v23 = vor.u32 %v9328_v14, %v8347_v39  ;;  %v9368_v14 = vld [vmem:[#allocation16 + $0x3b4] sm:$0xf0] }
 0x397   :  { %5385 = vmatpush.bf16.msrb.mxu0 %v8108_v43  ;;  %v9345_v43 = vld [vmem:[#allocation16 + $0x304] sm:$0xf]  ;;  %v8144_v55 = vor.u32 %v9274_v49, %v8141_v51  ;;  %v8061_v49 = vld [vmem:[#allocation16 + $0x38] sm:$0xf0]  ;;  %v9302_v51 = vld [vmem:[#allocation16 + $0x1ac] sm:$0xf] }
 0x398   :  { %v10199_v6 = vpack.c.bf16 %v4499_v40, %v4499_v40  ;;  %v8424_v15 = vor.u32 %v9345_v43, %v8421_v47  ;;  %v8203_v40 = vld [vmem:[#allocation16 + $0x148] sm:$0xf]  ;;  %v9324_v47 = vld [vmem:[#allocation16 + $0x254] sm:$0xf0]  ;;  %v8205_v1 = vld [vmem:[#allocation16 + $0x158] sm:$0xf0] }
 0x399   :  { %v4388_v9 = vpop.f32.mrf.mxu3  ;;  %v8397_v35 = vld [vmem:[#allocation16 + $0x2d8] sm:$0xf0] }
 0x39a   :  { %5299 = vmatmul.bf16.vlgmr.msrb.gmra.mxu1 %v10199_v6  ;;  %5338 = vmatmul.bf16.vlgmr.msra.gmra.mxu0 %v10187_v20  ;;  %v8128_v9 = vor.u32 %v9270_v48, %v8125_v57  ;;  %v9298_v48 = vld [vmem:[#allocation16 + $0x18c] sm:$0xf]  ;;  %v8237_v57 = vld [vmem:[#allocation16 + $0x198] sm:$0xf0] }
 0x39b   :  { %5386 = vmatpush.bf16.msrb.mxu0 %v8092_v3  ;;  %5395 = vmatpush.bf16.msrb.mxu1 %v8284_v0  ;;  %v8395_v3 = vld [vmem:[#allocation16 + $0x2c8] sm:$0xf] }
 0x39c   :  { %5376 = vmatpush.bf16.msrb.mxu3 %v8424_v15  ;;  %v8396_v29 = vor.u32 %v9340_v22, %v8395_v3  ;;  %v8253_v15 = vld [vmem:[#allocation16 + $0x1b8] sm:$0xf0]  ;;  %v9250_v3 = vld [vmem:[#allocation16 + $0xc] sm:$0xf] }
 0x39f   :  { %5387 = vmatpush.bf16.msrb.mxu0 %v8076_v13  ;;  %5396 = vmatpush.bf16.msrb.mxu1 %v8268_v12  ;;  %v9288_v13 = vld [vmem:[#allocation16 + $0x134] sm:$0xf0]  ;;  %v8379_v12 = vld [vmem:[#allocation16 + $0x2a8] sm:$0xf] }
 0x3a0   :  { %v8188_v50 = vor.u32 %v9288_v13, %v8187_v10  ;;  %v8380_v41 = vor.u32 %v9336_v42, %v8379_v12  ;;  %v8240_v13 = vor.u32 %v9298_v48, %v8237_v57  ;;  %v9376_v12 = vld [vmem:[#allocation16 + $0x3f4] sm:$0xf0]  ;;  %v9294_v42 = vld [vmem:[#allocation16 + $0x16c] sm:$0xf]  ;;  %v8333_v48 = vld [vmem:[#allocation16 + $0x258] sm:$0xf0] }
 0x3a1   :  { %v4438_v38 = vpop.f32.mrf.mxu3 }
 0x3a2   :  { %v4439_v56 = vadd.f32 %v4438_v38, %v4426_v33  ;;  %v10206_v63 = vpop.f32.mrf.mxu2  ;;  %v8172_v33 = vor.u32 %v9284_v19, %v8171_v21 }
 0x3a3   :  { %5388 = vmatpush.bf16.msrb.mxu0 %v8060_v58  ;;  %5397 = vmatpush.bf16.msrb.mxu1 %v8252_v36  ;;  %v9332_v58 = vld [vmem:[#allocation16 + $0x294] sm:$0xf0]  ;;  %v9262_v36 = vld [vmem:[#allocation16 + $0x6c] sm:$0xf] }
 0x3a4   :  { %v4496_v11 = vadd.f32 %v4439_v56, %v10072_v30  ;;  %v9292_v30 = vld [vmem:[#allocation16 + $0x154] sm:$0xf0]  ;;  %v8364_v5 = vor.u32 %v9332_v58, %v8363_v2  ;;  %v8096_v38 = vor.u32 %v9262_v36, %v8093_v17  ;;  %v9258_v56 = vld [vmem:[#allocation16 + $0x4c] sm:$0xf]  ;;  %v8224_v2 = vor.u32 %v9294_v42, %v8221_v18  ;;  %v8523_v36 = vld [vmem:[#allocation16 + $0x3c8] sm:$0xf] }
 0x3a5   :  { %v8204_v31 = vor.u32 %v9292_v30, %v8203_v40  ;;  %v8256_v40 = vor.u32 %v9302_v51, %v8253_v15  ;;  %v9320_v30 = vld [vmem:[#allocation16 + $0x234] sm:$0xf0]  ;;  %v9290_v17 = vld [vmem:[#allocation16 + $0x14c] sm:$0xf]  ;;  %v8301_v18 = vld [vmem:[#allocation16 + $0x218] sm:$0xf0] }
 0x3a6   :  { %v4500_v52 = vmax.f32 %v4496_v11, 0.0  ;;  %v9314_v42 = vld [vmem:[#allocation16 + $0x20c] sm:$0xf] }
 0x3a7   :  { %5389 = vmatpush.bf16.msrb.mxu0 %v8044_v60  ;;  %5398 = vmatpush.bf16.msrb.mxu1 %v8236_v45  ;;  %v8077_v60 = vld [vmem:[#allocation16 + $0x58] sm:$0xf0]  ;;  %v9306_v45 = vld [vmem:[#allocation16 + $0x1cc] sm:$0xf] }
 0x3a8   :  { %v10209_v59 = vpack.c.bf16 %v4500_v52, %v4500_v52  ;;  %v8080_v11 = vor.u32 %v9258_v56, %v8077_v60  ;;  %v8272_v43 = vor.u32 %v9306_v45, %v8269_v46  ;;  %v4465_v52 = vadd.f32 %v10191_v28, %v4452_v61  ;;  %v9286_v56 = vld [vmem:[#allocation16 + $0x12c] sm:$0xf]  ;;  %v8189_v60 = vld [vmem:[#allocation16 + $0x138] sm:$0xf0]  ;;  %v9364_v61 = vld [vmem:[#allocation16 + $0x394] sm:$0xf0] }
 0x3a9   :  { %v4440_v0 = vpop.f32.mrf.mxu3  ;;  %v9334_v45 = vld [vmem:[#allocation16 + $0x2ac] sm:$0xf]  ;;  %v8381_v46 = vld [vmem:[#allocation16 + $0x2b8] sm:$0xf0] }
 0x3aa   :  { %v4479_v53 = vpop.f32.mrf.mxu2  ;;  %5312 = vmatmul.bf16.vlgmr.msra.gmra.mxu2 %v10209_v59  ;;  %5351 = vmatmul.bf16.vlgmr.msra.gmra.mxu1 %v10199_v6  ;;  %v4478_v25 = vadd.f32 %v10206_v63, %v4465_v52  ;;  %v8045_v0 = vld [vmem:[#allocation16 + $0x18] sm:$0xf0]  ;;  %v8539_v63 = vld [vmem:[#allocation16 + $0x3e8] sm:$0xf] }
 0x3ab   :  { %5434 = vmatpush.bf16.msra.mxu0 %v8160_v7  ;;  %5399 = vmatpush.bf16.msrb.mxu1 %v8220_v54  ;;  %v8331_v7 = vld [vmem:[#allocation16 + $0x248] sm:$0xf]  ;;  %v8048_v28 = vor.u32 %v9250_v3, %v8045_v0  ;;  %v8540_v21 = vor.u32 %v9376_v12, %v8539_v63  ;;  %v9356_v0 = vld [vmem:[#allocation16 + $0x354] sm:$0xf0] }
 0x3ac   :  { %5390 = vmatmul.bf16.vlgmr.msrb.gmra.mxu0 %v10187_v20  ;;  %5408 = vmatpush.bf16.msra.mxu2 %v8412_v37  ;;  %v8332_v54 = vor.u32 %v9324_v47, %v8331_v7  ;;  %v8064_v37 = vor.u32 %v9254_v27, %v8061_v49  ;;  %v8491_v7 = vld [vmem:[#allocation16 + $0x388] sm:$0xf]  ;;  %v8173_v47 = vld [vmem:[#allocation16 + $0x118] sm:$0xf0]  ;;  %v9330_v27 = vld [vmem:[#allocation16 + $0x28c] sm:$0xf] }
 0x3ad   :  { %v8365_v49 = vld [vmem:[#allocation16 + $0x298] sm:$0xf0]  ;;  %v8492_v51 = vor.u32 %v9364_v61, %v8491_v7  ;;  %v8459_v3 = vld [vmem:[#allocation16 + $0x348] sm:$0xf]  ;;  %v9348_v12 = vld [vmem:[#allocation16 + $0x314] sm:$0xf0] }
 0x3ae   :  { %v8368_v52 = vor.u32 %v9330_v27, %v8365_v49  ;;  %v8460_v57 = vor.u32 %v9356_v0, %v8459_v3  ;;  %v8427_v63 = vld [vmem:[#allocation16 + $0x308] sm:$0xf]  ;;  %v4634_v7 = vperm.slane %v10173_v62, 5  ;;  %v9392_v62 = vld [vmem:[#allocation17 + $0x74] sm:$0xf0] }
 0x3af   :  { %5435 = vmatpush.bf16.msra.mxu0 %v8144_v55  ;;  %5400 = vmatpush.bf16.msrb.mxu1 %v8204_v31  ;;  %v8315_v55 = vld [vmem:[#allocation16 + $0x228] sm:$0xf]  ;;  %v9391_v3 = vld [vmem:[#allocation17 + $0x74] sm:$0xf] }
 0x3b0   :  { %5409 = vmatpush.bf16.msra.mxu2 %v8396_v29  ;;  %v8316_v31 = vor.u32 %v9320_v30, %v8315_v55  ;;  %v8299_v29 = vld [vmem:[#allocation16 + $0x208] sm:$0xf]  ;;  %v9326_v55 = vld [vmem:[#allocation16 + $0x26c] sm:$0xf] }
 0x3b3   :  { %5436 = vmatpush.bf16.msra.mxu0 %v8128_v9  ;;  %5401 = vmatpush.bf16.msrb.mxu1 %v8188_v50  ;;  %v9316_v9 = vld [vmem:[#allocation16 + $0x214] sm:$0xf0]  ;;  %v8413_v50 = vld [vmem:[#allocation16 + $0x2f8] sm:$0xf0] }
 0x3b4   :  { %5410 = vmatpush.bf16.msra.mxu2 %v8380_v41  ;;  %v8416_v58 = vor.u32 %v9342_v26, %v8413_v50  ;;  %v9374_v26 = vld [vmem:[#allocation16 + $0x3ec] sm:$0xf]  ;;  %v8541_v50 = vld [vmem:[#allocation16 + $0x3f8] sm:$0xf0] }
 0x3b7   :  { %5437 = vmatpush.bf16.msra.mxu0 %v8112_v16  ;;  %5402 = vmatpush.bf16.msrb.mxu1 %v8172_v33  ;;  %v8300_v16 = vor.u32 %v9316_v9, %v8299_v29  ;;  %v9338_v33 = vld [vmem:[#allocation16 + $0x2cc] sm:$0xf]  ;;  %v8317_v9 = vld [vmem:[#allocation16 + $0x238] sm:$0xf0] }
 0x3b8   :  { %5411 = vmatpush.bf16.msra.mxu2 %v8364_v5  ;;  %v8400_v39 = vor.u32 %v9338_v33, %v8397_v35  ;;  %v9318_v29 = vld [vmem:[#allocation16 + $0x22c] sm:$0xf] }
 0x3b9   :  { %v9358_v35 = vld [vmem:[#allocation16 + $0x36c] sm:$0xf] }
 0x3ba   :  { %5364 = vmatmul.bf16.vlgmr.msrb.gmra.mxu2 %v10209_v59  ;;  %5403 = vmatmul.bf16.vlgmr.msrb.gmra.mxu1 %v10199_v6 }
 0x3bb   :  { %5438 = vmatpush.bf16.msra.mxu0 %v8096_v38  ;;  %5447 = vmatpush.bf16.msra.mxu1 %v8288_v4  ;;  %v8208_v38 = vor.u32 %v9290_v17, %v8205_v1  ;;  %v8507_v4 = vld [vmem:[#allocation16 + $0x3a8] sm:$0xf]  ;;  %v8493_v1 = vld [vmem:[#allocation16 + $0x398] sm:$0xf0] }
 0x3bc   :  { %5412 = vmatpush.bf16.msra.mxu2 %v8348_v23  ;;  %v8508_v23 = vor.u32 %v9368_v14, %v8507_v4  ;;  %v8461_v4 = vld [vmem:[#allocation16 + $0x358] sm:$0xf0] }
 0x3bf   :  { %5439 = vmatpush.bf16.msra.mxu0 %v8080_v11  ;;  %5448 = vmatpush.bf16.msra.mxu1 %v8272_v43  ;;  %v8384_v11 = vor.u32 %v9334_v45, %v8381_v46  ;;  %v9282_v43 = vld [vmem:[#allocation16 + $0x10c] sm:$0xf] }
 0x3c0   :  { %5413 = vmatpush.bf16.msra.mxu2 %v8332_v54  ;;  %v8176_v15 = vor.u32 %v9282_v43, %v8173_v47  ;;  %v8475_v54 = vld [vmem:[#allocation16 + $0x368] sm:$0xf]  ;;  %v9346_v46 = vld [vmem:[#allocation16 + $0x30c] sm:$0xf] }
 0x3c1   :  { %v4490_v22 = vpop.f32.mrf.mxu3 }
 0x3c2   :  { %v4491_v53 = vadd.f32 %v4490_v22, %v4478_v25  ;;  %v8349_v25 = vld [vmem:[#allocation16 + $0x278] sm:$0xf0]  ;;  %v9322_v22 = vld [vmem:[#allocation16 + $0x24c] sm:$0xf] }
 0x3c3   :  { %5440 = vmatpush.bf16.msra.mxu0 %v8064_v37  ;;  %5449 = vmatpush.bf16.msra.mxu1 %v8256_v40  ;;  %v9360_v37 = vld [vmem:[#allocation16 + $0x374] sm:$0xf0]  ;;  %v8352_v30 = vor.u32 %v9326_v55, %v8349_v25 }
 0x3c4   :  { %v4497_v10 = vadd.f32 %v4491_v53, %v10084_v32  ;;  %5414 = vmatpush.bf16.msra.mxu2 %v8316_v31  ;;  %v9372_v32 = vld [vmem:[#allocation16 + $0x3d4] sm:$0xf0]  ;;  %v8476_v40 = vor.u32 %v9360_v37, %v8475_v54  ;;  %v8336_v53 = vor.u32 %v9322_v22, %v8333_v48  ;;  %v8443_v31 = vld [vmem:[#allocation16 + $0x328] sm:$0xf]  ;;  %v8605_v22 = vld [vmem:[#allocation17 + $0x78] sm:$0xf0] }
 0x3c5   :  { %v8524_v5 = vor.u32 %v9372_v32, %v8523_v36  ;;  %v9366_v36 = vld [vmem:[#allocation16 + $0x3ac] sm:$0xf]  ;;  %v8509_v32 = vld [vmem:[#allocation16 + $0x3b8] sm:$0xf0]  ;;  %v8608_v48 = vor.u32 %v9391_v3, %v8605_v22  ;;  %v9407_v3 = vld [vmem:[#allocation17 + $0xf4] sm:$0xf] }
 0x3c6   :  { %v4501_v41 = vmax.f32 %v4497_v10, 0.0  ;;  %v8512_v17 = vor.u32 %v9366_v36, %v8509_v32 }
 0x3c7   :  { %5441 = vmatpush.bf16.msra.mxu0 %v8048_v28  ;;  %5450 = vmatpush.bf16.msra.mxu1 %v8240_v13  ;;  %v9352_v28 = vld [vmem:[#allocation16 + $0x334] sm:$0xf0]  ;;  %v8320_v13 = vor.u32 %v9318_v29, %v8317_v9  ;;  %v8597_v9 = vld [vmem:[#allocation17 + $0x68] sm:$0xf0] }
 0x3c8   :  { %v10223_v19 = vpack.c.bf16 %v4501_v41, %v4501_v41  ;;  %5415 = vmatpush.bf16.msra.mxu2 %v8300_v16  ;;  %v8444_v10 = vor.u32 %v9352_v28, %v8443_v31  ;;  %v8428_v41 = vor.u32 %v9348_v12, %v8427_v63  ;;  %v8544_v16 = vor.u32 %v9374_v26, %v8541_v50  ;;  %v9389_v31 = vld [vmem:[#allocation17 + $0x64] sm:$0xf]  ;;  %v9388_v63 = vld [vmem:[#allocation17 + $0x54] sm:$0xf0]  ;;  %v9387_v12 = vld [vmem:[#allocation17 + $0x54] sm:$0xf] }
 0x3c9   :  { %v4492_v44 = vpop.f32.mrf.mxu3 }
 0x3ca   :  { %5325 = vmatmul.bf16.vlgmr.msra.gmra.mxu3 %v10223_v19  ;;  %5442 = vmatmul.bf16.vlgmr.msra.gmra.mxu0 %v10187_v20  ;;  %v8192_v20 = vor.u32 %v9286_v56, %v8189_v60  ;;  %v9362_v44 = vld [vmem:[#allocation16 + $0x38c] sm:$0xf]  ;;  %v8445_v60 = vld [vmem:[#allocation16 + $0x338] sm:$0xf0] }
 0x3cb   :  { %5421 = vmatpush.bf16.msra.mxu3 %v8540_v21  ;;  %5451 = vmatpush.bf16.msra.mxu1 %v8224_v2  ;;  %v9370_v21 = vld [vmem:[#allocation16 + $0x3cc] sm:$0xf]  ;;  %v8525_v2 = vld [vmem:[#allocation16 + $0x3d8] sm:$0xf0]  ;;  %v8496_v33 = vor.u32 %v9362_v44, %v8493_v1  ;;  %v9384_v44 = vld [vmem:[#allocation17 + $0x34] sm:$0xf0] }
 0x3cc   :  { %5460 = vmatpush.bf16.msrb.mxu2 %v8416_v58  ;;  %v8528_v58 = vor.u32 %v9370_v21, %v8525_v2  ;;  %v9350_v56 = vld [vmem:[#allocation16 + $0x32c] sm:$0xf]  ;;  %v9383_v1 = vld [vmem:[#allocation17 + $0x34] sm:$0xf] }
 0x3cd   :  { %5416 = vmatmul.bf16.vlgmr.msra.gmra.mxu2 %v10209_v59  ;;  %v8448_v45 = vor.u32 %v9350_v56, %v8445_v60  ;;  %v8565_v56 = vld [vmem:[#allocation17 + $0x28] sm:$0xf0] }
 0x3cf   :  { %5422 = vmatpush.bf16.msra.mxu3 %v8524_v5  ;;  %5452 = vmatpush.bf16.msra.mxu1 %v8208_v38  ;;  %v8477_v5 = vld [vmem:[#allocation16 + $0x378] sm:$0xf0] }
 0x3d0   :  { %5461 = vmatpush.bf16.msrb.mxu2 %v8400_v39  ;;  %v8480_v38 = vor.u32 %v9358_v35, %v8477_v5  ;;  %v9354_v39 = vld [vmem:[#allocation16 + $0x34c] sm:$0xf]  ;;  %v8573_v35 = vld [vmem:[#allocation17 + $0x38] sm:$0xf0]  ;;  %v8563_v5 = vld [vmem:[#allocation17 + $0x20] sm:$0xf] }
 0x3d1   :  { %v8464_v14 = vor.u32 %v9354_v39, %v8461_v4  ;;  %v8576_v4 = vor.u32 %v9383_v1, %v8573_v35  ;;  %v9399_v1 = vld [vmem:[#allocation17 + $0xb4] sm:$0xf] }
 0x3d3   :  { %5423 = vmatpush.bf16.msra.mxu3 %v8508_v23  ;;  %5453 = vmatpush.bf16.msra.mxu1 %v8192_v20 }
 0x3d4   :  { %5462 = vmatpush.bf16.msrb.mxu2 %v8384_v11 }
 0x3d7   :  { %5424 = vmatpush.bf16.msra.mxu3 %v8492_v51  ;;  %5454 = vmatpush.bf16.msra.mxu1 %v8176_v15  ;;  %v4635_v15 = vperm.slane %v10184_v8, 5  ;;  %v9390_v8 = vld [vmem:[#allocation17 + $0x64] sm:$0xf0] }
 0x3d8   :  { %5463 = vmatpush.bf16.msrb.mxu2 %v8368_v52 }
 0x3da   :  { %5377 = vmatmul.bf16.vlgmr.msrb.gmra.mxu3 %v10223_v19  ;;  %5455 = vmatmul.bf16.vlgmr.msra.gmra.mxu1 %v10199_v6  ;;  %v8304_v6 = vor.u32 %v9314_v42, %v8301_v18  ;;  %v8589_v18 = vld [vmem:[#allocation17 + $0x58] sm:$0xf0] }
 0x3db   :  { %5425 = vmatpush.bf16.msra.mxu3 %v8476_v40  ;;  %v8592_v26 = vor.u32 %v9387_v12, %v8589_v18  ;;  %v8653_v12 = vld [vmem:[#allocation17 + $0xd8] sm:$0xf0] }
 0x3dc   :  { %5464 = vmatpush.bf16.msrb.mxu2 %v8352_v30  ;;  %v8603_v30 = vld [vmem:[#allocation17 + $0x70] sm:$0xf] }
 0x3dd   :  { %v8604_v0 = vor.u32 %v9392_v62, %v8603_v30 }
 0x3df   :  { %5426 = vmatpush.bf16.msra.mxu3 %v8460_v57  ;;  %5688 = vmatpush.bf16.msrb.mxu0 %v8604_v0  ;;  %v8669_v0 = vld [vmem:[#allocation17 + $0xf8] sm:$0xf0] }
 0x3e0   :  { %5465 = vmatpush.bf16.msrb.mxu2 %v8336_v53  ;;  %v8595_v53 = vld [vmem:[#allocation17 + $0x60] sm:$0xf]  ;;  %v8672_v22 = vor.u32 %v9407_v3, %v8669_v0 }
 0x3e1   :  { %v8596_v29 = vor.u32 %v9390_v8, %v8595_v53  ;;  %v9406_v53 = vld [vmem:[#allocation17 + $0xe4] sm:$0xf0]  ;;  %v9405_v8 = vld [vmem:[#allocation17 + $0xe4] sm:$0xf] }
 0x3e3   :  { %5427 = vmatpush.bf16.msra.mxu3 %v8444_v10  ;;  %v8600_v10 = vor.u32 %v9389_v31, %v8597_v9  ;;  %5689 = vmatpush.bf16.msrb.mxu0 %v8596_v29  ;;  %v8661_v29 = vld [vmem:[#allocation17 + $0xe8] sm:$0xf0]  ;;  %v8651_v9 = vld [vmem:[#allocation17 + $0xd0] sm:$0xf] }
 0x3e4   :  { %5466 = vmatpush.bf16.msrb.mxu2 %v8320_v13  ;;  %v8587_v13 = vld [vmem:[#allocation17 + $0x50] sm:$0xf] }
 0x3e5   :  { %v8588_v42 = vor.u32 %v9388_v63, %v8587_v13  ;;  %v8664_v13 = vor.u32 %v9405_v8, %v8661_v29  ;;  %v9403_v63 = vld [vmem:[#allocation17 + $0xd4] sm:$0xf] }
 0x3e7   :  { %5428 = vmatpush.bf16.msra.mxu3 %v8428_v41  ;;  %5690 = vmatpush.bf16.msrb.mxu0 %v8588_v42  ;;  %v8579_v41 = vld [vmem:[#allocation17 + $0x40] sm:$0xf] }
 0x3e8   :  { %5467 = vmatpush.bf16.msrb.mxu2 %v8304_v6  ;;  %v9386_v6 = vld [vmem:[#allocation17 + $0x44] sm:$0xf0] }
 0x3e9   :  { %v8580_v2 = vor.u32 %v9386_v6, %v8579_v41  ;;  %v8643_v41 = vld [vmem:[#allocation17 + $0xc0] sm:$0xf]  ;;  %v9402_v6 = vld [vmem:[#allocation17 + $0xc4] sm:$0xf0] }
 0x3ea   :  { %5429 = vmatmul.bf16.vlgmr.msra.gmra.mxu3 %v10223_v19 }
 0x3eb   :  { %5473 = vmatpush.bf16.msrb.mxu3 %v8544_v16  ;;  %5468 = vmatmul.bf16.vlgmr.msrb.gmra.mxu2 %v10209_v59  ;;  %v8429_v59 = vld [vmem:[#allocation16 + $0x318] sm:$0xf0]  ;;  %v9385_v16 = vld [vmem:[#allocation17 + $0x44] sm:$0xf] }
 0x3ec   :  { %v8432_v23 = vor.u32 %v9346_v46, %v8429_v59  ;;  %5714 = vmatpush.bf16.msra.mxu2 %v8608_v48  ;;  %5691 = vmatpush.bf16.msrb.mxu0 %v8580_v2  ;;  %v8645_v2 = vld [vmem:[#allocation17 + $0xc8] sm:$0xf0] }
 0x3ef   :  { %5474 = vmatpush.bf16.msrb.mxu3 %v8528_v58  ;;  %v8581_v58 = vld [vmem:[#allocation17 + $0x48] sm:$0xf0] }
 0x3f0   :  { %5715 = vmatpush.bf16.msra.mxu2 %v8600_v10  ;;  %v8584_v32 = vor.u32 %v9385_v16, %v8581_v58  ;;  %v9404_v10 = vld [vmem:[#allocation17 + $0xd4] sm:$0xf0]  ;;  %v9401_v16 = vld [vmem:[#allocation17 + $0xc4] sm:$0xf] }
 0x3f3   :  { %5475 = vmatpush.bf16.msrb.mxu3 %v8512_v17  ;;  %v8571_v17 = vld [vmem:[#allocation17 + $0x30] sm:$0xf] }
 0x3f4   :  { %5716 = vmatpush.bf16.msra.mxu2 %v8592_v26  ;;  %v8652_v26 = vor.u32 %v9404_v10, %v8651_v9 }
 0x3f7   :  { %5476 = vmatpush.bf16.msrb.mxu3 %v8496_v33  ;;  %v8572_v33 = vor.u32 %v9384_v44, %v8571_v17  ;;  %v8635_v17 = vld [vmem:[#allocation17 + $0xb0] sm:$0xf]  ;;  %v9400_v44 = vld [vmem:[#allocation17 + $0xb4] sm:$0xf0] }
 0x3f8   :  { %5717 = vmatpush.bf16.msra.mxu2 %v8584_v32  ;;  %v8648_v32 = vor.u32 %v9401_v16, %v8645_v2  ;;  %v9410_v2 = vld [vmem:[#allocation20 + $0x8] sm:$0xff] }
 0x3f9   :  { %5692 = vmatpush.bf16.msrb.mxu0 %v8572_v33  ;;  %v8637_v33 = vld [vmem:[#allocation17 + $0xb8] sm:$0xf0] }
 0x3fb   :  { %5477 = vmatpush.bf16.msrb.mxu3 %v8480_v38  ;;  %v9382_v38 = vld [vmem:[#allocation17 + $0x24] sm:$0xf0] }
 0x3fc   :  { %5718 = vmatpush.bf16.msra.mxu2 %v8576_v4  ;;  %v8627_v4 = vld [vmem:[#allocation17 + $0xa0] sm:$0xf] }
 0x3ff   :  { %5478 = vmatpush.bf16.msrb.mxu3 %v8464_v14  ;;  %v9381_v14 = vld [vmem:[#allocation17 + $0x24] sm:$0xf] }
 0x400   :  { %v8568_v46 = vor.u32 %v9381_v14, %v8565_v56  ;;  %v9398_v14 = vld [vmem:[#allocation17 + $0xa4] sm:$0xf0]  ;;  %v9397_v56 = vld [vmem:[#allocation17 + $0xa4] sm:$0xf] }
 0x402   :  { %5719 = vmatpush.bf16.msra.mxu2 %v8568_v46 }
 0x403   :  { %5479 = vmatpush.bf16.msrb.mxu3 %v8448_v45  ;;  %v8564_v45 = vor.u32 %v9382_v38, %v8563_v5  ;;  %v8636_v5 = vor.u32 %v9400_v44, %v8635_v17  ;;  %v8640_v38 = vor.u32 %v9399_v1, %v8637_v33  ;;  %v9449_v44 = vld [vmem:[#allocation19] sm:$0xff] }
 0x404   :  { %v5526_v1 = vperm.slane %v9449_v44, 6 }
 0x405   :  { %5693 = vmatpush.bf16.msrb.mxu0 %v8564_v45  ;;  %v4636_v45 = vperm.slane %v10196_v24, 5 }
 0x407   :  { %5480 = vmatpush.bf16.msrb.mxu3 %v8432_v23  ;;  %v5287_v20 = vpop.f32.mrf.mxu0  ;;  %v8555_v23 = vld [vmem:[#allocation17 + $0x10] sm:$0xf] }
 0x408   :  { %v5288_v61 = vadd.f32 %v5287_v20, %v4634_v7  ;;  %v9380_v20 = vld [vmem:[#allocation17 + $0x14] sm:$0xf0] }
 0x409   :  { %v8556_v7 = vor.u32 %v9380_v20, %v8555_v23  ;;  %v8628_v23 = vor.u32 %v9398_v14, %v8627_v4 }
 0x40a   :  { %5481 = vmatmul.bf16.vlgmr.msrb.gmra.mxu3 %v10223_v19 }
 0x40b   :  { %5694 = vmatpush.bf16.msrb.mxu0 %v8556_v7  ;;  %5727 = vmatpush.bf16.msra.mxu3 %v8672_v22  ;;  %v8619_v7 = vld [vmem:[#allocation17 + $0x90] sm:$0xf] }
 0x40f   :  { %v5289_v11 = vpop.f32.mrf.mxu0  ;;  %5728 = vmatpush.bf16.msra.mxu3 %v8664_v13 }
 0x410   :  { %v9379_v11 = vld [vmem:[#allocation17 + $0x14] sm:$0xf] }
 0x417   :  { %v5300_v43 = vpop.f32.mrf.mxu1  ;;  %v5339_v47 = vpop.f32.mrf.mxu0 }
 0x418   :  { %v10234_v27 = vadd.f32 %v5300_v43, %v5288_v61  ;;  %v5340_v52 = vadd.f32 %v5339_v47, %v4635_v15  ;;  %v8557_v61 = vld [vmem:[#allocation17 + $0x18] sm:$0xf0]  ;;  %v9378_v15 = vld [vmem:[#allocation17 + $0x4] sm:$0xf0] }
 0x419   :  { %v8560_v47 = vor.u32 %v9379_v11, %v8557_v61  ;;  %v9396_v61 = vld [vmem:[#allocation17 + $0x94] sm:$0xf0] }
 0x41b   :  { %5720 = vmatpush.bf16.msra.mxu2 %v8560_v47 }
 0x41f   :  { %v5302_v49 = vpop.f32.mrf.mxu1  ;;  %v5341_v51 = vpop.f32.mrf.mxu0 }
 0x420   :  { %v8547_v51 = vld [vmem:[#allocation17] sm:$0xf] }
 0x427   :  { %v5352_v54 = vpop.f32.mrf.mxu1 }
 0x428   :  { %v5353_v37 = vadd.f32 %v5352_v54, %v5340_v52  ;;  %v8667_v52 = vld [vmem:[#allocation17 + $0xf0] sm:$0xf]  ;;  %v8548_v54 = vor.u32 %v9378_v15, %v8547_v51  ;;  %v8620_v15 = vor.u32 %v9396_v61, %v8619_v7 }
 0x429   :  { %v10237_v55 = vpop.f32.mrf.mxu0  ;;  %v9436_v61 = vld [vmem:[%s10282_s12] ss:$0 sm:$0xff] }
 0x42a   :  { %5695 = vmatpush.bf16.msrb.mxu0 %v8548_v54  ;;  %v5392_v11 = vadd.f32 %v10237_v55, %v4636_v45  ;;  %v8611_v55 = vld [vmem:[#allocation17 + $0x80] sm:$0xf] }
 0x42d   :  { %v10239_v25 = vpop.f32.mrf.mxu2 }
 0x42e   :  { %v5314_v47 = vadd.f32 %v10239_v25, %v10234_v27  ;;  %v8613_v27 = vld [vmem:[#allocation17 + $0x88] sm:$0xf0] }
 0x42f   :  { %v5354_v19 = vpop.f32.mrf.mxu1 }
 0x430   :  { %v9377_v19 = vld [vmem:[#allocation17 + $0x4] sm:$0xf] }
 0x431   :  { %v5393_v40 = vpop.f32.mrf.mxu0 }
 0x432   :  { %v8549_v40 = vld [vmem:[#allocation17 + $0x8] sm:$0xf0] }
 0x433   :  { %v8552_v62 = vor.u32 %v9377_v19, %v8549_v40  ;;  %v9394_v40 = vld [vmem:[#allocation17 + $0x84] sm:$0xf0] }
 0x434   :  { %v8612_v0 = vor.u32 %v9394_v40, %v8611_v55 }
 0x435   :  { %v5315_v57 = vpop.f32.mrf.mxu2  ;;  %5721 = vmatpush.bf16.msra.mxu2 %v8552_v62 }
 0x436   :  { %v8659_v57 = vld [vmem:[#allocation17 + $0xe0] sm:$0xf] }
 0x437   :  { %v10241_v28 = vpop.f32.mrf.mxu1  ;;  %v8660_v31 = vor.u32 %v9406_v53, %v8659_v57 }
 0x438   :  { %v5405_v51 = vadd.f32 %v10241_v28, %v5392_v11 }
 0x43d   :  { %v5365_v50 = vpop.f32.mrf.mxu2 }
 0x43e   :  { %v10243_v21 = vadd.f32 %v5365_v50, %v5353_v37  ;;  %v9408_v37 = vld [vmem:[#allocation17 + $0xf4] sm:$0xf0]  ;;  %v8656_v50 = vor.u32 %v9403_v63, %v8653_v12 }
 0x43f   :  { %v5406_v36 = vpop.f32.mrf.mxu1  ;;  %v8668_v30 = vor.u32 %v9408_v37, %v8667_v52  ;;  %v8621_v52 = vld [vmem:[#allocation17 + $0x98] sm:$0xf0] }
 0x440   :  { %v8644_v36 = vor.u32 %v9402_v6, %v8643_v41  ;;  %5729 = vmatpush.bf16.msra.mxu3 %v8656_v50  ;;  %v9416_v41 = vld [vmem:[#allocation20 + $0x38] sm:$0xff]  ;;  %v9415_v6 = vld [vmem:[#allocation20 + $0x30] sm:$0xff] }
 0x441   :  { %5701 = vmatpush.bf16.msrb.mxu1 %v8668_v30  ;;  %v9393_v30 = vld [vmem:[#allocation17 + $0x84] sm:$0xf]  ;;  %5812 = vmatpush.bf16.msra.mxu0 %v9416_v41 }
 0x442   :  { %v8616_v25 = vor.u32 %v9393_v30, %v8613_v27 }
 0x444   :  { %5730 = vmatpush.bf16.msra.mxu3 %v8648_v32 }
 0x445   :  { %v5367_v60 = vpop.f32.mrf.mxu2  ;;  %5702 = vmatpush.bf16.msrb.mxu1 %v8660_v31  ;;  %5813 = vmatpush.bf16.msra.mxu0 %v9415_v6 }
 0x446   :  { %v8629_v60 = vld [vmem:[#allocation17 + $0xa8] sm:$0xf0] }
 0x447   :  { %v10245_v39 = vpop.f32.mrf.mxu0  ;;  %v8632_v20 = vor.u32 %v9397_v56, %v8629_v60 }
 0x448   :  { %5731 = vmatpush.bf16.msra.mxu3 %v8640_v38 }
 0x449   :  { %5703 = vmatpush.bf16.msrb.mxu1 %v8652_v26 }
 0x44c   :  { %5732 = vmatpush.bf16.msra.mxu3 %v8632_v20 }
 0x44d   :  { %v10247_v59 = vpop.f32.mrf.mxu3  ;;  %5704 = vmatpush.bf16.msrb.mxu1 %v8644_v36  ;;  %v9409_v36 = vld [vmem:[#allocation20] sm:$0xff] }
 0x44e   :  { %v5327_v54 = vadd.f32 %v10247_v59, %v5314_v47 }
 0x44f   :  { %v5445_v43 = vpop.f32.mrf.mxu0 }
 0x450   :  { %v10249_v49 = vpop.f32.mrf.mxu2  ;;  %v9395_v43 = vld [vmem:[#allocation17 + $0x94] sm:$0xf]  ;;  %v5486_v28 = vmax.f32 %v5327_v54, 0.0 }
 0x451   :  { %5705 = vmatpush.bf16.msrb.mxu1 %v8636_v5  ;;  %v8624_v24 = vor.u32 %v9395_v43, %v8621_v52  ;;  %v5418_v37 = vadd.f32 %v10249_v49, %v5405_v51  ;;  %v4637_v49 = vperm.slane %v10214_v34, 5  ;;  %v9414_v34 = vld [vmem:[#allocation20 + $0x28] sm:$0xff] }
 0x452   :  { %5814 = vmatpush.bf16.msra.mxu0 %v9414_v34 }
 0x453   :  { %5733 = vmatpush.bf16.msra.mxu3 %v8624_v24  ;;  %v5444_v8 = vadd.f32 %v10245_v39, %v4637_v49  ;;  %v9413_v39 = vld [vmem:[#allocation20 + $0x20] sm:$0xff] }
 0x455   :  { %v5328_v48 = vpop.f32.mrf.mxu3  ;;  %5706 = vmatpush.bf16.msrb.mxu1 %v8628_v23 }
 0x456   :  { %5815 = vmatpush.bf16.msra.mxu0 %v9413_v39 }
 0x457   :  { %v10251_v42 = vpop.f32.mrf.mxu1  ;;  %5734 = vmatpush.bf16.msra.mxu3 %v8616_v25 }
 0x458   :  { %v5419_v18 = vpop.f32.mrf.mxu2  ;;  %v5457_v31 = vadd.f32 %v10251_v42, %v5444_v8  ;;  %v9412_v42 = vld [vmem:[#allocation20 + $0x18] sm:$0xff] }
 0x459   :  { %5707 = vmatpush.bf16.msrb.mxu1 %v8620_v15 }
 0x45a   :  { %5816 = vmatpush.bf16.msra.mxu0 %v9412_v42 }
 0x45d   :  { %v5378_v58 = vpop.f32.mrf.mxu3  ;;  %5708 = vmatpush.bf16.msrb.mxu1 %v8612_v0 }
 0x45e   :  { %v5379_v29 = vadd.f32 %v5378_v58, %v10243_v21  ;;  %v9411_v21 = vld [vmem:[#allocation20 + $0x10] sm:$0xff] }
 0x45f   :  { %v5458_v35 = vpop.f32.mrf.mxu1  ;;  %5817 = vmatpush.bf16.msra.mxu0 %v9411_v21 }
 0x460   :  { %v5487_v63 = vmax.f32 %v5379_v29, 0.0  ;;  %v9450_v35 = vld [vmem:[#allocation19 + $0x8] sm:$0xff] }
 0x461   :  { %v5527_v5 = vperm.slane %v9450_v35, 6 }
 0x463   :  { %5818 = vmatpush.bf16.msra.mxu0 %v9410_v2 }
 0x465   :  { %v5380_v46 = vpop.f32.mrf.mxu3 }
 0x467   :  { %5819 = vmatpush.bf16.msra.mxu0 %v9409_v36 }
 0x46d   :  { %v5430_v19 = vpop.f32.mrf.mxu3 }
 0x46e   :  { %v5431_v62 = vadd.f32 %v5430_v19, %v5418_v37  ;;  %v5469_v3 = vpop.f32.mrf.mxu2 }
 0x46f   :  { %v5470_v9 = vadd.f32 %v5469_v3, %v5457_v31 }
 0x470   :  { %v5488_v22 = vmax.f32 %v5431_v62, 0.0 }
 0x472   :  { %v5490_v48 = vmax.f32 %v5486_v28, %v5488_v22 }
 0x474   :  { %v5524_v57 = vpack.c.bf16 %v5490_v48, %v5490_v48 }
 0x475   :  { %v5432_v59 = vpop.f32.mrf.mxu3 }
 0x476   :  { %v5471_v53 = vpop.f32.mrf.mxu2  ;;  %5696 = vmatmul.bf16.vlgmr.msrb.gmra.mxu0 %v5524_v57  ;;  %5722 = vmatmul.bf16.vlgmr.msra.gmra.mxu2 %v5524_v57 }
 0x48d   :  { %v5482_v10 = vpop.f32.mrf.mxu3 }
 0x48e   :  { %v5483_v13 = vadd.f32 %v5482_v10, %v5470_v9 }
 0x490   :  { %v5489_v12 = vmax.f32 %v5483_v13, 0.0 }
 0x492   :  { %v5491_v18 = vmax.f32 %v5487_v63, %v5489_v12 }
 0x494   :  { %v5525_v26 = vpack.c.bf16 %v5491_v18, %v5491_v18 }
 0x495   :  { %v5484_v50 = vpop.f32.mrf.mxu3 }
 0x496   :  { %5709 = vmatmul.bf16.vlgmr.msrb.gmra.mxu1 %v5525_v26  ;;  %5735 = vmatmul.bf16.vlgmr.msra.gmra.mxu3 %v5525_v26 }
 0x4f3   :  { %v5697_v16 = vpop.f32.mrf.mxu0 }
 0x4f4   :  { %v5698_v38 = vadd.f32 %v5697_v16, %v5526_v1 }
 0x4f9   :  { %v5723_v58 = vpop.f32.mrf.mxu2 }
 0x4fa   :  { %v5724_v4 = vadd.f32 %v5723_v58, %v5527_v5 }
 0x4fb   :  { %v5699_v32 = vpop.f32.mrf.mxu0 }
 0x501   :  { %v5725_v17 = vpop.f32.mrf.mxu2 }
 0x513   :  { %v5710_v33 = vpop.f32.mrf.mxu1 }
 0x514   :  { %v5711_v14 = vadd.f32 %v5710_v33, %v5698_v38 }
 0x516   :  { %v5740_v46 = vmax.f32 %v5711_v14, 0.0 }
 0x519   :  { %v5736_v56 = vpop.f32.mrf.mxu3 }
 0x51a   :  { %v5737_v60 = vadd.f32 %v5736_v56, %v5724_v4 }
 0x51b   :  { %v5712_v45 = vpop.f32.mrf.mxu1 }
 0x51c   :  { %v5741_v23 = vmax.f32 %v5737_v60, 0.0 }
 0x51e   :  { %v5742_v20 = vmax.f32 %v5740_v46, %v5741_v23 }
 0x520   :  { %v5759_v11 = vpack.c.bf16 %v5742_v20, %v5742_v20 }
 0x521   :  { %v5738_v7 = vpop.f32.mrf.mxu3 }
 0x522   :  { %5820 = vmatmul.bf16.vlgmr.msra.gmra.mxu0 %v5759_v11 }
 0x59f   :  { %v5821_v43 = vpop.f32.mrf.mxu0 }
 0x5a0   :  { %v5822_v47 = vadd.f32 %v9436_v61, %v5821_v43 }
 0x5a2   :  { %5825 = vst [vmem:[#allocation22] sm:$0xff] %v5822_v47 }
 0x5a3   :  { %5836 = dma.vmem_to_hbm [thread:$0]  %s5832_s5, 128, %s5834_s27, [#allocation4]  }
 0x5a7   :  { %v5823_v51 = vpop.f32.mrf.mxu0 }
 0x5a8   :  { %9777 = dma.done.wait [#allocation4], 128  }
 0x5a9   :  { %9778 = vsyncadd [#allocation4], 4294967168 }
 0x5aa   :  { %5841 = vsyncpa [#allocation3], 1 }
 0x5ab   :  { %5842 = vsyncpa [#allocation6], 1 }
 0x5ac   :  { %5843 = vsyncpa [#allocation9], 1 }
 0x5ad   :  { %5844 = vsyncpa [#allocation12], 1 }
 0x5ae   :  { %5845 = vsyncpa [#allocation15], 1 }
 0x5af   :  { %5846 = vsyncpa [#allocation18], 1 }
 0x5b0   :  { %5847 = vsyncpa [#allocation21], 1 }
 0x5b1   :  { %5848 = vsyncpa [#allocation4], 1 }

</bundles_post_ra>
